<compile_context>
chip_gen: v7x
topology: tpu7x:2x2x1
jax: 0.10.0
libtpu: 0.0.40
codegen_flags: <defaults>
</compile_context>

<pallas_src>
import functools
from collections import namedtuple

import jax
import jax.numpy as jnp
from jax.experimental import pallas as pl
from jax.experimental.pallas import tpu as pltpu

LANE = 128


def _round_up(n, m):
    return ((n + m - 1) // m) * m


def _mlp_kernel(x_ref, w1_ref, b1_ref, w2_ref, b2_ref, w3_ref, b3_ref, o_ref):
    # x arrives as f32; cast to bf16 here (VPU work hidden under the MXU) so the
    # HBM read of x is 4 B/elem instead of a padded bf16 round trip.
    x = x_ref[...].astype(jnp.bfloat16)
    # Layer 1: bf16 MXU inputs, f32 accumulate, f32 bias + ReLU epilogue.
    h1 = jnp.dot(x, w1_ref[...], preferred_element_type=jnp.float32)
    h1 = jnp.maximum(h1 + b1_ref[...], 0.0).astype(jnp.bfloat16)
    # Layer 2: Linear + ReLU.
    h2 = jnp.dot(h1, w2_ref[...], preferred_element_type=jnp.float32)
    h2 = jnp.maximum(h2 + b2_ref[...], 0.0).astype(jnp.bfloat16)
    # Layer 3: Linear (logits), f32 epilogue + store.
    logits = jnp.dot(h2, w3_ref[...], preferred_element_type=jnp.float32)
    o_ref[...] = (logits + b3_ref[...]).astype(o_ref.dtype)


PreparedMLP = namedtuple("PreparedMLP", ["weights", "d_out"])


def prepare_params(params):
    """One-time padding to lane multiples + bf16 cast of the weights.

    Hoisted out of the per-call jitted path (per perf review): padded weight
    rows/cols are zero, so padded hidden units stay exactly 0 through the ReLUs
    and contribute nothing; padded logit columns are sliced off in the wrapper.
    """
    w1, b1, w2, b2, w3, b3 = params
    d_in, d_h = w1.shape
    d_out = w3.shape[1]
    d_in_p = _round_up(d_in, LANE)
    d_h_p = _round_up(d_h, LANE)
    d_out_p = _round_up(d_out, LANE)

    def pad2(a, r, c, dt):
        a = jnp.asarray(a, dt)
        return jnp.pad(a, ((0, r - a.shape[0]), (0, c - a.shape[1])))

    weights = (
        pad2(w1, d_in_p, d_h_p, jnp.bfloat16),
        pad2(b1, 1, d_h_p, jnp.float32),
        pad2(w2, d_h_p, d_h_p, jnp.bfloat16),
        pad2(b2, 1, d_h_p, jnp.float32),
        pad2(w3, d_h_p, d_out_p, jnp.bfloat16),
        pad2(b3, 1, d_out_p, jnp.float32),
    )
    weights = jax.tree_util.tree_map(jax.block_until_ready, weights)
    return PreparedMLP(weights=weights, d_out=d_out)


def _choose_batch_tiling(B):
    """Returns (padded_batch, batch_tile)."""
    # Tiny, weight-DMA-bound batches: one tile (splitting would make each
    # TensorCore re-DMA the full weight set). Round to 16 rows (packed tile).
    if B <= 128:
        b_p = _round_up(max(B, 16), 16)
        return b_p, b_p
    # Larger batches: minimize dead padded rows, prefer >= 2 tiles (megacore),
    # then the largest tile (amortizes the per-grid-step overhead).
    best = None
    for tb in (128, 256, 512):
        b_p = _round_up(B, tb)
        n = b_p // tb
        key = (b_p - B, 0 if n >= 2 else 1, -tb)
        if best is None or key < best[0]:
            best = (key, (b_p, tb))
    return best[1]


@functools.partial(jax.jit, static_argnames=("d_out",))
def _mlp_forward_padded(x, padded_weights, d_out):
    w1_p, b1_p, w2_p, b2_p, w3_p, b3_p = padded_weights
    B = x.shape[0]
    x2d = x.reshape(B, -1).astype(jnp.float32)
    d_in = x2d.shape[1]
    d_in_p, d_h_p = w1_p.shape
    d_out_p = w3_p.shape[1]
    assert d_in <= d_in_p, "input feature dim larger than prepared weights"

    b_p, tb = _choose_batch_tiling(B)
    n_tiles = b_p // tb

    pad_rows = b_p - B
    pad_cols = d_in_p - d_in
    if pad_rows or pad_cols:
        x2d = jnp.pad(x2d, ((0, pad_rows), (0, pad_cols)))

    flops = 2 * b_p * (d_in_p * d_h_p + d_h_p * d_h_p + d_h_p * d_out_p)
    bytes_accessed = (
        x2d.size * 4
        + (w1_p.size + w2_p.size + w3_p.size) * 2
        + (b1_p.size + b2_p.size + b3_p.size) * 4
        + b_p * d_out_p * 4
    )

    out = pl.pallas_call(
        _mlp_kernel,
        out_shape=jax.ShapeDtypeStruct((b_p, d_out_p), jnp.float32),
        grid=(n_tiles,),
        in_specs=[
            # x tile walks the batch; weights/biases have constant index maps
            # -> fetched once, VMEM-resident across all grid steps.
            pl.BlockSpec((tb, d_in_p), lambda i: (i, 0)),
            pl.BlockSpec((d_in_p, d_h_p), lambda i: (0, 0)),
            pl.BlockSpec((1, d_h_p), lambda i: (0, 0)),
            pl.BlockSpec((d_h_p, d_h_p), lambda i: (0, 0)),
            pl.BlockSpec((1, d_h_p), lambda i: (0, 0)),
            pl.BlockSpec((d_h_p, d_out_p), lambda i: (0, 0)),
            pl.BlockSpec((1, d_out_p), lambda i: (0, 0)),
        ],
        out_specs=pl.BlockSpec((tb, d_out_p), lambda i: (i, 0)),
        compiler_params=pltpu.CompilerParams(
            dimension_semantics=("parallel",),
            vmem_limit_bytes=40 * 1024 * 1024,
        ),
        cost_estimate=pl.CostEstimate(
            flops=flops, transcendentals=0, bytes_accessed=bytes_accessed),
    )(x2d, w1_p, b1_p, w2_p, b2_p, w3_p, b3_p)

    return out[:B, :d_out]


def mlp_forward(x, params):
    """x: [B, 32, 32] (or [B, D_in]); returns logits [B, D_out] in f32.

    Accepts either a PreparedMLP (preferred: pad/cast hoisted out of the call
    path) or the raw parameter tuple (prepared on the fly for convenience).
    """
    prepared = params if isinstance(params, PreparedMLP) else prepare_params(params)
    return _mlp_forward_padded(x, prepared.weights, prepared.d_out)


def cross_entropy(logits, y):
    # Glue (matches F.cross_entropy with integer targets, mean reduction).
    logz = jax.nn.logsumexp(logits, axis=-1)
    ll = jnp.take_along_axis(logits, y[:, None], axis=-1)[:, 0]
    return jnp.mean(logz - ll)


def mlp_apply(x, params, y=None):
    logits = mlp_forward(x, params)
    loss = cross_entropy(logits, y) if y is not None else None
    return loss, logits


def init_params(key, sizes=(32 * 32, 784, 369)):
    """Xavier-normal weights with gain=sqrt(2) (torch 'relu' gain), zero bias."""
    d_in, d_h, d_out = sizes
    gain = jnp.sqrt(2.0)
    k1, k2, k3 = jax.random.split(key, 3)

    def xavier(k, fan_in, fan_out):
        std = gain * jnp.sqrt(2.0 / (fan_in + fan_out))
        # Stored as [in, out] (transposed vs torch's [out, in]); same distribution.
        return (std * jax.random.normal(k, (fan_in, fan_out))).astype(jnp.float32)

    w1 = xavier(k1, d_in, d_h)
    b1 = jnp.zeros((1, d_h), jnp.float32)
    w2 = xavier(k2, d_h, d_h)
    b2 = jnp.zeros((1, d_h), jnp.float32)
    w3 = xavier(k3, d_h, d_out)
    b3 = jnp.zeros((1, d_out), jnp.float32)
    return (w1, b1, w2, b2, w3, b3)


if __name__ == "__main__":
    key = jax.random.PRNGKey(0)
    pkey, xkey = jax.random.split(key)
    params = init_params(pkey)
    prepared = prepare_params(params)   # one-time pad + bf16 cast

    # Small deterministic input: batch=2, "image" 32x32 -> flattened to 1024.
    x = jax.random.normal(xkey, (2, 32, 32), dtype=jnp.float32)

    loss, logits = mlp_apply(x, prepared, y=None)
    logits = jax.block_until_ready(logits)
    assert logits.shape == (2, 369) and logits.dtype == jnp.float32
    assert loss is None

    # Reference mirroring the kernel's numerics (bf16 matmul inputs, f32 accum).
    w1, b1, w2, b2, w3, b3 = params
    hi = jax.lax.Precision.HIGHEST
    bf = lambda a: a.astype(jnp.bfloat16).astype(jnp.float32)
    xf = bf(x.reshape(2, -1))
    h1 = jnp.maximum(jnp.dot(xf, bf(w1), precision=hi) + b1, 0.0)
    h2 = jnp.maximum(jnp.dot(bf(h1), bf(w2), precision=hi) + b2, 0.0)
    ref = jnp.dot(bf(h2), bf(w3), precision=hi) + b3
    assert jnp.allclose(logits, ref, atol=2e-2, rtol=2e-2)

    # Loose check against the pure-f32 reference (bf16 weight quantization drift).
    r1 = jnp.maximum(x.reshape(2, -1) @ w1 + b1, 0.0)
    r2 = jnp.maximum(r1 @ w2 + b2, 0.0)
    ref_f32 = r2 @ w3 + b3
    assert jnp.allclose(logits, ref_f32, atol=0.25, rtol=0.05)

    # Exercise the multi-tile / megacore path: B=160 -> tb=128, 2 grid tiles,
    # ragged last tile padded with zero rows that are sliced off.
    xb = jax.random.normal(jax.random.PRNGKey(1), (160, 32, 32), dtype=jnp.float32)
    _, logits_b = mlp_apply(xb, prepared)
    logits_b = jax.block_until_ready(logits_b)
    assert logits_b.shape == (160, 369) and logits_b.dtype == jnp.float32
    xbf = bf(xb.reshape(160, -1))
    hb1 = jnp.maximum(jnp.dot(xbf, bf(w1), precision=hi) + b1, 0.0)
    hb2 = jnp.maximum(jnp.dot(bf(hb1), bf(w2), precision=hi) + b2, 0.0)
    refb = jnp.dot(bf(hb2), bf(w3), precision=hi) + b3
    assert jnp.allclose(logits_b, refb, atol=5e-2, rtol=5e-2)

    print("KERNEL_OK")
</pallas_src>

<mosaic_0001>
module attributes {stable_mosaic.version = 11 : i64} {
  func.func @_mlp_kernel(%arg0: i32, %arg1: memref<16x1024xf32, #tpu.memory_space<vmem>>, %arg2: memref<1024x896xbf16, #tpu.memory_space<vmem>>, %arg3: memref<1x896xf32, #tpu.memory_space<vmem>>, %arg4: memref<896x896xbf16, #tpu.memory_space<vmem>>, %arg5: memref<1x896xf32, #tpu.memory_space<vmem>>, %arg6: memref<896x384xbf16, #tpu.memory_space<vmem>>, %arg7: memref<1x384xf32, #tpu.memory_space<vmem>>, %arg8: memref<16x384xf32, #tpu.memory_space<vmem>>) attributes {dimension_semantics = [#tpu.dimension_semantics<parallel>], iteration_bounds = array<i64: 1>, scalar_prefetch = 0 : i64, scratch_operands = 0 : i64, tpu.core_type = #tpu.core_type<tc>, window_params = [{transform_indices = @transform_0, window_bounds = array<i64: 16, 1024>}, {pipeline_mode = #tpu.pipeline_mode<synchronous>, transform_indices = @transform_1, window_bounds = array<i64: 1024, 896>}, {pipeline_mode = #tpu.pipeline_mode<synchronous>, transform_indices = @transform_2, window_bounds = array<i64: 1, 896>}, {pipeline_mode = #tpu.pipeline_mode<synchronous>, transform_indices = @transform_3, window_bounds = array<i64: 896, 896>}, {pipeline_mode = #tpu.pipeline_mode<synchronous>, transform_indices = @transform_4, window_bounds = array<i64: 1, 896>}, {pipeline_mode = #tpu.pipeline_mode<synchronous>, transform_indices = @transform_5, window_bounds = array<i64: 896, 384>}, {pipeline_mode = #tpu.pipeline_mode<synchronous>, transform_indices = @transform_6, window_bounds = array<i64: 1, 384>}, {transform_indices = @transform_7, window_bounds = array<i64: 16, 384>}]} {
    %c0 = arith.constant 0 : index
    %c0_0 = arith.constant 0 : index
    %0 = vector.load %arg1[%c0, %c0_0] : memref<16x1024xf32, #tpu.memory_space<vmem>>, vector<16x1024xf32>
    %1 = arith.truncf %0 : vector<16x1024xf32> to vector<16x1024xbf16>
    %c0_1 = arith.constant 0 : index
    %c0_2 = arith.constant 0 : index
    %2 = vector.load %arg2[%c0_1, %c0_2] : memref<1024x896xbf16, #tpu.memory_space<vmem>>, vector<1024x896xbf16>
    %cst = arith.constant dense<0.000000e+00> : vector<16x896xf32>
    %3 = tpu.matmul %1, %2, %cst {dimension_numbers = #tpu.dot_dimension_numbers<[1], [0], [0], [1], [0, 0, 1, 1], [], []>} : vector<16x1024xbf16>, vector<1024x896xbf16>, vector<16x896xf32> -> vector<16x896xf32>
    %c0_3 = arith.constant 0 : index
    %c0_4 = arith.constant 0 : index
    %4 = vector.load %arg3[%c0_3, %c0_4] : memref<1x896xf32, #tpu.memory_space<vmem>>, vector<1x896xf32>
    %5 = vector.broadcast %4 : vector<1x896xf32> to vector<16x896xf32>
    %6 = arith.addf %3, %5 : vector<16x896xf32>
    %cst_5 = arith.constant 0.000000e+00 : f32
    %7 = vector.broadcast %cst_5 : f32 to vector<16x896xf32>
    %8 = arith.maximumf %6, %7 : vector<16x896xf32>
    %9 = arith.truncf %8 : vector<16x896xf32> to vector<16x896xbf16>
    %c0_6 = arith.constant 0 : index
    %c0_7 = arith.constant 0 : index
    %10 = vector.load %arg4[%c0_6, %c0_7] : memref<896x896xbf16, #tpu.memory_space<vmem>>, vector<896x896xbf16>
    %cst_8 = arith.constant dense<0.000000e+00> : vector<16x896xf32>
    %11 = tpu.matmul %9, %10, %cst_8 {dimension_numbers = #tpu.dot_dimension_numbers<[1], [0], [0], [1], [0, 0, 1, 1], [], []>} : vector<16x896xbf16>, vector<896x896xbf16>, vector<16x896xf32> -> vector<16x896xf32>
    %c0_9 = arith.constant 0 : index
    %c0_10 = arith.constant 0 : index
    %12 = vector.load %arg5[%c0_9, %c0_10] : memref<1x896xf32, #tpu.memory_space<vmem>>, vector<1x896xf32>
    %13 = vector.broadcast %12 : vector<1x896xf32> to vector<16x896xf32>
    %14 = arith.addf %11, %13 : vector<16x896xf32>
    %cst_11 = arith.constant 0.000000e+00 : f32
    %15 = vector.broadcast %cst_11 : f32 to vector<16x896xf32>
    %16 = arith.maximumf %14, %15 : vector<16x896xf32>
    %17 = arith.truncf %16 : vector<16x896xf32> to vector<16x896xbf16>
    %c0_12 = arith.constant 0 : index
    %c0_13 = arith.constant 0 : index
    %18 = vector.load %arg6[%c0_12, %c0_13] : memref<896x384xbf16, #tpu.memory_space<vmem>>, vector<896x384xbf16>
    %cst_14 = arith.constant dense<0.000000e+00> : vector<16x384xf32>
    %19 = tpu.matmul %17, %18, %cst_14 {dimension_numbers = #tpu.dot_dimension_numbers<[1], [0], [0], [1], [0, 0, 1, 1], [], []>} : vector<16x896xbf16>, vector<896x384xbf16>, vector<16x384xf32> -> vector<16x384xf32>
    %c0_15 = arith.constant 0 : index
    %c0_16 = arith.constant 0 : index
    %20 = vector.load %arg7[%c0_15, %c0_16] : memref<1x384xf32, #tpu.memory_space<vmem>>, vector<1x384xf32>
    %21 = vector.broadcast %20 : vector<1x384xf32> to vector<16x384xf32>
    %22 = arith.addf %19, %21 : vector<16x384xf32>
    %c0_17 = arith.constant 0 : index
    %c0_18 = arith.constant 0 : index
    %23 = vector.load %arg8[%c0_17, %c0_18] : memref<16x384xf32, #tpu.memory_space<vmem>>, vector<16x384xf32>
    tpu.vector_store %arg8[%c0_17, %c0_18], %22 {strides = array<i32>} : memref<16x384xf32, #tpu.memory_space<vmem>>, vector<16x384xf32>,
    return
  }
  func.func @transform_0(%arg0: i32) -> (i32, i32) {
    %c0_i32 = arith.constant 0 : i32
    %c0_i32_0 = arith.constant 0 : i32
    return %arg0, %c0_i32 : i32, i32
  }
  func.func @transform_1(%arg0: i32) -> (i32, i32) {
    %c0_i32 = arith.constant 0 : i32
    %c0_i32_0 = arith.constant 0 : i32
    %c0_i32_1 = arith.constant 0 : i32
    return %c0_i32, %c0_i32_0 : i32, i32
  }
  func.func @transform_2(%arg0: i32) -> (i32, i32) {
    %c0_i32 = arith.constant 0 : i32
    %c0_i32_0 = arith.constant 0 : i32
    %c0_i32_1 = arith.constant 0 : i32
    return %c0_i32, %c0_i32_0 : i32, i32
  }
  func.func @transform_3(%arg0: i32) -> (i32, i32) {
    %c0_i32 = arith.constant 0 : i32
    %c0_i32_0 = arith.constant 0 : i32
    %c0_i32_1 = arith.constant 0 : i32
    return %c0_i32, %c0_i32_0 : i32, i32
  }
  func.func @transform_4(%arg0: i32) -> (i32, i32) {
    %c0_i32 = arith.constant 0 : i32
    %c0_i32_0 = arith.constant 0 : i32
    %c0_i32_1 = arith.constant 0 : i32
    return %c0_i32, %c0_i32_0 : i32, i32
  }
  func.func @transform_5(%arg0: i32) -> (i32, i32) {
    %c0_i32 = arith.constant 0 : i32
    %c0_i32_0 = arith.constant 0 : i32
    %c0_i32_1 = arith.constant 0 : i32
    return %c0_i32, %c0_i32_0 : i32, i32
  }
  func.func @transform_6(%arg0: i32) -> (i32, i32) {
    %c0_i32 = arith.constant 0 : i32
    %c0_i32_0 = arith.constant 0 : i32
    %c0_i32_1 = arith.constant 0 : i32
    return %c0_i32, %c0_i32_0 : i32, i32
  }
  func.func @transform_7(%arg0: i32) -> (i32, i32) {
    %c0_i32 = arith.constant 0 : i32
    %c0_i32_0 = arith.constant 0 : i32
    return %arg0, %c0_i32 : i32, i32
  }
}

</mosaic_0001>

<bundles_post_ra>
// kernel: _mlp_forward_padded.1
= control target key start
LH: loop header
LB: loop body
LE: loop exit
PB: predicated region body
PF: predicated region fallthrough
CT: control target
= control target key end

     0   :  { %12 = vsyncpa [#allocation3], 0  ;;  %s11751_s0 = inlined_call_operand.vmem [shape: f32[16,1024], index: 0, kind: input, shape index: {}]   ;;  %s11752_s1 = inlined_call_operand.hbm [shape: bf16[1024,896], index: 1, kind: input, shape index: {}]   ;;  %s11753_s2 = inlined_call_operand.hbm [shape: f32[1,896], index: 2, kind: input, shape index: {}]   ;;  %s11754_s3 = inlined_call_operand.hbm [shape: bf16[896,896], index: 3, kind: input, shape index: {}]   ;;  %s11755_s4 = inlined_call_operand.hbm [shape: f32[1,896], index: 4, kind: input, shape index: {}]   ;;  %s11756_s5 = inlined_call_operand.hbm [shape: bf16[896,384], index: 5, kind: input, shape index: {}]   ;;  %s11757_s6 = inlined_call_operand.hbm [shape: f32[1,384], index: 6, kind: input, shape index: {}]   ;;  %s11758_s7 = inlined_call_operand.vmem [shape: f32[16,384], index: 7, kind: output, shape index: {}]  }
   0x1   :  { %13 = vsyncpa [#allocation5], 0 }
   0x2   :  { %14 = vsyncpa [#allocation8], 0 }
   0x3   :  { %15 = vsyncpa [#allocation11], 0  ;;  %s11346_s24 = smov [#allocation4]   ;;  %s11347_s26 = smov [#allocation7]  }
   0x4   :  { %s36_s25 = sshll.u32 %s11346_s24, 4  ;;  %s58_s27 = sshll.u32 %s11347_s26, 4  ;;  %s37_s25 = int_to_ptr.vmem [resolvable:$true] %s36_s25  ;;  %s59_s27 = int_to_ptr.vmem [resolvable:$true] %s58_s27 }
   0x5   :  { %s11206_s30 = scalar_lea.hbm %s11753_s2, 112 }
   0x6   :  { %p11207_p0 = scmp.ne.s32.totalorder %s11753_s2, %s11206_s30  ;;  %p11210_p1 = scmp.lt.u32.totalorder %s11206_s30, %s11753_s2 }
   0x8   :  { %p11212_p2 = pnand %p11210_p1, %p11207_p0 }
   0xa   :  { %11215 = shalt.err (!%p11212_p2)
}
   0xb   :  { %s11216_s12 = scalar_lea.vmem %s37_s25, 112  ;;  %s11220_s13 = scalar_lea.vmem %s37_s25, 128 }
   0xc   :  { %p11217_p3 = scmp.ne.s32.totalorder %s37_s25, %s11216_s12  ;;  %p11221_p4 = scmp.lt.s32.totalorder %s37_s25, %s37_s25 }
   0xd   :  { %p11222_p5 = scmp.lt.s32.totalorder %s11220_s13, %s11216_s12 }
   0xf   :  { %p11223_p6 = por %p11222_p5, %p11221_p4 }
  0x11   :  { %p11224_p7 = pnand %p11223_p6, %p11217_p3 }
  0x13   :  { %11227 = shalt.err (!%p11224_p7)
}
  0x14   :  { %39 = dma.hbm_to_vmem [thread:$0]  %s11753_s2, 112, %s37_s25, [#allocation5]  }
  0x15   :  { %s11228_s18 = scalar_lea.hbm %s11755_s4, 112 }
  0x16   :  { %p11229_p8 = scmp.ne.s32.totalorder %s11755_s4, %s11228_s18  ;;  %p11232_p9 = scmp.lt.u32.totalorder %s11228_s18, %s11755_s4 }
  0x18   :  { %p11234_p10 = pnand %p11232_p9, %p11229_p8 }
  0x1a   :  { %11237 = shalt.err (!%p11234_p10)
}
  0x1b   :  { %s11238_s23 = scalar_lea.vmem %s59_s27, 112  ;;  %s11242_s24 = scalar_lea.vmem %s59_s27, 128 }
  0x1c   :  { %p11239_p11 = scmp.ne.s32.totalorder %s59_s27, %s11238_s23  ;;  %p11243_p12 = scmp.lt.s32.totalorder %s59_s27, %s59_s27 }
  0x1d   :  { %p11244_p13 = scmp.lt.s32.totalorder %s11242_s24, %s11238_s23 }
  0x1f   :  { %p11245_p0 = por %p11244_p13, %p11243_p12 }
  0x21   :  { %p11246_p1 = pnand %p11245_p0, %p11239_p11 }
  0x23   :  { %11249 = shalt.err (!%p11246_p1)
}
  0x24   :  { %61 = dma.hbm_to_vmem [thread:$0]  %s11755_s4, 112, %s59_s27, [#allocation8]  }
  0x25   :  { %s11348_s26 = smov [#allocation2]   ;;  %s11250_s8 = scalar_lea.hbm %s11752_s1, 57344 }
  0x26   :  { %s23_s28 = sshll.u32 %s11348_s26, 4  ;;  %p11251_p2 = scmp.ne.s32.totalorder %s11752_s1, %s11250_s8  ;;  %s24_s28 = int_to_ptr.vmem [resolvable:$true] %s23_s28 }
  0x27   :  { %p11254_p3 = scmp.lt.u32.totalorder %s11250_s8, %s11752_s1 }
  0x29   :  { %p11256_p4 = pnand %p11254_p3, %p11251_p2 }
  0x2b   :  { %11259 = shalt.err (!%p11256_p4)
}
  0x2c   :  { %s11260_s13 = scalar_lea.vmem %s24_s28, 57344  ;;  %p11265_p6 = scmp.lt.s32.totalorder %s24_s28, %s24_s28 }
  0x2d   :  { %p11261_p5 = scmp.ne.s32.totalorder %s24_s28, %s11260_s13  ;;  %p11266_p7 = scmp.lt.s32.totalorder %s11260_s13, %s11260_s13 }
  0x2f   :  { %p11267_p8 = por %p11266_p7, %p11265_p6 }
  0x31   :  { %p11268_p9 = pnand %p11267_p8, %p11261_p5 }
  0x33   :  { %11271 = shalt.err (!%p11268_p9)
}
  0x34   :  { %s11349_s4 = smov 448   ;;  %s11350_s27 = smov 28  }
  0x35   :  { %29 = dma.hbm_to_vmem [thread:$0]  %s11752_s1, 57344, %s24_s28, [#allocation3], %s11349_s4, %s11349_s4, %s11350_s27  }
  0x36   :  { %s11351_s16 = smov [#allocation6]   ;;  %s11352_s18 = smov [#allocation9]  }
  0x37   :  { %s45_s17 = sshll.u32 %s11351_s16, 4  ;;  %s67_s19 = sshll.u32 %s11352_s18, 4  ;;  %s46_s17 = int_to_ptr.vmem [resolvable:$true] %s45_s17  ;;  %s68_s19 = int_to_ptr.vmem [resolvable:$true] %s67_s19 }
  0x38   :  { %s11272_s22 = scalar_lea.hbm %s11754_s3, 50176 }
  0x39   :  { %p11273_p10 = scmp.ne.s32.totalorder %s11754_s3, %s11272_s22  ;;  %p11276_p11 = scmp.lt.u32.totalorder %s11272_s22, %s11754_s3 }
  0x3b   :  { %p11278_p12 = pnand %p11276_p11, %p11273_p10 }
  0x3d   :  { %11281 = shalt.err (!%p11278_p12)
}
  0x3e   :  { %s11282_s1 = scalar_lea.vmem %s46_s17, 50176  ;;  %p11287_p0 = scmp.lt.s32.totalorder %s46_s17, %s46_s17 }
  0x3f   :  { %p11283_p13 = scmp.ne.s32.totalorder %s46_s17, %s11282_s1  ;;  %p11288_p1 = scmp.lt.s32.totalorder %s11282_s1, %s11282_s1 }
  0x41   :  { %p11289_p2 = por %p11288_p1, %p11287_p0 }
  0x43   :  { %p11290_p3 = pnand %p11289_p2, %p11283_p13 }
  0x45   :  { %11293 = shalt.err (!%p11290_p3)
}
  0x46   :  { %51 = dma.hbm_to_vmem [thread:$0]  %s11754_s3, 50176, %s46_s17, [#allocation5], %s11349_s4, %s11349_s4, %s11350_s27  }
  0x47   :  { %s11294_s8 = scalar_lea.hbm %s11756_s5, 21504 }
  0x48   :  { %p11295_p4 = scmp.ne.s32.totalorder %s11756_s5, %s11294_s8  ;;  %p11298_p5 = scmp.lt.u32.totalorder %s11294_s8, %s11756_s5 }
  0x4a   :  { %p11300_p6 = pnand %p11298_p5, %p11295_p4 }
  0x4c   :  { %11303 = shalt.err (!%p11300_p6)
}
  0x4d   :  { %s11304_s13 = scalar_lea.vmem %s68_s19, 21504  ;;  %p11309_p8 = scmp.lt.s32.totalorder %s68_s19, %s68_s19 }
  0x4e   :  { %p11305_p7 = scmp.ne.s32.totalorder %s68_s19, %s11304_s13  ;;  %p11310_p9 = scmp.lt.s32.totalorder %s11304_s13, %s11304_s13 }
  0x50   :  { %p11311_p10 = por %p11310_p9, %p11309_p8 }
  0x52   :  { %p11312_p11 = pnand %p11311_p10, %p11305_p7 }
  0x54   :  { %11315 = shalt.err (!%p11312_p11)
}
  0x55   :  { %s11353_s3 = smov 192   ;;  %s11354_s4 = smov 12  }
  0x56   :  { %73 = dma.hbm_to_vmem [thread:$0]  %s11756_s5, 21504, %s68_s19, [#allocation8], %s11353_s3, %s11353_s3, %s11354_s4  }
  0x57   :  { %s11355_s15 = smov [#allocation10]   ;;  %s11316_s20 = scalar_lea.hbm %s11757_s6, 48 }
  0x58   :  { %s80_s16 = sshll.u32 %s11355_s15, 4  ;;  %p11317_p12 = scmp.ne.s32.totalorder %s11757_s6, %s11316_s20  ;;  %s81_s16 = int_to_ptr.vmem [resolvable:$true] %s80_s16 }
  0x59   :  { %p11320_p13 = scmp.lt.u32.totalorder %s11316_s20, %s11757_s6 }
  0x5b   :  { %p11322_p0 = pnand %p11320_p13, %p11317_p12 }
  0x5d   :  { %11325 = shalt.err (!%p11322_p0)
}
  0x5e   :  { %s11326_s2 = scalar_lea.vmem %s81_s16, 48  ;;  %s11330_s5 = scalar_lea.vmem %s81_s16, 64 }
  0x5f   :  { %p11327_p1 = scmp.ne.s32.totalorder %s81_s16, %s11326_s2  ;;  %p11331_p2 = scmp.lt.s32.totalorder %s81_s16, %s81_s16 }
  0x60   :  { %p11332_p3 = scmp.lt.s32.totalorder %s11330_s5, %s11326_s2 }
  0x62   :  { %p11333_p4 = por %p11332_p3, %p11331_p2 }
  0x64   :  { %p11334_p5 = pnand %p11333_p4, %p11327_p1 }
  0x66   :  { %11337 = shalt.err (!%p11334_p5)
}
  0x67   :  { %83 = dma.hbm_to_vmem [thread:$0]  %s11757_s6, 48, %s81_s16, [#allocation11]  }
  0x68   :  { %11338 = dma.done.wait [#allocation3], 57344  }
  0x69   :  { %11339 = vsyncadd [#allocation3], 4294909952 }
  0x6a   :  { %11340 = dma.done.wait [#allocation5], 50288  }
  0x6b   :  { %11341 = vsyncadd [#allocation5], 4294917008 }
  0x6c   :  { %11342 = dma.done.wait [#allocation8], 21616  }
  0x6d   :  { %11343 = vsyncadd [#allocation8], 4294945680 }
  0x6e   :  { %11344 = dma.done.wait [#allocation11], 48  }
  0x6f   :  { %11345 = vsyncadd [#allocation11], 4294967248  ;;  %v9781_v0 = vld [vmem:[#allocation2 + $0x4] ss:$28 sps:$4 sm:$0xff]   ;;  %v9784_v2 = vld [vmem:[#allocation2 + $0xc] ss:$28 sps:$4 sm:$0xff]  }
  0x70   :  { %v9783_v1 = vld [vmem:[#allocation2] ss:$28 sps:$4 sm:$0xff]   ;;  %2980 = vmatprep.subr.bf16.mxu0 %v9781_v0  ;;  %v9786_v3 = vld [vmem:[#allocation2 + $0x8] ss:$28 sps:$4 sm:$0xff]   ;;  %v9789_v5 = vld [vmem:[#allocation2 + $0x38] ss:$28 sps:$4 sm:$0xff]   ;;  %3152 = vmatprep.subr.bf16.mxu1 %v9784_v2 }
  0x71   :  { %2981 = vmatpush1.bf16.msra.mxu0 %v9783_v1  ;;  %v9787_v4 = vld [vmem:[#allocation2 + $0x3c] ss:$28 sps:$4 sm:$0xff]   ;;  %v9790_v6 = vld [vmem:[#allocation2 + $0x44] ss:$28 sps:$4 sm:$0xff]   ;;  %3153 = vmatpush1.bf16.msra.mxu1 %v9786_v3  ;;  %v9793_v8 = vld [vmem:[#allocation2 + $0x74] ss:$28 sps:$4 sm:$0xff]  }
  0x72   :  { %2982 = vmatprep.subr.bf16.mxu0 %v9787_v4  ;;  %v9792_v7 = vld [vmem:[#allocation2 + $0x40] ss:$28 sps:$4 sm:$0xff]   ;;  %3154 = vmatprep.subr.bf16.mxu1 %v9790_v6  ;;  %v9795_v9 = vld [vmem:[#allocation2 + $0x70] ss:$28 sps:$4 sm:$0xff]   ;;  %v9798_v12 = vld [vmem:[#allocation2 + $0x78] ss:$28 sps:$4 sm:$0xff]  }
  0x73   :  { %v9796_v10 = vld [vmem:[#allocation2 + $0x7c] ss:$28 sps:$4 sm:$0xff]   ;;  %v9799_v11 = vld [vmem:[#allocation2 + $0xac] ss:$28 sps:$4 sm:$0xff]   ;;  %v9802_v13 = vld [vmem:[#allocation2 + $0xb4] ss:$28 sps:$4 sm:$0xff]  }
  0x74   :  { %v9801_v14 = vld [vmem:[#allocation2 + $0xa8] ss:$28 sps:$4 sm:$0xff]   ;;  %v9804_v16 = vld [vmem:[#allocation2 + $0xb0] ss:$28 sps:$4 sm:$0xff]   ;;  %v9807_v18 = vld [vmem:[#allocation2 + $0xe0] ss:$28 sps:$4 sm:$0xff]  }
  0x75   :  { %2983 = vmatpush1.bf16.msra.mxu0 %v9789_v5  ;;  %3155 = vmatpush1.bf16.msra.mxu1 %v9792_v7  ;;  %v9805_v15 = vld [vmem:[#allocation2 + $0xe4] ss:$28 sps:$4 sm:$0xff]   ;;  %v9808_v17 = vld [vmem:[#allocation2 + $0xec] ss:$28 sps:$4 sm:$0xff]   ;;  %v9811_v19 = vld [vmem:[#allocation2 + $0x11c] ss:$28 sps:$4 sm:$0xff]  }
  0x76   :  { %2984 = vmatprep.subr.bf16.mxu0 %v9793_v8  ;;  %3156 = vmatprep.subr.bf16.mxu1 %v9796_v10  ;;  %v9810_v20 = vld [vmem:[#allocation2 + $0xe8] ss:$28 sps:$4 sm:$0xff]   ;;  %v9813_v22 = vld [vmem:[#allocation2 + $0x118] ss:$28 sps:$4 sm:$0xff]   ;;  %v9816_v24 = vld [vmem:[#allocation2 + $0x120] ss:$28 sps:$4 sm:$0xff]  }
  0x77   :  { %v9814_v21 = vld [vmem:[#allocation2 + $0x124] ss:$28 sps:$4 sm:$0xff]   ;;  %v9817_v23 = vld [vmem:[#allocation2 + $0x154] ss:$28 sps:$4 sm:$0xff]   ;;  %v9820_v25 = vld [vmem:[#allocation2 + $0x15c] ss:$28 sps:$4 sm:$0xff]  }
  0x78   :  { %v9819_v26 = vld [vmem:[#allocation2 + $0x150] ss:$28 sps:$4 sm:$0xff]   ;;  %v9822_v28 = vld [vmem:[#allocation2 + $0x158] ss:$28 sps:$4 sm:$0xff]   ;;  %v9825_v30 = vld [vmem:[#allocation2 + $0x188] ss:$28 sps:$4 sm:$0xff]  }
  0x79   :  { %2985 = vmatpush1.bf16.msra.mxu0 %v9795_v9  ;;  %3157 = vmatpush1.bf16.msra.mxu1 %v9798_v12  ;;  %v9823_v27 = vld [vmem:[#allocation2 + $0x18c] ss:$28 sps:$4 sm:$0xff]   ;;  %v9826_v29 = vld [vmem:[#allocation2 + $0x194] ss:$28 sps:$4 sm:$0xff]   ;;  %v9829_v31 = vld [vmem:[#allocation2 + $0x1c4] ss:$28 sps:$4 sm:$0xff]  }
  0x7a   :  { %2986 = vmatprep.subr.bf16.mxu0 %v9799_v11  ;;  %3158 = vmatprep.subr.bf16.mxu1 %v9802_v13  ;;  %v9828_v32 = vld [vmem:[#allocation2 + $0x190] ss:$28 sps:$4 sm:$0xff]   ;;  %v9831_v34 = vld [vmem:[#allocation2 + $0x1c0] ss:$28 sps:$4 sm:$0xff]   ;;  %v9834_v36 = vld [vmem:[#allocation2 + $0x1c8] ss:$28 sps:$4 sm:$0xff]  }
  0x7b   :  { %v9832_v33 = vld [vmem:[#allocation2 + $0x1cc] ss:$28 sps:$4 sm:$0xff]   ;;  %v9835_v35 = vld [vmem:[#allocation2 + $0x1fc] ss:$28 sps:$4 sm:$0xff]   ;;  %v9838_v37 = vld [vmem:[#allocation2 + $0x204] ss:$28 sps:$4 sm:$0xff]  }
  0x7c   :  { %v9837_v38 = vld [vmem:[#allocation2 + $0x1f8] ss:$28 sps:$4 sm:$0xff]   ;;  %v9840_v40 = vld [vmem:[#allocation2 + $0x200] ss:$28 sps:$4 sm:$0xff]   ;;  %v9843_v42 = vld [vmem:[#allocation2 + $0x230] ss:$28 sps:$4 sm:$0xff]  }
  0x7d   :  { %2987 = vmatpush1.bf16.msra.mxu0 %v9801_v14  ;;  %3159 = vmatpush1.bf16.msra.mxu1 %v9804_v16  ;;  %v9841_v39 = vld [vmem:[#allocation2 + $0x234] ss:$28 sps:$4 sm:$0xff]   ;;  %v9844_v41 = vld [vmem:[#allocation2 + $0x23c] ss:$28 sps:$4 sm:$0xff]   ;;  %v9847_v43 = vld [vmem:[#allocation2 + $0x26c] ss:$28 sps:$4 sm:$0xff]  }
  0x7e   :  { %2988 = vmatprep.subr.bf16.mxu0 %v9805_v15  ;;  %3160 = vmatprep.subr.bf16.mxu1 %v9808_v17  ;;  %v9846_v44 = vld [vmem:[#allocation2 + $0x238] ss:$28 sps:$4 sm:$0xff]   ;;  %v9849_v45 = vld [vmem:[#allocation2 + $0x268] ss:$28 sps:$4 sm:$0xff]   ;;  %v9852_v51 = vld [vmem:[#allocation2 + $0x270] ss:$28 sps:$4 sm:$0xff]  }
  0x7f   :  { %v9850_v46 = vld [vmem:[#allocation2 + $0x274] ss:$28 sps:$4 sm:$0xff]   ;;  %v104_v47 = vld [vmem:[%s11751_s0 + $0x8] sm:$0xff]  ;;  %v9853_v49 = vld [vmem:[#allocation2 + $0x2a4] ss:$28 sps:$4 sm:$0xff]   ;;  %vm11358_vm0 = vmmov 0  }
  0x80   :  { %v112_v48 = vld [vmem:[%s11751_s0 + $0x48] sm:$0xff]  ;;  %v9855_v53 = vld [vmem:[#allocation2 + $0x2a0] ss:$28 sps:$4 sm:$0xff]   ;;  %v9861_v57 = vld [vmem:[#allocation2 + $0x2d8] ss:$28 sps:$4 sm:$0xff]  }
  0x81   :  { %2989 = vmatpush1.bf16.msra.mxu0 %v9807_v18  ;;  %3161 = vmatpush1.bf16.msra.mxu1 %v9810_v20  ;;  %v11477_v50 = vpack.c.bf16 %v112_v48, %v104_v47  ;;  %v9856_v52 = vld [vmem:[#allocation2 + $0x2ac] ss:$28 sps:$4 sm:$0xff]   ;;  %v9859_v54 = vld [vmem:[#allocation2 + $0x2dc] ss:$28 sps:$4 sm:$0xff]   ;;  %v9862_v56 = vld [vmem:[#allocation2 + $0x2e4] ss:$28 sps:$4 sm:$0xff]  }
  0x82   :  { %2990 = vmatprep.subr.bf16.mxu0 %v9811_v19  ;;  %3162 = vmatprep.subr.bf16.mxu1 %v9814_v21  ;;  %v9858_v55 = vld [vmem:[#allocation2 + $0x2a8] ss:$28 sps:$4 sm:$0xff]   ;;  %v9865_v58 = vld [vmem:[#allocation2 + $0x314] ss:$28 sps:$4 sm:$0xff]   ;;  %v9864_v59 = vld [vmem:[#allocation2 + $0x2e0] ss:$28 sps:$4 sm:$0xff]  }
  0x83   :  { %3012 = vmatprep.mubr.bf16.mxu0 %v11477_v50  ;;  %3184 = vmatprep.mubr.bf16.mxu1 %v11477_v50  ;;  %v9868_v60 = vld [vmem:[#allocation2 + $0x31c] ss:$28 sps:$4 sm:$0xff]   ;;  %v9867_v61 = vld [vmem:[#allocation2 + $0x310] ss:$28 sps:$4 sm:$0xff]   ;;  %v9873_v0 = vld [vmem:[#allocation2 + $0x348] ss:$28 sps:$4 sm:$0xff]  }
  0x84   :  { %v9871_v62 = vld [vmem:[#allocation2 + $0x34c] ss:$28 sps:$4 sm:$0xff]   ;;  %v9870_v63 = vld [vmem:[#allocation2 + $0x318] ss:$28 sps:$4 sm:$0xff]   ;;  %v103_v2 = vld [vmem:[%s11751_s0] sm:$0xff] }
  0x85   :  { %2991 = vmatpush1.bf16.msra.mxu0 %v9813_v22  ;;  %3163 = vmatpush1.bf16.msra.mxu1 %v9816_v24  ;;  %v9874_v1 = vld [vmem:[#allocation2 + $0x354] ss:$28 sps:$4 sm:$0xff]   ;;  %v111_v3 = vld [vmem:[%s11751_s0 + $0x40] sm:$0xff]  ;;  %v9882_v7 = vld [vmem:[#allocation2 + $0x38c] ss:$28 sps:$4 sm:$0xff]  }
  0x86   :  { %2992 = vmatprep.subr.bf16.mxu0 %v9817_v23  ;;  %3164 = vmatprep.subr.bf16.mxu1 %v9820_v25  ;;  %v9879_v4 = vld [vmem:[#allocation2 + $0x384] ss:$28 sps:$4 sm:$0xff]   ;;  %v9876_v5 = vld [vmem:[#allocation2 + $0x350] ss:$28 sps:$4 sm:$0xff]   ;;  %v11487_v6 = vpack.c.bf16 %v111_v3, %v103_v2  ;;  %v9885_v9 = vld [vmem:[#allocation2 + $0x3bc] ss:$28 sps:$4 sm:$0xff]  }
  0x87   :  { %v9877_v8 = vld [vmem:[#allocation2 + $0x380] ss:$28 sps:$4 sm:$0xff]   ;;  %v9880_v10 = vld [vmem:[#allocation2 + $0x388] ss:$28 sps:$4 sm:$0xff]   ;;  %v9883_v12 = vld [vmem:[#allocation2 + $0x3b8] ss:$28 sps:$4 sm:$0xff]  }
  0x88   :  { %v9888_v11 = vld [vmem:[#allocation2 + $0x3c4] ss:$28 sps:$4 sm:$0xff]   ;;  %v9891_v13 = vld [vmem:[#allocation2 + $0x3f4] ss:$28 sps:$4 sm:$0xff]   ;;  %v9894_v15 = vld [vmem:[#allocation2 + $0x3fc] ss:$28 sps:$4 sm:$0xff]  }
  0x89   :  { %2993 = vmatpush1.bf16.msra.mxu0 %v9819_v26  ;;  %3165 = vmatpush1.bf16.msra.mxu1 %v9822_v28  ;;  %v9886_v14 = vld [vmem:[#allocation2 + $0x3c0] ss:$28 sps:$4 sm:$0xff]   ;;  %v9889_v16 = vld [vmem:[#allocation2 + $0x3f0] ss:$28 sps:$4 sm:$0xff]   ;;  %v9892_v18 = vld [vmem:[#allocation2 + $0x3f8] ss:$28 sps:$4 sm:$0xff]  }
  0x8a   :  { %2994 = vmatprep.subr.bf16.mxu0 %v9823_v27  ;;  %3166 = vmatprep.subr.bf16.mxu1 %v9826_v29  ;;  %v9897_v17 = vld [vmem:[#allocation2 + $0x42c] ss:$28 sps:$4 sm:$0xff]   ;;  %v9900_v19 = vld [vmem:[#allocation2 + $0x434] ss:$28 sps:$4 sm:$0xff]   ;;  %v9903_v21 = vld [vmem:[#allocation2 + $0x464] ss:$28 sps:$4 sm:$0xff]  }
  0x8b   :  { %v9895_v20 = vld [vmem:[#allocation2 + $0x428] ss:$28 sps:$4 sm:$0xff]   ;;  %v9898_v22 = vld [vmem:[#allocation2 + $0x430] ss:$28 sps:$4 sm:$0xff]   ;;  %v9901_v24 = vld [vmem:[#allocation2 + $0x460] ss:$28 sps:$4 sm:$0xff]  }
  0x8c   :  { %v9906_v23 = vld [vmem:[#allocation2 + $0x46c] ss:$28 sps:$4 sm:$0xff]   ;;  %v9909_v25 = vld [vmem:[#allocation2 + $0x49c] ss:$28 sps:$4 sm:$0xff]   ;;  %v9912_v27 = vld [vmem:[#allocation2 + $0x4a4] ss:$28 sps:$4 sm:$0xff]  }
  0x8d   :  { %2995 = vmatpush1.bf16.msra.mxu0 %v9825_v30  ;;  %3167 = vmatpush1.bf16.msra.mxu1 %v9828_v32  ;;  %v9904_v26 = vld [vmem:[#allocation2 + $0x468] ss:$28 sps:$4 sm:$0xff]   ;;  %v9907_v28 = vld [vmem:[#allocation2 + $0x498] ss:$28 sps:$4 sm:$0xff]   ;;  %v9910_v30 = vld [vmem:[#allocation2 + $0x4a0] ss:$28 sps:$4 sm:$0xff]  }
  0x8e   :  { %2996 = vmatprep.subr.bf16.mxu0 %v9829_v31  ;;  %3168 = vmatprep.subr.bf16.mxu1 %v9832_v33  ;;  %v9915_v29 = vld [vmem:[#allocation2 + $0x4d4] ss:$28 sps:$4 sm:$0xff]   ;;  %v9918_v32 = vld [vmem:[#allocation2 + $0x4dc] ss:$28 sps:$4 sm:$0xff]  }
  0x8f   :  { %v9913_v31 = vld [vmem:[#allocation2 + $0x4d0] ss:$28 sps:$4 sm:$0xff]   ;;  %v106_v33 = vld [vmem:[%s11751_s0 + $0x18] sm:$0xff] }
  0x90   :  { %v9931_v47 = vld [vmem:[#allocation2 + $0x578] ss:$28 sps:$4 sm:$0xff]   ;;  %v9958_v2 = vld [vmem:[#allocation2 + $0x660] ss:$28 sps:$4 sm:$0xff]  }
  0x91   :  { %2997 = vmatpush1.bf16.msra.mxu0 %v9831_v34  ;;  %3169 = vmatpush1.bf16.msra.mxu1 %v9834_v36  ;;  %v114_v34 = vld [vmem:[%s11751_s0 + $0x58] sm:$0xff]  ;;  %v9939_v48 = vld [vmem:[#allocation2 + $0x5b4] ss:$28 sps:$4 sm:$0xff]  }
  0x92   :  { %2998 = vmatprep.subr.bf16.mxu0 %v9835_v35  ;;  %3170 = vmatprep.subr.bf16.mxu1 %v9838_v37  ;;  %v9921_v35 = vld [vmem:[#allocation2 + $0x50c] ss:$28 sps:$4 sm:$0xff]   ;;  %v11497_v36 = vpack.c.bf16 %v114_v34, %v106_v33  ;;  %v9916_v37 = vld [vmem:[#allocation2 + $0x4d8] ss:$28 sps:$4 sm:$0xff]  }
  0x93   :  { %v9966_v3 = vld [vmem:[#allocation2 + $0x69c] ss:$28 sps:$4 sm:$0xff]   ;;  %v9994_v33 = vld [vmem:[#allocation2 + $0x7b0] ss:$28 sps:$4 sm:$0xff]  }
  0x94   :  { %v10002_v34 = vld [vmem:[#allocation2 + $0x7ec] ss:$28 sps:$4 sm:$0xff]  }
  0x95   :  { %2999 = vmatpush1.bf16.msra.mxu0 %v9837_v38  ;;  %3171 = vmatpush1.bf16.msra.mxu1 %v9840_v40  ;;  %v9924_v38 = vld [vmem:[#allocation2 + $0x514] ss:$28 sps:$4 sm:$0xff]   ;;  %v9927_v40 = vld [vmem:[#allocation2 + $0x544] ss:$28 sps:$4 sm:$0xff]  }
  0x96   :  { %3000 = vmatprep.subr.bf16.mxu0 %v9841_v39  ;;  %3172 = vmatprep.subr.bf16.mxu1 %v9844_v41  ;;  %v9919_v39 = vld [vmem:[#allocation2 + $0x508] ss:$28 sps:$4 sm:$0xff]   ;;  %v9922_v41 = vld [vmem:[#allocation2 + $0x510] ss:$28 sps:$4 sm:$0xff]  }
  0x99   :  { %3001 = vmatpush1.bf16.msra.mxu0 %v9843_v42  ;;  %3173 = vmatpush1.bf16.msra.mxu1 %v9846_v44  ;;  %v9930_v42 = vld [vmem:[#allocation2 + $0x54c] ss:$28 sps:$4 sm:$0xff]   ;;  %v9933_v44 = vld [vmem:[#allocation2 + $0x57c] ss:$28 sps:$4 sm:$0xff]  }
  0x9a   :  { %3002 = vmatprep.subr.bf16.mxu0 %v9847_v43  ;;  %3174 = vmatprep.subr.bf16.mxu1 %v9850_v46  ;;  %v9925_v43 = vld [vmem:[#allocation2 + $0x540] ss:$28 sps:$4 sm:$0xff]  }
  0x9b   :  { %v9936_v46 = vld [vmem:[#allocation2 + $0x584] ss:$28 sps:$4 sm:$0xff]  }
  0x9d   :  { %3003 = vmatpush1.bf16.msra.mxu0 %v9849_v45  ;;  %3175 = vmatpush1.bf16.msra.mxu1 %v9852_v51  ;;  %v9928_v45 = vld [vmem:[#allocation2 + $0x548] ss:$28 sps:$4 sm:$0xff]   ;;  %v9942_v51 = vld [vmem:[#allocation2 + $0x5bc] ss:$28 sps:$4 sm:$0xff]  }
  0x9e   :  { %3004 = vmatprep.subr.bf16.mxu0 %v9853_v49  ;;  %3176 = vmatprep.subr.bf16.mxu1 %v9856_v52  ;;  %v9934_v49 = vld [vmem:[#allocation2 + $0x580] ss:$28 sps:$4 sm:$0xff]   ;;  %v9937_v52 = vld [vmem:[#allocation2 + $0x5b0] ss:$28 sps:$4 sm:$0xff]  }
  0xa1   :  { %3005 = vmatpush1.bf16.msra.mxu0 %v9855_v53  ;;  %3177 = vmatpush1.bf16.msra.mxu1 %v9858_v55  ;;  %v9945_v53 = vld [vmem:[#allocation2 + $0x5ec] ss:$28 sps:$4 sm:$0xff]   ;;  %v9948_v55 = vld [vmem:[#allocation2 + $0x5f4] ss:$28 sps:$4 sm:$0xff]  }
  0xa2   :  { %3006 = vmatprep.subr.bf16.mxu0 %v9859_v54  ;;  %3178 = vmatprep.subr.bf16.mxu1 %v9862_v56  ;;  %v9940_v54 = vld [vmem:[#allocation2 + $0x5b8] ss:$28 sps:$4 sm:$0xff]   ;;  %v9943_v56 = vld [vmem:[#allocation2 + $0x5e8] ss:$28 sps:$4 sm:$0xff]  }
  0xa5   :  { %3007 = vmatpush1.bf16.msra.mxu0 %v9861_v57  ;;  %3179 = vmatpush1.bf16.msra.mxu1 %v9864_v59  ;;  %v9951_v57 = vld [vmem:[#allocation2 + $0x624] ss:$28 sps:$4 sm:$0xff]   ;;  %v9954_v59 = vld [vmem:[#allocation2 + $0x62c] ss:$28 sps:$4 sm:$0xff]  }
  0xa6   :  { %3008 = vmatprep.subr.bf16.mxu0 %v9865_v58  ;;  %3180 = vmatprep.subr.bf16.mxu1 %v9868_v60  ;;  %v9946_v58 = vld [vmem:[#allocation2 + $0x5f0] ss:$28 sps:$4 sm:$0xff]   ;;  %v9949_v60 = vld [vmem:[#allocation2 + $0x620] ss:$28 sps:$4 sm:$0xff]  }
  0xa9   :  { %3009 = vmatpush1.bf16.msra.mxu0 %v9867_v61  ;;  %3181 = vmatpush1.bf16.msra.mxu1 %v9870_v63  ;;  %v9957_v61 = vld [vmem:[#allocation2 + $0x65c] ss:$28 sps:$4 sm:$0xff]   ;;  %v9960_v63 = vld [vmem:[#allocation2 + $0x664] ss:$28 sps:$4 sm:$0xff]  }
  0xaa   :  { %3010 = vmatprep.subr.bf16.mxu0 %v9871_v62  ;;  %3182 = vmatprep.subr.bf16.mxu1 %v9874_v1  ;;  %v9952_v62 = vld [vmem:[#allocation2 + $0x628] ss:$28 sps:$4 sm:$0xff]   ;;  %v9963_v1 = vld [vmem:[#allocation2 + $0x694] ss:$28 sps:$4 sm:$0xff]  }
  0xad   :  { %3011 = vmatpush1.bf16.msra.mxu0 %v9873_v0  ;;  %3183 = vmatpush1.bf16.msra.mxu1 %v9876_v5  ;;  %v9955_v0 = vld [vmem:[#allocation2 + $0x658] ss:$28 sps:$4 sm:$0xff]   ;;  %v9969_v5 = vld [vmem:[#allocation2 + $0x6cc] ss:$28 sps:$4 sm:$0xff]  }
  0xae   :  { %3023 = vmatprep.subr.bf16.mxu0 %v9879_v4  ;;  %3195 = vmatprep.subr.bf16.mxu1 %v9882_v7  ;;  %v9961_v4 = vld [vmem:[#allocation2 + $0x690] ss:$28 sps:$4 sm:$0xff]   ;;  %v9964_v7 = vld [vmem:[#allocation2 + $0x698] ss:$28 sps:$4 sm:$0xff]  }
  0xb0   :  { %3013 = vmatmul.mubr.bf16.vlgmr.msra.gmra.mrb[0].mxu0 %v11487_v6  ;;  %3185 = vmatmul.mubr.bf16.vlgmr.msra.gmra.mrb[0].mxu1 %v11487_v6 }
  0xb1   :  { %3024 = vmatpush1.bf16.msra.mxu0 %v9877_v8  ;;  %3196 = vmatpush1.bf16.msra.mxu1 %v9880_v10  ;;  %v9967_v8 = vld [vmem:[#allocation2 + $0x6c8] ss:$28 sps:$4 sm:$0xff]   ;;  %v105_v10 = vld [vmem:[%s11751_s0 + $0x10] sm:$0xff] }
  0xb2   :  { %3025 = vmatprep.subr.bf16.mxu0 %v9885_v9  ;;  %3197 = vmatprep.subr.bf16.mxu1 %v9888_v11  ;;  %v9972_v9 = vld [vmem:[#allocation2 + $0x6d4] ss:$28 sps:$4 sm:$0xff]  }
  0xb3   :  { %3055 = vmatprep.mubr.bf16.mxu0 %v11497_v36  ;;  %3227 = vmatprep.mubr.bf16.mxu1 %v11497_v36  ;;  %v113_v11 = vld [vmem:[%s11751_s0 + $0x50] sm:$0xff] }
  0xb5   :  { %3026 = vmatpush1.bf16.msra.mxu0 %v9883_v12  ;;  %3198 = vmatpush1.bf16.msra.mxu1 %v9886_v14  ;;  %v9975_v12 = vld [vmem:[#allocation2 + $0x704] ss:$28 sps:$4 sm:$0xff]   ;;  %v11507_v14 = vpack.c.bf16 %v113_v11, %v105_v10  ;;  %v10051_v10 = vld [vmem:[#allocation2 + $0x9d8] ss:$28 sps:$4 sm:$0xff]  }
  0xb6   :  { %3027 = vmatprep.subr.bf16.mxu0 %v9891_v13  ;;  %3199 = vmatprep.subr.bf16.mxu1 %v9894_v15  ;;  %v9970_v13 = vld [vmem:[#allocation2 + $0x6d0] ss:$28 sps:$4 sm:$0xff]  }
  0xb7   :  { %v9978_v15 = vld [vmem:[#allocation2 + $0x70c] ss:$28 sps:$4 sm:$0xff]   ;;  %v10059_v11 = vld [vmem:[#allocation2 + $0xa14] ss:$28 sps:$4 sm:$0xff]  }
  0xb9   :  { %3028 = vmatpush1.bf16.msra.mxu0 %v9889_v16  ;;  %3200 = vmatpush1.bf16.msra.mxu1 %v9892_v18  ;;  %v9973_v16 = vld [vmem:[#allocation2 + $0x700] ss:$28 sps:$4 sm:$0xff]   ;;  %v9976_v18 = vld [vmem:[#allocation2 + $0x708] ss:$28 sps:$4 sm:$0xff]  }
  0xba   :  { %3029 = vmatprep.subr.bf16.mxu0 %v9897_v17  ;;  %3201 = vmatprep.subr.bf16.mxu1 %v9900_v19  ;;  %v9981_v17 = vld [vmem:[#allocation2 + $0x73c] ss:$28 sps:$4 sm:$0xff]  }
  0xbb   :  { %v9979_v19 = vld [vmem:[#allocation2 + $0x738] ss:$28 sps:$4 sm:$0xff]  }
  0xbd   :  { %3030 = vmatpush1.bf16.msra.mxu0 %v9895_v20  ;;  %3202 = vmatpush1.bf16.msra.mxu1 %v9898_v22  ;;  %v9984_v20 = vld [vmem:[#allocation2 + $0x744] ss:$28 sps:$4 sm:$0xff]   ;;  %v116_v22 = vld [vmem:[%s11751_s0 + $0x68] sm:$0xff] }
  0xbe   :  { %3031 = vmatprep.subr.bf16.mxu0 %v9903_v21  ;;  %3203 = vmatprep.subr.bf16.mxu1 %v9906_v23  ;;  %v108_v21 = vld [vmem:[%s11751_s0 + $0x28] sm:$0xff]  ;;  %v9987_v23 = vld [vmem:[#allocation2 + $0x774] ss:$28 sps:$4 sm:$0xff]  }
  0xc1   :  { %3032 = vmatpush1.bf16.msra.mxu0 %v9901_v24  ;;  %3204 = vmatpush1.bf16.msra.mxu1 %v9904_v26  ;;  %v11517_v24 = vpack.c.bf16 %v116_v22, %v108_v21  ;;  %v9990_v26 = vld [vmem:[#allocation2 + $0x77c] ss:$28 sps:$4 sm:$0xff]   ;;  %v107_v21 = vld [vmem:[%s11751_s0 + $0x20] sm:$0xff] }
  0xc2   :  { %3033 = vmatprep.subr.bf16.mxu0 %v9909_v25  ;;  %3205 = vmatprep.subr.bf16.mxu1 %v9912_v27  ;;  %v9982_v25 = vld [vmem:[#allocation2 + $0x740] ss:$28 sps:$4 sm:$0xff]   ;;  %v9985_v27 = vld [vmem:[#allocation2 + $0x770] ss:$28 sps:$4 sm:$0xff]  }
  0xc3   :  { %v115_v22 = vld [vmem:[%s11751_s0 + $0x60] sm:$0xff] }
  0xc5   :  { %3034 = vmatpush1.bf16.msra.mxu0 %v9907_v28  ;;  %3206 = vmatpush1.bf16.msra.mxu1 %v9910_v30  ;;  %v9993_v28 = vld [vmem:[#allocation2 + $0x7ac] ss:$28 sps:$4 sm:$0xff]   ;;  %v9996_v30 = vld [vmem:[#allocation2 + $0x7b4] ss:$28 sps:$4 sm:$0xff]  }
  0xc6   :  { %3035 = vmatprep.subr.bf16.mxu0 %v9915_v29  ;;  %3207 = vmatprep.subr.bf16.mxu1 %v9918_v32  ;;  %v9988_v29 = vld [vmem:[#allocation2 + $0x778] ss:$28 sps:$4 sm:$0xff]   ;;  %v9999_v32 = vld [vmem:[#allocation2 + $0x7e4] ss:$28 sps:$4 sm:$0xff]  }
  0xc9   :  { %3036 = vmatpush1.bf16.msra.mxu0 %v9913_v31  ;;  %3208 = vmatpush1.bf16.msra.mxu1 %v9916_v37  ;;  %v9991_v31 = vld [vmem:[#allocation2 + $0x7a8] ss:$28 sps:$4 sm:$0xff]   ;;  %v10005_v37 = vld [vmem:[#allocation2 + $0x81c] ss:$28 sps:$4 sm:$0xff]  }
  0xca   :  { %3037 = vmatprep.subr.bf16.mxu0 %v9921_v35  ;;  %3209 = vmatprep.subr.bf16.mxu1 %v9924_v38  ;;  %v9997_v35 = vld [vmem:[#allocation2 + $0x7e0] ss:$28 sps:$4 sm:$0xff]   ;;  %v10000_v38 = vld [vmem:[#allocation2 + $0x7e8] ss:$28 sps:$4 sm:$0xff]  }
  0xcd   :  { %3038 = vmatpush1.bf16.msra.mxu0 %v9919_v39  ;;  %3210 = vmatpush1.bf16.msra.mxu1 %v9922_v41  ;;  %v10008_v39 = vld [vmem:[#allocation2 + $0x824] ss:$28 sps:$4 sm:$0xff]   ;;  %v10011_v41 = vld [vmem:[#allocation2 + $0x854] ss:$28 sps:$4 sm:$0xff]  }
  0xce   :  { %3039 = vmatprep.subr.bf16.mxu0 %v9927_v40  ;;  %3211 = vmatprep.subr.bf16.mxu1 %v9930_v42  ;;  %v10003_v40 = vld [vmem:[#allocation2 + $0x818] ss:$28 sps:$4 sm:$0xff]   ;;  %v10006_v42 = vld [vmem:[#allocation2 + $0x820] ss:$28 sps:$4 sm:$0xff]  }
  0xd1   :  { %3040 = vmatpush1.bf16.msra.mxu0 %v9925_v43  ;;  %3212 = vmatpush1.bf16.msra.mxu1 %v9928_v45  ;;  %v10014_v43 = vld [vmem:[#allocation2 + $0x85c] ss:$28 sps:$4 sm:$0xff]   ;;  %v10017_v45 = vld [vmem:[#allocation2 + $0x88c] ss:$28 sps:$4 sm:$0xff]  }
  0xd2   :  { %3041 = vmatprep.subr.bf16.mxu0 %v9933_v44  ;;  %3213 = vmatprep.subr.bf16.mxu1 %v9936_v46  ;;  %v10009_v44 = vld [vmem:[#allocation2 + $0x850] ss:$28 sps:$4 sm:$0xff]   ;;  %v10012_v46 = vld [vmem:[#allocation2 + $0x858] ss:$28 sps:$4 sm:$0xff]  }
  0xd5   :  { %3042 = vmatpush1.bf16.msra.mxu0 %v9931_v47  ;;  %3214 = vmatpush1.bf16.msra.mxu1 %v9934_v49  ;;  %v10020_v47 = vld [vmem:[#allocation2 + $0x894] ss:$28 sps:$4 sm:$0xff]   ;;  %v10023_v49 = vld [vmem:[#allocation2 + $0x8c4] ss:$28 sps:$4 sm:$0xff]  }
  0xd6   :  { %3043 = vmatprep.subr.bf16.mxu0 %v9939_v48  ;;  %3215 = vmatprep.subr.bf16.mxu1 %v9942_v51  ;;  %v10015_v48 = vld [vmem:[#allocation2 + $0x888] ss:$28 sps:$4 sm:$0xff]   ;;  %v10018_v51 = vld [vmem:[#allocation2 + $0x890] ss:$28 sps:$4 sm:$0xff]  }
  0xd9   :  { %3044 = vmatpush1.bf16.msra.mxu0 %v9937_v52  ;;  %3216 = vmatpush1.bf16.msra.mxu1 %v9940_v54  ;;  %v10026_v52 = vld [vmem:[#allocation2 + $0x8cc] ss:$28 sps:$4 sm:$0xff]   ;;  %v10029_v54 = vld [vmem:[#allocation2 + $0x8fc] ss:$28 sps:$4 sm:$0xff]  }
  0xda   :  { %3045 = vmatprep.subr.bf16.mxu0 %v9945_v53  ;;  %3217 = vmatprep.subr.bf16.mxu1 %v9948_v55  ;;  %v10021_v53 = vld [vmem:[#allocation2 + $0x8c0] ss:$28 sps:$4 sm:$0xff]   ;;  %v10024_v55 = vld [vmem:[#allocation2 + $0x8c8] ss:$28 sps:$4 sm:$0xff]  }
  0xdd   :  { %3046 = vmatpush1.bf16.msra.mxu0 %v9943_v56  ;;  %3218 = vmatpush1.bf16.msra.mxu1 %v9946_v58  ;;  %v10032_v56 = vld [vmem:[#allocation2 + $0x904] ss:$28 sps:$4 sm:$0xff]   ;;  %v10035_v58 = vld [vmem:[#allocation2 + $0x934] ss:$28 sps:$4 sm:$0xff]  }
  0xde   :  { %3047 = vmatprep.subr.bf16.mxu0 %v9951_v57  ;;  %3219 = vmatprep.subr.bf16.mxu1 %v9954_v59  ;;  %v10027_v57 = vld [vmem:[#allocation2 + $0x8f8] ss:$28 sps:$4 sm:$0xff]   ;;  %v10030_v59 = vld [vmem:[#allocation2 + $0x900] ss:$28 sps:$4 sm:$0xff]  }
  0xe1   :  { %3048 = vmatpush1.bf16.msra.mxu0 %v9949_v60  ;;  %3220 = vmatpush1.bf16.msra.mxu1 %v9952_v62  ;;  %v10038_v60 = vld [vmem:[#allocation2 + $0x93c] ss:$28 sps:$4 sm:$0xff]   ;;  %v10041_v62 = vld [vmem:[#allocation2 + $0x96c] ss:$28 sps:$4 sm:$0xff]  }
  0xe2   :  { %3049 = vmatprep.subr.bf16.mxu0 %v9957_v61  ;;  %3221 = vmatprep.subr.bf16.mxu1 %v9960_v63  ;;  %v10033_v61 = vld [vmem:[#allocation2 + $0x930] ss:$28 sps:$4 sm:$0xff]   ;;  %v10036_v63 = vld [vmem:[#allocation2 + $0x938] ss:$28 sps:$4 sm:$0xff]  }
  0xe5   :  { %3050 = vmatpush1.bf16.msra.mxu0 %v9955_v0  ;;  %3222 = vmatpush1.bf16.msra.mxu1 %v9958_v2  ;;  %v10044_v0 = vld [vmem:[#allocation2 + $0x974] ss:$28 sps:$4 sm:$0xff]   ;;  %v10047_v2 = vld [vmem:[#allocation2 + $0x9a4] ss:$28 sps:$4 sm:$0xff]  }
  0xe6   :  { %3051 = vmatprep.subr.bf16.mxu0 %v9963_v1  ;;  %3223 = vmatprep.subr.bf16.mxu1 %v9966_v3  ;;  %v10039_v1 = vld [vmem:[#allocation2 + $0x968] ss:$28 sps:$4 sm:$0xff]   ;;  %v10042_v3 = vld [vmem:[#allocation2 + $0x970] ss:$28 sps:$4 sm:$0xff]  }
  0xe9   :  { %3052 = vmatpush1.bf16.msra.mxu0 %v9961_v4  ;;  %3224 = vmatpush1.bf16.msra.mxu1 %v9964_v7  ;;  %v10050_v4 = vld [vmem:[#allocation2 + $0x9ac] ss:$28 sps:$4 sm:$0xff]   ;;  %v10053_v7 = vld [vmem:[#allocation2 + $0x9dc] ss:$28 sps:$4 sm:$0xff]  }
  0xea   :  { %3053 = vmatprep.subr.bf16.mxu0 %v9969_v5  ;;  %3225 = vmatprep.subr.bf16.mxu1 %v9972_v9  ;;  %v10045_v5 = vld [vmem:[#allocation2 + $0x9a0] ss:$28 sps:$4 sm:$0xff]  }
  0xeb   :  { %v10056_v9 = vld [vmem:[#allocation2 + $0x9e4] ss:$28 sps:$4 sm:$0xff]  }
  0xed   :  { %3054 = vmatpush1.bf16.msra.mxu0 %v9967_v8  ;;  %3226 = vmatpush1.bf16.msra.mxu1 %v9970_v13  ;;  %v10048_v8 = vld [vmem:[#allocation2 + $0x9a8] ss:$28 sps:$4 sm:$0xff]   ;;  %v10062_v13 = vld [vmem:[#allocation2 + $0xa1c] ss:$28 sps:$4 sm:$0xff]  }
  0xee   :  { %3066 = vmatprep.subr.bf16.mxu0 %v9975_v12  ;;  %3238 = vmatprep.subr.bf16.mxu1 %v9978_v15  ;;  %v10054_v12 = vld [vmem:[#allocation2 + $0x9e0] ss:$28 sps:$4 sm:$0xff]   ;;  %v10057_v15 = vld [vmem:[#allocation2 + $0xa10] ss:$28 sps:$4 sm:$0xff]  }
  0xf0   :  { %3056 = vmatmul.mubr.bf16.vlgmr.msra.gmra.mrb[0].mxu0 %v11507_v14  ;;  %3228 = vmatmul.mubr.bf16.vlgmr.msra.gmra.mrb[0].mxu1 %v11507_v14 }
  0xf1   :  { %3067 = vmatpush1.bf16.msra.mxu0 %v9973_v16  ;;  %3239 = vmatpush1.bf16.msra.mxu1 %v9976_v18  ;;  %v10060_v16 = vld [vmem:[#allocation2 + $0xa18] ss:$28 sps:$4 sm:$0xff]   ;;  %v10063_v18 = vld [vmem:[#allocation2 + $0xa48] ss:$28 sps:$4 sm:$0xff]  }
  0xf2   :  { %3068 = vmatprep.subr.bf16.mxu0 %v9981_v17  ;;  %3240 = vmatprep.subr.bf16.mxu1 %v9984_v20  ;;  %v10065_v17 = vld [vmem:[#allocation2 + $0xa4c] ss:$28 sps:$4 sm:$0xff]   ;;  %v10071_v20 = vld [vmem:[#allocation2 + $0xa84] ss:$28 sps:$4 sm:$0xff]  }
  0xf3   :  { %3098 = vmatprep.mubr.bf16.mxu0 %v11517_v24  ;;  %3270 = vmatprep.mubr.bf16.mxu1 %v11517_v24 }
  0xf5   :  { %3069 = vmatpush1.bf16.msra.mxu0 %v9979_v19  ;;  %3241 = vmatpush1.bf16.msra.mxu1 %v9982_v25  ;;  %v10068_v19 = vld [vmem:[#allocation2 + $0xa54] ss:$28 sps:$4 sm:$0xff]   ;;  %v118_v25 = vld [vmem:[%s11751_s0 + $0x78] sm:$0xff] }
  0xf6   :  { %3070 = vmatprep.subr.bf16.mxu0 %v9987_v23  ;;  %3242 = vmatprep.subr.bf16.mxu1 %v9990_v26  ;;  %v110_v23 = vld [vmem:[%s11751_s0 + $0x38] sm:$0xff]  ;;  %v10066_v26 = vld [vmem:[#allocation2 + $0xa50] ss:$28 sps:$4 sm:$0xff]  }
  0xf9   :  { %3071 = vmatpush1.bf16.msra.mxu0 %v9985_v27  ;;  %3243 = vmatpush1.bf16.msra.mxu1 %v9988_v29  ;;  %v11533_v27 = vpack.c.bf16 %v115_v22, %v107_v21  ;;  %v10069_v29 = vld [vmem:[#allocation2 + $0xa80] ss:$28 sps:$4 sm:$0xff]   ;;  %v10147_v21 = vld [vmem:[#allocation2 + $0xd58] ss:$28 sps:$4 sm:$0xff]  }
  0xfa   :  { %3072 = vmatprep.subr.bf16.mxu0 %v9993_v28  ;;  %3244 = vmatprep.subr.bf16.mxu1 %v9996_v30  ;;  %v10074_v28 = vld [vmem:[#allocation2 + $0xa8c] ss:$28 sps:$4 sm:$0xff]   ;;  %v11535_v30 = vpack.c.bf16 %v118_v25, %v110_v23  ;;  %v10152_v22 = vld [vmem:[#allocation2 + $0xd64] ss:$28 sps:$4 sm:$0xff]   ;;  %v10155_v25 = vld [vmem:[#allocation2 + $0xd94] ss:$28 sps:$4 sm:$0xff]  }
  0xfb   :  { %v10150_v23 = vld [vmem:[#allocation2 + $0xd60] ss:$28 sps:$4 sm:$0xff]  }
  0xfd   :  { %3073 = vmatpush1.bf16.msra.mxu0 %v9991_v31  ;;  %3245 = vmatpush1.bf16.msra.mxu1 %v9994_v33  ;;  %v10077_v31 = vld [vmem:[#allocation2 + $0xabc] ss:$28 sps:$4 sm:$0xff]   ;;  %v10080_v33 = vld [vmem:[#allocation2 + $0xac4] ss:$28 sps:$4 sm:$0xff]  }
  0xfe   :  { %3074 = vmatprep.subr.bf16.mxu0 %v9999_v32  ;;  %3246 = vmatprep.subr.bf16.mxu1 %v10002_v34  ;;  %v10072_v32 = vld [vmem:[#allocation2 + $0xa88] ss:$28 sps:$4 sm:$0xff]   ;;  %v10075_v34 = vld [vmem:[#allocation2 + $0xab8] ss:$28 sps:$4 sm:$0xff]  }
 0x101   :  { %3075 = vmatpush1.bf16.msra.mxu0 %v9997_v35  ;;  %3247 = vmatpush1.bf16.msra.mxu1 %v10000_v38  ;;  %v10083_v35 = vld [vmem:[#allocation2 + $0xaf4] ss:$28 sps:$4 sm:$0xff]   ;;  %v10086_v38 = vld [vmem:[#allocation2 + $0xafc] ss:$28 sps:$4 sm:$0xff]  }
 0x102   :  { %3076 = vmatprep.subr.bf16.mxu0 %v10005_v37  ;;  %3248 = vmatprep.subr.bf16.mxu1 %v10008_v39  ;;  %v10078_v37 = vld [vmem:[#allocation2 + $0xac0] ss:$28 sps:$4 sm:$0xff]   ;;  %v10081_v39 = vld [vmem:[#allocation2 + $0xaf0] ss:$28 sps:$4 sm:$0xff]  }
 0x105   :  { %3077 = vmatpush1.bf16.msra.mxu0 %v10003_v40  ;;  %3249 = vmatpush1.bf16.msra.mxu1 %v10006_v42  ;;  %v10089_v40 = vld [vmem:[#allocation2 + $0xb2c] ss:$28 sps:$4 sm:$0xff]   ;;  %v10092_v42 = vld [vmem:[#allocation2 + $0xb34] ss:$28 sps:$4 sm:$0xff]  }
 0x106   :  { %3078 = vmatprep.subr.bf16.mxu0 %v10011_v41  ;;  %3250 = vmatprep.subr.bf16.mxu1 %v10014_v43  ;;  %v10084_v41 = vld [vmem:[#allocation2 + $0xaf8] ss:$28 sps:$4 sm:$0xff]   ;;  %v10087_v43 = vld [vmem:[#allocation2 + $0xb28] ss:$28 sps:$4 sm:$0xff]  }
 0x109   :  { %3079 = vmatpush1.bf16.msra.mxu0 %v10009_v44  ;;  %3251 = vmatpush1.bf16.msra.mxu1 %v10012_v46  ;;  %v10095_v44 = vld [vmem:[#allocation2 + $0xb64] ss:$28 sps:$4 sm:$0xff]   ;;  %v10098_v46 = vld [vmem:[#allocation2 + $0xb6c] ss:$28 sps:$4 sm:$0xff]  }
 0x10a   :  { %3080 = vmatprep.subr.bf16.mxu0 %v10017_v45  ;;  %3252 = vmatprep.subr.bf16.mxu1 %v10020_v47  ;;  %v10090_v45 = vld [vmem:[#allocation2 + $0xb30] ss:$28 sps:$4 sm:$0xff]   ;;  %v10093_v47 = vld [vmem:[#allocation2 + $0xb60] ss:$28 sps:$4 sm:$0xff]  }
 0x10d   :  { %3081 = vmatpush1.bf16.msra.mxu0 %v10015_v48  ;;  %3253 = vmatpush1.bf16.msra.mxu1 %v10018_v51  ;;  %v10101_v48 = vld [vmem:[#allocation2 + $0xb9c] ss:$28 sps:$4 sm:$0xff]   ;;  %v10104_v51 = vld [vmem:[#allocation2 + $0xba4] ss:$28 sps:$4 sm:$0xff]  }
 0x10e   :  { %3082 = vmatprep.subr.bf16.mxu0 %v10023_v49  ;;  %3254 = vmatprep.subr.bf16.mxu1 %v10026_v52  ;;  %v10096_v49 = vld [vmem:[#allocation2 + $0xb68] ss:$28 sps:$4 sm:$0xff]   ;;  %v10099_v52 = vld [vmem:[#allocation2 + $0xb98] ss:$28 sps:$4 sm:$0xff]  }
 0x111   :  { %3083 = vmatpush1.bf16.msra.mxu0 %v10021_v53  ;;  %3255 = vmatpush1.bf16.msra.mxu1 %v10024_v55  ;;  %v10107_v53 = vld [vmem:[#allocation2 + $0xbd4] ss:$28 sps:$4 sm:$0xff]   ;;  %v10110_v55 = vld [vmem:[#allocation2 + $0xbdc] ss:$28 sps:$4 sm:$0xff]  }
 0x112   :  { %3084 = vmatprep.subr.bf16.mxu0 %v10029_v54  ;;  %3256 = vmatprep.subr.bf16.mxu1 %v10032_v56  ;;  %v10102_v54 = vld [vmem:[#allocation2 + $0xba0] ss:$28 sps:$4 sm:$0xff]   ;;  %v10105_v56 = vld [vmem:[#allocation2 + $0xbd0] ss:$28 sps:$4 sm:$0xff]  }
 0x115   :  { %3085 = vmatpush1.bf16.msra.mxu0 %v10027_v57  ;;  %3257 = vmatpush1.bf16.msra.mxu1 %v10030_v59  ;;  %v10113_v57 = vld [vmem:[#allocation2 + $0xc0c] ss:$28 sps:$4 sm:$0xff]   ;;  %v10116_v59 = vld [vmem:[#allocation2 + $0xc14] ss:$28 sps:$4 sm:$0xff]  }
 0x116   :  { %3086 = vmatprep.subr.bf16.mxu0 %v10035_v58  ;;  %3258 = vmatprep.subr.bf16.mxu1 %v10038_v60  ;;  %v10108_v58 = vld [vmem:[#allocation2 + $0xbd8] ss:$28 sps:$4 sm:$0xff]   ;;  %v10111_v60 = vld [vmem:[#allocation2 + $0xc08] ss:$28 sps:$4 sm:$0xff]  }
 0x119   :  { %3087 = vmatpush1.bf16.msra.mxu0 %v10033_v61  ;;  %3259 = vmatpush1.bf16.msra.mxu1 %v10036_v63  ;;  %v10119_v61 = vld [vmem:[#allocation2 + $0xc44] ss:$28 sps:$4 sm:$0xff]   ;;  %v10122_v63 = vld [vmem:[#allocation2 + $0xc4c] ss:$28 sps:$4 sm:$0xff]  }
 0x11a   :  { %3088 = vmatprep.subr.bf16.mxu0 %v10041_v62  ;;  %3260 = vmatprep.subr.bf16.mxu1 %v10044_v0  ;;  %v10114_v62 = vld [vmem:[#allocation2 + $0xc10] ss:$28 sps:$4 sm:$0xff]   ;;  %v10117_v0 = vld [vmem:[#allocation2 + $0xc40] ss:$28 sps:$4 sm:$0xff]  }
 0x11d   :  { %3089 = vmatpush1.bf16.msra.mxu0 %v10039_v1  ;;  %3261 = vmatpush1.bf16.msra.mxu1 %v10042_v3  ;;  %v10125_v1 = vld [vmem:[#allocation2 + $0xc7c] ss:$28 sps:$4 sm:$0xff]   ;;  %v10128_v3 = vld [vmem:[#allocation2 + $0xc84] ss:$28 sps:$4 sm:$0xff]  }
 0x11e   :  { %3090 = vmatprep.subr.bf16.mxu0 %v10047_v2  ;;  %3262 = vmatprep.subr.bf16.mxu1 %v10050_v4  ;;  %v10120_v2 = vld [vmem:[#allocation2 + $0xc48] ss:$28 sps:$4 sm:$0xff]   ;;  %v10123_v4 = vld [vmem:[#allocation2 + $0xc78] ss:$28 sps:$4 sm:$0xff]  }
 0x121   :  { %3091 = vmatpush1.bf16.msra.mxu0 %v10045_v5  ;;  %3263 = vmatpush1.bf16.msra.mxu1 %v10048_v8  ;;  %v10131_v5 = vld [vmem:[#allocation2 + $0xcb4] ss:$28 sps:$4 sm:$0xff]   ;;  %v10134_v8 = vld [vmem:[#allocation2 + $0xcbc] ss:$28 sps:$4 sm:$0xff]  }
 0x122   :  { %3092 = vmatprep.subr.bf16.mxu0 %v10053_v7  ;;  %3264 = vmatprep.subr.bf16.mxu1 %v10056_v9  ;;  %v10126_v7 = vld [vmem:[#allocation2 + $0xc80] ss:$28 sps:$4 sm:$0xff]   ;;  %v10129_v9 = vld [vmem:[#allocation2 + $0xcb0] ss:$28 sps:$4 sm:$0xff]  }
 0x125   :  { %3093 = vmatpush1.bf16.msra.mxu0 %v10051_v10  ;;  %3265 = vmatpush1.bf16.msra.mxu1 %v10054_v12  ;;  %v10137_v10 = vld [vmem:[#allocation2 + $0xcec] ss:$28 sps:$4 sm:$0xff]   ;;  %v10140_v12 = vld [vmem:[#allocation2 + $0xcf4] ss:$28 sps:$4 sm:$0xff]  }
 0x126   :  { %3094 = vmatprep.subr.bf16.mxu0 %v10059_v11  ;;  %3266 = vmatprep.subr.bf16.mxu1 %v10062_v13  ;;  %v10132_v11 = vld [vmem:[#allocation2 + $0xcb8] ss:$28 sps:$4 sm:$0xff]   ;;  %v10135_v13 = vld [vmem:[#allocation2 + $0xce8] ss:$28 sps:$4 sm:$0xff]  }
 0x129   :  { %3095 = vmatpush1.bf16.msra.mxu0 %v10057_v15  ;;  %3267 = vmatpush1.bf16.msra.mxu1 %v10060_v16  ;;  %v10143_v15 = vld [vmem:[#allocation2 + $0xd24] ss:$28 sps:$4 sm:$0xff]   ;;  %v10138_v16 = vld [vmem:[#allocation2 + $0xcf0] ss:$28 sps:$4 sm:$0xff]  }
 0x12a   :  { %3096 = vmatprep.subr.bf16.mxu0 %v10065_v17  ;;  %3268 = vmatprep.subr.bf16.mxu1 %v10068_v19  ;;  %v10146_v17 = vld [vmem:[#allocation2 + $0xd2c] ss:$28 sps:$4 sm:$0xff]  }
 0x12b   :  { %v10144_v19 = vld [vmem:[#allocation2 + $0xd28] ss:$28 sps:$4 sm:$0xff]  }
 0x12d   :  { %3097 = vmatpush1.bf16.msra.mxu0 %v10063_v18  ;;  %3269 = vmatpush1.bf16.msra.mxu1 %v10066_v26  ;;  %v10141_v18 = vld [vmem:[#allocation2 + $0xd20] ss:$28 sps:$4 sm:$0xff]   ;;  %v10153_v26 = vld [vmem:[#allocation2 + $0xd90] ss:$28 sps:$4 sm:$0xff]  }
 0x12e   :  { %3109 = vmatprep.subr.bf16.mxu0 %v10071_v20  ;;  %3281 = vmatprep.subr.bf16.mxu1 %v10074_v28  ;;  %v10149_v20 = vld [vmem:[#allocation2 + $0xd5c] ss:$28 sps:$4 sm:$0xff]  }
 0x12f   :  { %v10158_v28 = vld [vmem:[#allocation2 + $0xd9c] ss:$28 sps:$4 sm:$0xff]  }
 0x130   :  { %3099 = vmatmul.mubr.bf16.vlgmr.msra.gmra.mrb[0].mxu0 %v11533_v27  ;;  %3271 = vmatmul.mubr.bf16.vlgmr.msra.gmra.mrb[0].mxu1 %v11533_v27 }
 0x131   :  { %3110 = vmatpush1.bf16.msra.mxu0 %v10069_v29  ;;  %3141 = vmatprep.mubr.bf16.mxu0 %v11535_v30  ;;  %v10156_v29 = vld [vmem:[#allocation2 + $0xd98] ss:$28 sps:$4 sm:$0xff]  }
 0x132   :  { %3111 = vmatprep.subr.bf16.mxu0 %v10077_v31  ;;  %3282 = vmatpush1.bf16.msra.mxu1 %v10072_v32  ;;  %v10161_v31 = vld [vmem:[#allocation2 + $0xdcc] ss:$28 sps:$4 sm:$0xff]  }
 0x133   :  { %3313 = vmatprep.mubr.bf16.mxu1 %v11535_v30  ;;  %3283 = vmatprep.subr.bf16.mxu1 %v10080_v33  ;;  %v10159_v32 = vld [vmem:[#allocation2 + $0xdc8] ss:$28 sps:$4 sm:$0xff]   ;;  %v10164_v33 = vld [vmem:[#allocation2 + $0xdd4] ss:$28 sps:$4 sm:$0xff]  }
 0x135   :  { %3112 = vmatpush1.bf16.msra.mxu0 %v10075_v34  ;;  %v109_v34 = vld [vmem:[%s11751_s0 + $0x30] sm:$0xff] }
 0x136   :  { %3113 = vmatprep.subr.bf16.mxu0 %v10083_v35  ;;  %3284 = vmatpush1.bf16.msra.mxu1 %v10078_v37  ;;  %v117_v35 = vld [vmem:[%s11751_s0 + $0x70] sm:$0xff] }
 0x137   :  { %3285 = vmatprep.subr.bf16.mxu1 %v10086_v38  ;;  %v10167_v37 = vld [vmem:[#allocation2 + $0x14] ss:$28 sps:$4 sm:$0xff]  }
 0x138   :  { %v10162_v38 = vld [vmem:[#allocation2 + $0xdd0] ss:$28 sps:$4 sm:$0xff]  }
 0x139   :  { %3114 = vmatpush1.bf16.msra.mxu0 %v10081_v39  ;;  %v11547_v39 = vpack.c.bf16 %v117_v35, %v109_v34  ;;  %v10278_v34 = vld [vmem:[#allocation2 + $0x9f0] ss:$28 sps:$4 sm:$0xff]   ;;  %v10204_v35 = vld [vmem:[#allocation2 + $0x2e8] ss:$28 sps:$4 sm:$0xff]  }
 0x13a   :  { %3115 = vmatprep.subr.bf16.mxu0 %v10089_v40  ;;  %3286 = vmatpush1.bf16.msra.mxu1 %v10084_v41  ;;  %v10213_v40 = vld [vmem:[#allocation2 + $0x558] ss:$28 sps:$4 sm:$0xff]   ;;  %v10165_v41 = vld [vmem:[#allocation2 + $0x10] ss:$28 sps:$4 sm:$0xff]  }
 0x13b   :  { %3287 = vmatprep.subr.bf16.mxu1 %v10092_v42  ;;  %v10170_v42 = vld [vmem:[#allocation2 + $0x4c] ss:$28 sps:$4 sm:$0xff]  }
 0x13d   :  { %3116 = vmatpush1.bf16.msra.mxu0 %v10087_v43  ;;  %v10214_v43 = vld [vmem:[#allocation2 + $0x398] ss:$28 sps:$4 sm:$0xff]  }
 0x13e   :  { %3117 = vmatprep.subr.bf16.mxu0 %v10095_v44  ;;  %3288 = vmatpush1.bf16.msra.mxu1 %v10090_v45  ;;  %v10218_v44 = vld [vmem:[#allocation2 + $0x590] ss:$28 sps:$4 sm:$0xff]   ;;  %v10168_v45 = vld [vmem:[#allocation2 + $0x48] ss:$28 sps:$4 sm:$0xff]  }
 0x13f   :  { %3289 = vmatprep.subr.bf16.mxu1 %v10098_v46  ;;  %v10173_v46 = vld [vmem:[#allocation2 + $0x84] ss:$28 sps:$4 sm:$0xff]  }
 0x141   :  { %3118 = vmatpush1.bf16.msra.mxu0 %v10093_v47  ;;  %v10219_v47 = vld [vmem:[#allocation2 + $0x3d0] ss:$28 sps:$4 sm:$0xff]  }
 0x142   :  { %3119 = vmatprep.subr.bf16.mxu0 %v10101_v48  ;;  %3290 = vmatpush1.bf16.msra.mxu1 %v10096_v49  ;;  %v10223_v48 = vld [vmem:[#allocation2 + $0x5c8] ss:$28 sps:$4 sm:$0xff]   ;;  %v10171_v49 = vld [vmem:[#allocation2 + $0x80] ss:$28 sps:$4 sm:$0xff]  }
 0x143   :  { %3291 = vmatprep.subr.bf16.mxu1 %v10104_v51  ;;  %v10176_v51 = vld [vmem:[#allocation2 + $0xbc] ss:$28 sps:$4 sm:$0xff]  }
 0x145   :  { %3120 = vmatpush1.bf16.msra.mxu0 %v10099_v52  ;;  %v10224_v52 = vld [vmem:[#allocation2 + $0x408] ss:$28 sps:$4 sm:$0xff]  }
 0x146   :  { %3121 = vmatprep.subr.bf16.mxu0 %v10107_v53  ;;  %3292 = vmatpush1.bf16.msra.mxu1 %v10102_v54  ;;  %v10228_v53 = vld [vmem:[#allocation2 + $0x600] ss:$28 sps:$4 sm:$0xff]   ;;  %v10174_v54 = vld [vmem:[#allocation2 + $0xb8] ss:$28 sps:$4 sm:$0xff]  }
 0x147   :  { %3293 = vmatprep.subr.bf16.mxu1 %v10110_v55  ;;  %v10179_v55 = vld [vmem:[#allocation2 + $0xf4] ss:$28 sps:$4 sm:$0xff]  }
 0x149   :  { %3122 = vmatpush1.bf16.msra.mxu0 %v10105_v56  ;;  %v10229_v56 = vld [vmem:[#allocation2 + $0x440] ss:$28 sps:$4 sm:$0xff]  }
 0x14a   :  { %3123 = vmatprep.subr.bf16.mxu0 %v10113_v57  ;;  %3294 = vmatpush1.bf16.msra.mxu1 %v10108_v58  ;;  %v10233_v57 = vld [vmem:[#allocation2 + $0x638] ss:$28 sps:$4 sm:$0xff]   ;;  %v10177_v58 = vld [vmem:[#allocation2 + $0xf0] ss:$28 sps:$4 sm:$0xff]  }
 0x14b   :  { %3295 = vmatprep.subr.bf16.mxu1 %v10116_v59  ;;  %v10182_v59 = vld [vmem:[#allocation2 + $0x12c] ss:$28 sps:$4 sm:$0xff]  }
 0x14d   :  { %3124 = vmatpush1.bf16.msra.mxu0 %v10111_v60  ;;  %v10234_v60 = vld [vmem:[#allocation2 + $0x478] ss:$28 sps:$4 sm:$0xff]  }
 0x14e   :  { %3125 = vmatprep.subr.bf16.mxu0 %v10119_v61  ;;  %3296 = vmatpush1.bf16.msra.mxu1 %v10114_v62  ;;  %v10238_v61 = vld [vmem:[#allocation2 + $0x670] ss:$28 sps:$4 sm:$0xff]   ;;  %v10180_v62 = vld [vmem:[#allocation2 + $0x128] ss:$28 sps:$4 sm:$0xff]  }
 0x14f   :  { %3297 = vmatprep.subr.bf16.mxu1 %v10122_v63  ;;  %v10185_v63 = vld [vmem:[#allocation2 + $0x164] ss:$28 sps:$4 sm:$0xff]  }
 0x151   :  { %3126 = vmatpush1.bf16.msra.mxu0 %v10117_v0  ;;  %v10239_v0 = vld [vmem:[#allocation2 + $0x4b0] ss:$28 sps:$4 sm:$0xff]  }
 0x152   :  { %3127 = vmatprep.subr.bf16.mxu0 %v10125_v1  ;;  %3298 = vmatpush1.bf16.msra.mxu1 %v10120_v2  ;;  %v10243_v1 = vld [vmem:[#allocation2 + $0x6a8] ss:$28 sps:$4 sm:$0xff]   ;;  %v10183_v2 = vld [vmem:[#allocation2 + $0x160] ss:$28 sps:$4 sm:$0xff]  }
 0x153   :  { %3299 = vmatprep.subr.bf16.mxu1 %v10128_v3  ;;  %v10188_v3 = vld [vmem:[#allocation2 + $0x19c] ss:$28 sps:$4 sm:$0xff]  }
 0x155   :  { %3128 = vmatpush1.bf16.msra.mxu0 %v10123_v4  ;;  %v10244_v4 = vld [vmem:[#allocation2 + $0x4e8] ss:$28 sps:$4 sm:$0xff]  }
 0x156   :  { %3129 = vmatprep.subr.bf16.mxu0 %v10131_v5  ;;  %3300 = vmatpush1.bf16.msra.mxu1 %v10126_v7  ;;  %v10248_v5 = vld [vmem:[#allocation2 + $0x6e0] ss:$28 sps:$4 sm:$0xff]   ;;  %v10186_v7 = vld [vmem:[#allocation2 + $0x198] ss:$28 sps:$4 sm:$0xff]  }
 0x157   :  { %3301 = vmatprep.subr.bf16.mxu1 %v10134_v8  ;;  %v10191_v8 = vld [vmem:[#allocation2 + $0x1d4] ss:$28 sps:$4 sm:$0xff]  }
 0x159   :  { %3130 = vmatpush1.bf16.msra.mxu0 %v10129_v9  ;;  %v10249_v9 = vld [vmem:[#allocation2 + $0x520] ss:$28 sps:$4 sm:$0xff]  }
 0x15a   :  { %3131 = vmatprep.subr.bf16.mxu0 %v10137_v10  ;;  %3302 = vmatpush1.bf16.msra.mxu1 %v10132_v11  ;;  %v10253_v10 = vld [vmem:[#allocation2 + $0x8d8] ss:$28 sps:$4 sm:$0xff]   ;;  %v10189_v11 = vld [vmem:[#allocation2 + $0x1d0] ss:$28 sps:$4 sm:$0xff]  }
 0x15b   :  { %3303 = vmatprep.subr.bf16.mxu1 %v10140_v12  ;;  %v10194_v12 = vld [vmem:[#allocation2 + $0x20c] ss:$28 sps:$4 sm:$0xff]  }
 0x15d   :  { %3132 = vmatpush1.bf16.msra.mxu0 %v10135_v13  ;;  %v10254_v13 = vld [vmem:[#allocation2 + $0x718] ss:$28 sps:$4 sm:$0xff]  }
 0x15e   :  { %3133 = vmatprep.subr.bf16.mxu0 %v10143_v15  ;;  %3304 = vmatpush1.bf16.msra.mxu1 %v10138_v16  ;;  %v10258_v15 = vld [vmem:[#allocation2 + $0x910] ss:$28 sps:$4 sm:$0xff]   ;;  %v10192_v16 = vld [vmem:[#allocation2 + $0x208] ss:$28 sps:$4 sm:$0xff]  }
 0x15f   :  { %3305 = vmatprep.subr.bf16.mxu1 %v10146_v17  ;;  %v10197_v17 = vld [vmem:[#allocation2 + $0x244] ss:$28 sps:$4 sm:$0xff]  }
 0x161   :  { %3134 = vmatpush1.bf16.msra.mxu0 %v10141_v18  ;;  %v10259_v18 = vld [vmem:[#allocation2 + $0x750] ss:$28 sps:$4 sm:$0xff]  }
 0x162   :  { %3135 = vmatprep.subr.bf16.mxu0 %v10149_v20  ;;  %3306 = vmatpush1.bf16.msra.mxu1 %v10144_v19  ;;  %v10263_v19 = vld [vmem:[#allocation2 + $0x948] ss:$28 sps:$4 sm:$0xff]   ;;  %v10195_v20 = vld [vmem:[#allocation2 + $0x240] ss:$28 sps:$4 sm:$0xff]  }
 0x163   :  { %3307 = vmatprep.subr.bf16.mxu1 %v10152_v22  ;;  %v10264_v22 = vld [vmem:[#allocation2 + $0x788] ss:$28 sps:$4 sm:$0xff]  }
 0x165   :  { %3136 = vmatpush1.bf16.msra.mxu0 %v10147_v21  ;;  %v10200_v21 = vld [vmem:[#allocation2 + $0x27c] ss:$28 sps:$4 sm:$0xff]  }
 0x166   :  { %3137 = vmatprep.subr.bf16.mxu0 %v10155_v25  ;;  %3308 = vmatpush1.bf16.msra.mxu1 %v10150_v23  ;;  %v10268_v23 = vld [vmem:[#allocation2 + $0x980] ss:$28 sps:$4 sm:$0xff]   ;;  %v10198_v25 = vld [vmem:[#allocation2 + $0x278] ss:$28 sps:$4 sm:$0xff]  }
 0x167   :  { %3309 = vmatprep.subr.bf16.mxu1 %v10158_v28  ;;  %v10269_v28 = vld [vmem:[#allocation2 + $0x7c0] ss:$28 sps:$4 sm:$0xff]  }
 0x169   :  { %3138 = vmatpush1.bf16.msra.mxu0 %v10153_v26  ;;  %v10203_v26 = vld [vmem:[#allocation2 + $0x2b4] ss:$28 sps:$4 sm:$0xff]  }
 0x16a   :  { %3139 = vmatprep.subr.bf16.mxu0 %v10161_v31  ;;  %3310 = vmatpush1.bf16.msra.mxu1 %v10156_v29  ;;  %v10273_v29 = vld [vmem:[#allocation2 + $0x9b8] ss:$28 sps:$4 sm:$0xff]   ;;  %v10201_v31 = vld [vmem:[#allocation2 + $0x2b0] ss:$28 sps:$4 sm:$0xff]  }
 0x16b   :  { %3311 = vmatprep.subr.bf16.mxu1 %v10164_v33  ;;  %v10274_v33 = vld [vmem:[#allocation2 + $0x7f8] ss:$28 sps:$4 sm:$0xff]  }
 0x16d   :  { %3140 = vmatpush1.bf16.msra.mxu0 %v10159_v32  ;;  %v10206_v32 = vld [vmem:[#allocation2 + $0x2ec] ss:$28 sps:$4 sm:$0xff]  }
 0x16e   :  { %3324 = vmatprep.subr.bf16.mxu0 %v10167_v37  ;;  %3312 = vmatpush1.bf16.msra.mxu1 %v10162_v38  ;;  %v10209_v37 = vld [vmem:[#allocation2 + $0x324] ss:$28 sps:$4 sm:$0xff]   ;;  %v10279_v38 = vld [vmem:[#allocation2 + $0x830] ss:$28 sps:$4 sm:$0xff]  }
 0x16f   :  { %9400 = vmatprep.subr.bf16.mxu1 %v10213_v40  ;;  %v10283_v40 = vld [vmem:[#allocation2 + $0xa28] ss:$28 sps:$4 sm:$0xff]  }
 0x170   :  { %3142 = vmatmul.mubr.bf16.vlgmr.msra.gmra.mrb[0].mxu0 %v11547_v39 }
 0x171   :  { %3325 = vmatpush1.bf16.msra.mxu0 %v10165_v41  ;;  %3356 = vmatprep.mubr.bf16.mxu0 %v11477_v50  ;;  %v10207_v41 = vld [vmem:[#allocation2 + $0x320] ss:$28 sps:$4 sm:$0xff]  }
 0x172   :  { %3314 = vmatmul.mubr.bf16.vlgmr.msra.gmra.mrb[0].mxu1 %v11547_v39  ;;  %3326 = vmatprep.subr.bf16.mxu0 %v10170_v42  ;;  %v10212_v42 = vld [vmem:[#allocation2 + $0x35c] ss:$28 sps:$4 sm:$0xff]  }
 0x173   :  { %9401 = vmatpush3.bf16.msra.mxu1 %v10214_v43  ;;  %3569 = vmatprep.mubr.bf16.mxu1 %v11497_v36  ;;  %v10284_v43 = vld [vmem:[#allocation2 + $0x868] ss:$28 sps:$4 sm:$0xff]  }
 0x174   :  { %9402 = vmatprep.subr.bf16.mxu1 %v10218_v44  ;;  %v10288_v44 = vld [vmem:[#allocation2 + $0xa60] ss:$28 sps:$4 sm:$0xff]  }
 0x175   :  { %3327 = vmatpush1.bf16.msra.mxu0 %v10168_v45  ;;  %v10210_v45 = vld [vmem:[#allocation2 + $0x358] ss:$28 sps:$4 sm:$0xff]  }
 0x176   :  { %3328 = vmatprep.subr.bf16.mxu0 %v10173_v46  ;;  %v10217_v46 = vld [vmem:[#allocation2 + $0x394] ss:$28 sps:$4 sm:$0xff]  }
 0x177   :  { %9403 = vmatpush3.bf16.msra.mxu1 %v10219_v47  ;;  %v10289_v47 = vld [vmem:[#allocation2 + $0x8a0] ss:$28 sps:$4 sm:$0xff]  }
 0x178   :  { %9404 = vmatprep.subr.bf16.mxu1 %v10223_v48  ;;  %v10293_v48 = vld [vmem:[#allocation2 + $0xc58] ss:$28 sps:$4 sm:$0xff]  }
 0x179   :  { %3329 = vmatpush1.bf16.msra.mxu0 %v10171_v49  ;;  %v10215_v49 = vld [vmem:[#allocation2 + $0x390] ss:$28 sps:$4 sm:$0xff]  }
 0x17a   :  { %3330 = vmatprep.subr.bf16.mxu0 %v10176_v51  ;;  %v10222_v51 = vld [vmem:[#allocation2 + $0x3cc] ss:$28 sps:$4 sm:$0xff]  }
 0x17b   :  { %9405 = vmatpush3.bf16.msra.mxu1 %v10224_v52  ;;  %v10294_v52 = vld [vmem:[#allocation2 + $0xa98] ss:$28 sps:$4 sm:$0xff]  }
 0x17c   :  { %9406 = vmatprep.subr.bf16.mxu1 %v10228_v53  ;;  %v10298_v53 = vld [vmem:[#allocation2 + $0xc90] ss:$28 sps:$4 sm:$0xff]  }
 0x17d   :  { %3331 = vmatpush1.bf16.msra.mxu0 %v10174_v54  ;;  %v10220_v54 = vld [vmem:[#allocation2 + $0x3c8] ss:$28 sps:$4 sm:$0xff]  }
 0x17e   :  { %3332 = vmatprep.subr.bf16.mxu0 %v10179_v55  ;;  %v10227_v55 = vld [vmem:[#allocation2 + $0x404] ss:$28 sps:$4 sm:$0xff]  }
 0x17f   :  { %9407 = vmatpush3.bf16.msra.mxu1 %v10229_v56  ;;  %v10299_v56 = vld [vmem:[#allocation2 + $0xad0] ss:$28 sps:$4 sm:$0xff]  }
 0x180   :  { %9408 = vmatprep.subr.bf16.mxu1 %v10233_v57  ;;  %v10303_v57 = vld [vmem:[#allocation2 + $0xcc8] ss:$28 sps:$4 sm:$0xff]  }
 0x181   :  { %3333 = vmatpush1.bf16.msra.mxu0 %v10177_v58  ;;  %v10225_v58 = vld [vmem:[#allocation2 + $0x400] ss:$28 sps:$4 sm:$0xff]  }
 0x182   :  { %3334 = vmatprep.subr.bf16.mxu0 %v10182_v59  ;;  %v10232_v59 = vld [vmem:[#allocation2 + $0x43c] ss:$28 sps:$4 sm:$0xff]  }
 0x183   :  { %9409 = vmatpush3.bf16.msra.mxu1 %v10234_v60  ;;  %v10304_v60 = vld [vmem:[#allocation2 + $0xb08] ss:$28 sps:$4 sm:$0xff]  }
 0x184   :  { %9410 = vmatprep.subr.bf16.mxu1 %v10238_v61  ;;  %v10308_v61 = vld [vmem:[#allocation2 + $0xd00] ss:$28 sps:$4 sm:$0xff]  }
 0x185   :  { %3335 = vmatpush1.bf16.msra.mxu0 %v10180_v62  ;;  %v10230_v62 = vld [vmem:[#allocation2 + $0x438] ss:$28 sps:$4 sm:$0xff]  }
 0x186   :  { %3336 = vmatprep.subr.bf16.mxu0 %v10185_v63  ;;  %v10309_v63 = vld [vmem:[#allocation2 + $0xb40] ss:$28 sps:$4 sm:$0xff]  }
 0x187   :  { %9411 = vmatpush3.bf16.msra.mxu1 %v10239_v0  ;;  %v10313_v0 = vld [vmem:[#allocation2 + $0xd38] ss:$28 sps:$4 sm:$0xff]  }
 0x188   :  { %9412 = vmatprep.subr.bf16.mxu1 %v10243_v1  ;;  %v10235_v1 = vld [vmem:[#allocation2 + $0x470] ss:$28 sps:$4 sm:$0xff]  }
 0x189   :  { %3337 = vmatpush1.bf16.msra.mxu0 %v10183_v2  ;;  %v10242_v2 = vld [vmem:[#allocation2 + $0x4ac] ss:$28 sps:$4 sm:$0xff]  }
 0x18a   :  { %3338 = vmatprep.subr.bf16.mxu0 %v10188_v3  ;;  %v10314_v3 = vld [vmem:[#allocation2 + $0xb78] ss:$28 sps:$4 sm:$0xff]  }
 0x18b   :  { %9413 = vmatpush3.bf16.msra.mxu1 %v10244_v4  ;;  %v10318_v4 = vld [vmem:[#allocation2 + $0xd70] ss:$28 sps:$4 sm:$0xff]  }
 0x18c   :  { %9414 = vmatprep.subr.bf16.mxu1 %v10248_v5  ;;  %v10240_v5 = vld [vmem:[#allocation2 + $0x4a8] ss:$28 sps:$4 sm:$0xff]  }
 0x18d   :  { %3339 = vmatpush1.bf16.msra.mxu0 %v10186_v7  ;;  %v10247_v7 = vld [vmem:[#allocation2 + $0x4e4] ss:$28 sps:$4 sm:$0xff]  }
 0x18e   :  { %3340 = vmatprep.subr.bf16.mxu0 %v10191_v8  ;;  %v10245_v8 = vld [vmem:[#allocation2 + $0x4e0] ss:$28 sps:$4 sm:$0xff]  }
 0x18f   :  { %9415 = vmatpush3.bf16.msra.mxu1 %v10249_v9  ;;  %v10319_v9 = vld [vmem:[#allocation2 + $0xbb0] ss:$28 sps:$4 sm:$0xff]  }
 0x190   :  { %9422 = vmatprep.subr.bf16.mxu1 %v10253_v10  ;;  %v10323_v10 = vld [vmem:[#allocation2 + $0xda8] ss:$28 sps:$4 sm:$0xff]  }
 0x191   :  { %3341 = vmatpush1.bf16.msra.mxu0 %v10189_v11  ;;  %v10252_v11 = vld [vmem:[#allocation2 + $0x51c] ss:$28 sps:$4 sm:$0xff]  }
 0x192   :  { %3342 = vmatprep.subr.bf16.mxu0 %v10194_v12  ;;  %3570 = vmatmul.mubr.bf16.vlgmr.msra.gmra.mrb[4].mxu1 %v11507_v14  ;;  %v10250_v12 = vld [vmem:[#allocation2 + $0x518] ss:$28 sps:$4 sm:$0xff]  }
 0x193   :  { %9423 = vmatpush3.bf16.msra.mxu1 %v10254_v13  ;;  %3610 = vmatprep.mubr.bf16.mxu1 %v11517_v24  ;;  %v10324_v13 = vld [vmem:[#allocation2 + $0xbe8] ss:$28 sps:$4 sm:$0xff]  }
 0x194   :  { %9424 = vmatprep.subr.bf16.mxu1 %v10258_v15  ;;  %v10328_v15 = vld [vmem:[#allocation2 + $0xde0] ss:$28 sps:$4 sm:$0xff]  }
 0x195   :  { %3343 = vmatpush1.bf16.msra.mxu0 %v10192_v16  ;;  %v10257_v16 = vld [vmem:[#allocation2 + $0x554] ss:$28 sps:$4 sm:$0xff]  }
 0x196   :  { %3344 = vmatprep.subr.bf16.mxu0 %v10197_v17  ;;  %v10255_v17 = vld [vmem:[#allocation2 + $0x550] ss:$28 sps:$4 sm:$0xff]  }
 0x197   :  { %9425 = vmatpush3.bf16.msra.mxu1 %v10259_v18  ;;  %v10329_v18 = vld [vmem:[#allocation2 + $0xc20] ss:$28 sps:$4 sm:$0xff]  }
 0x198   :  { %9426 = vmatprep.subr.bf16.mxu1 %v10263_v19  ;;  %v10262_v19 = vld [vmem:[#allocation2 + $0x58c] ss:$28 sps:$4 sm:$0xff]  }
 0x199   :  { %3345 = vmatpush1.bf16.msra.mxu0 %v10195_v20  ;;  %v10335_v20 = vld [vmem:[#allocation6 + $0x4] ss:$28 sps:$4 sm:$0xff]  }
 0x19a   :  { %3346 = vmatprep.subr.bf16.mxu0 %v10200_v21  ;;  %v10260_v21 = vld [vmem:[#allocation2 + $0x588] ss:$28 sps:$4 sm:$0xff]  }
 0x19b   :  { %9427 = vmatpush3.bf16.msra.mxu1 %v10264_v22  ;;  %v10333_v22 = vld [vmem:[#allocation6] ss:$28 sps:$4 sm:$0xff]  }
 0x19c   :  { %9428 = vmatprep.subr.bf16.mxu1 %v10268_v23  ;;  %v10341_v23 = vld [vmem:[#allocation6 + $0x3c] ss:$28 sps:$4 sm:$0xff]  }
 0x19d   :  { %3347 = vmatpush1.bf16.msra.mxu0 %v10198_v25  ;;  %v10267_v25 = vld [vmem:[#allocation2 + $0x5c4] ss:$28 sps:$4 sm:$0xff]  }
 0x19e   :  { %3348 = vmatprep.subr.bf16.mxu0 %v10203_v26  ;;  %v10265_v26 = vld [vmem:[#allocation2 + $0x5c0] ss:$28 sps:$4 sm:$0xff]  }
 0x19f   :  { %9429 = vmatpush3.bf16.msra.mxu1 %v10269_v28  ;;  %v10339_v28 = vld [vmem:[#allocation6 + $0x38] ss:$28 sps:$4 sm:$0xff]  }
 0x1a0   :  { %9430 = vmatprep.subr.bf16.mxu1 %v10273_v29  ;;  %v10347_v29 = vld [vmem:[#allocation6 + $0x74] ss:$28 sps:$4 sm:$0xff]  }
 0x1a1   :  { %3349 = vmatpush1.bf16.msra.mxu0 %v10201_v31  ;;  %v10272_v31 = vld [vmem:[#allocation2 + $0x5fc] ss:$28 sps:$4 sm:$0xff]  }
 0x1a2   :  { %3350 = vmatprep.subr.bf16.mxu0 %v10206_v32  ;;  %v10270_v32 = vld [vmem:[#allocation2 + $0x5f8] ss:$28 sps:$4 sm:$0xff]  }
 0x1a3   :  { %9431 = vmatpush3.bf16.msra.mxu1 %v10274_v33  ;;  %v10345_v33 = vld [vmem:[#allocation6 + $0x70] ss:$28 sps:$4 sm:$0xff]  }
 0x1a4   :  { %9432 = vmatprep.subr.bf16.mxu1 %v10278_v34  ;;  %v10353_v34 = vld [vmem:[#allocation6 + $0xac] ss:$28 sps:$4 sm:$0xff]  }
 0x1a5   :  { %3351 = vmatpush1.bf16.msra.mxu0 %v10204_v35  ;;  %v10277_v35 = vld [vmem:[#allocation2 + $0x634] ss:$28 sps:$4 sm:$0xff]  }
 0x1a6   :  { %3352 = vmatprep.subr.bf16.mxu0 %v10209_v37  ;;  %v10275_v37 = vld [vmem:[#allocation2 + $0x630] ss:$28 sps:$4 sm:$0xff]  }
 0x1a7   :  { %9433 = vmatpush3.bf16.msra.mxu1 %v10279_v38  ;;  %v10351_v38 = vld [vmem:[#allocation6 + $0xa8] ss:$28 sps:$4 sm:$0xff]  }
 0x1a8   :  { %9434 = vmatprep.subr.bf16.mxu1 %v10283_v40  ;;  %v10359_v40 = vld [vmem:[#allocation6 + $0xe4] ss:$28 sps:$4 sm:$0xff]  }
 0x1a9   :  { %3353 = vmatpush1.bf16.msra.mxu0 %v10207_v41  ;;  %v10282_v41 = vld [vmem:[#allocation2 + $0x66c] ss:$28 sps:$4 sm:$0xff]  }
 0x1aa   :  { %3354 = vmatprep.subr.bf16.mxu0 %v10212_v42  ;;  %v10280_v42 = vld [vmem:[#allocation2 + $0x668] ss:$28 sps:$4 sm:$0xff]  }
 0x1ab   :  { %9435 = vmatpush3.bf16.msra.mxu1 %v10284_v43  ;;  %v10357_v43 = vld [vmem:[#allocation6 + $0xe0] ss:$28 sps:$4 sm:$0xff]  }
 0x1ac   :  { %9436 = vmatprep.subr.bf16.mxu1 %v10288_v44  ;;  %v10365_v44 = vld [vmem:[#allocation6 + $0x11c] ss:$28 sps:$4 sm:$0xff]  }
 0x1ad   :  { %3355 = vmatpush1.bf16.msra.mxu0 %v10210_v45  ;;  %v10287_v45 = vld [vmem:[#allocation2 + $0x6a4] ss:$28 sps:$4 sm:$0xff]  }
 0x1ae   :  { %3367 = vmatprep.subr.bf16.mxu0 %v10217_v46  ;;  %v10285_v46 = vld [vmem:[#allocation2 + $0x6a0] ss:$28 sps:$4 sm:$0xff]  }
 0x1af   :  { %9437 = vmatpush3.bf16.msra.mxu1 %v10289_v47  ;;  %v10363_v47 = vld [vmem:[#allocation6 + $0x118] ss:$28 sps:$4 sm:$0xff]  }
 0x1b0   :  { %3357 = vmatmul.mubr.bf16.vlgmr.msra.gmra.mrb[4].mxu0 %v11487_v6  ;;  %9444 = vmatprep.subr.bf16.mxu1 %v10293_v48  ;;  %v10371_v48 = vld [vmem:[#allocation6 + $0x154] ss:$28 sps:$4 sm:$0xff]  }
 0x1b1   :  { %3368 = vmatpush1.bf16.msra.mxu0 %v10215_v49  ;;  %3399 = vmatprep.mubr.bf16.mxu0 %v11497_v36  ;;  %v10237_v36 = vld [vmem:[#allocation2 + $0x474] ss:$28 sps:$4 sm:$0xff]   ;;  %v10292_v49 = vld [vmem:[#allocation2 + $0x6dc] ss:$28 sps:$4 sm:$0xff]  }
 0x1b2   :  { %3369 = vmatprep.subr.bf16.mxu0 %v10222_v51  ;;  %3611 = vmatmul.mubr.bf16.vlgmr.msra.gmra.mrb[8].mxu1 %v11533_v27  ;;  %v10290_v51 = vld [vmem:[#allocation2 + $0x6d8] ss:$28 sps:$4 sm:$0xff]  }
 0x1b3   :  { %9445 = vmatpush3.bf16.msra.mxu1 %v10294_v52  ;;  %3651 = vmatprep.mubr.bf16.mxu1 %v11535_v30  ;;  %v10369_v52 = vld [vmem:[#allocation6 + $0x150] ss:$28 sps:$4 sm:$0xff]  }
 0x1b4   :  { %9446 = vmatprep.subr.bf16.mxu1 %v10298_v53  ;;  %v10377_v53 = vld [vmem:[#allocation6 + $0x18c] ss:$28 sps:$4 sm:$0xff]  }
 0x1b5   :  { %3370 = vmatpush1.bf16.msra.mxu0 %v10220_v54  ;;  %v10297_v54 = vld [vmem:[#allocation2 + $0x714] ss:$28 sps:$4 sm:$0xff]  }
 0x1b6   :  { %3371 = vmatprep.subr.bf16.mxu0 %v10227_v55  ;;  %v10295_v55 = vld [vmem:[#allocation2 + $0x710] ss:$28 sps:$4 sm:$0xff]  }
 0x1b7   :  { %9447 = vmatpush3.bf16.msra.mxu1 %v10299_v56  ;;  %v10375_v56 = vld [vmem:[#allocation6 + $0x188] ss:$28 sps:$4 sm:$0xff]  }
 0x1b8   :  { %9448 = vmatprep.subr.bf16.mxu1 %v10303_v57  ;;  %v10383_v57 = vld [vmem:[#allocation6 + $0x1c4] ss:$28 sps:$4 sm:$0xff]  }
 0x1b9   :  { %3372 = vmatpush1.bf16.msra.mxu0 %v10225_v58  ;;  %v10302_v58 = vld [vmem:[#allocation2 + $0x74c] ss:$28 sps:$4 sm:$0xff]  }
 0x1ba   :  { %3373 = vmatprep.subr.bf16.mxu0 %v10232_v59  ;;  %v10381_v59 = vld [vmem:[#allocation6 + $0x1c0] ss:$28 sps:$4 sm:$0xff]  }
 0x1bb   :  { %9449 = vmatpush3.bf16.msra.mxu1 %v10304_v60  ;;  %v10300_v60 = vld [vmem:[#allocation2 + $0x748] ss:$28 sps:$4 sm:$0xff]  }
 0x1bc   :  { %9450 = vmatprep.subr.bf16.mxu1 %v10308_v61  ;;  %v10389_v61 = vld [vmem:[#allocation6 + $0x1fc] ss:$28 sps:$4 sm:$0xff]  }
 0x1bd   :  { %3374 = vmatpush1.bf16.msra.mxu0 %v10230_v62  ;;  %v10307_v62 = vld [vmem:[#allocation2 + $0x784] ss:$28 sps:$4 sm:$0xff]  }
 0x1be   :  { %3375 = vmatprep.subr.bf16.mxu0 %v10237_v36  ;;  %v10305_v36 = vld [vmem:[#allocation2 + $0x780] ss:$28 sps:$4 sm:$0xff]  }
 0x1bf   :  { %9451 = vmatpush3.bf16.msra.mxu1 %v10309_v63  ;;  %v10387_v63 = vld [vmem:[#allocation6 + $0x1f8] ss:$28 sps:$4 sm:$0xff]  }
 0x1c0   :  { %9452 = vmatprep.subr.bf16.mxu1 %v10313_v0  ;;  %v10395_v0 = vld [vmem:[#allocation6 + $0x234] ss:$28 sps:$4 sm:$0xff]  }
 0x1c1   :  { %3376 = vmatpush1.bf16.msra.mxu0 %v10235_v1  ;;  %v10312_v1 = vld [vmem:[#allocation2 + $0x7bc] ss:$28 sps:$4 sm:$0xff]  }
 0x1c2   :  { %3377 = vmatprep.subr.bf16.mxu0 %v10242_v2  ;;  %v10310_v2 = vld [vmem:[#allocation2 + $0x7b8] ss:$28 sps:$4 sm:$0xff]  }
 0x1c3   :  { %9453 = vmatpush3.bf16.msra.mxu1 %v10314_v3  ;;  %v10393_v3 = vld [vmem:[#allocation6 + $0x230] ss:$28 sps:$4 sm:$0xff]  }
 0x1c4   :  { %9454 = vmatprep.subr.bf16.mxu1 %v10318_v4  ;;  %v10317_v4 = vld [vmem:[#allocation2 + $0x7f4] ss:$28 sps:$4 sm:$0xff]  }
 0x1c5   :  { %3378 = vmatpush1.bf16.msra.mxu0 %v10240_v5  ;;  %v10315_v5 = vld [vmem:[#allocation2 + $0x7f0] ss:$28 sps:$4 sm:$0xff]  }
 0x1c6   :  { %3379 = vmatprep.subr.bf16.mxu0 %v10247_v7  ;;  %v10407_v7 = vld [vmem:[#allocation6 + $0x2a4] ss:$28 sps:$4 sm:$0xff]  }
 0x1c7   :  { %9455 = vmatpush3.bf16.msra.mxu1 %v10319_v9  ;;  %v10320_v9 = vld [vmem:[#allocation2 + $0x828] ss:$28 sps:$4 sm:$0xff]  }
 0x1c8   :  { %9456 = vmatprep.subr.bf16.mxu1 %v10323_v10  ;;  %v10405_v10 = vld [vmem:[#allocation6 + $0x2a0] ss:$28 sps:$4 sm:$0xff]  }
 0x1c9   :  { %3380 = vmatpush1.bf16.msra.mxu0 %v10245_v8  ;;  %v10322_v8 = vld [vmem:[#allocation2 + $0x82c] ss:$28 sps:$4 sm:$0xff]  }
 0x1ca   :  { %3381 = vmatprep.subr.bf16.mxu0 %v10252_v11  ;;  %v10413_v11 = vld [vmem:[#allocation6 + $0x2dc] ss:$28 sps:$4 sm:$0xff]  }
 0x1cb   :  { %9457 = vmatpush3.bf16.msra.mxu1 %v10324_v13  ;;  %v10325_v13 = vld [vmem:[#allocation2 + $0x860] ss:$28 sps:$4 sm:$0xff]  }
 0x1cc   :  { %9458 = vmatprep.subr.bf16.mxu1 %v10328_v15  ;;  %v10411_v15 = vld [vmem:[#allocation6 + $0x2d8] ss:$28 sps:$4 sm:$0xff]  }
 0x1cd   :  { %3382 = vmatpush1.bf16.msra.mxu0 %v10250_v12  ;;  %v10327_v12 = vld [vmem:[#allocation2 + $0x864] ss:$28 sps:$4 sm:$0xff]  }
 0x1ce   :  { %3383 = vmatprep.subr.bf16.mxu0 %v10257_v16  ;;  %v10419_v16 = vld [vmem:[#allocation6 + $0x314] ss:$28 sps:$4 sm:$0xff]  }
 0x1cf   :  { %9459 = vmatpush3.bf16.msra.mxu1 %v10329_v18  ;;  %v10330_v18 = vld [vmem:[#allocation2 + $0x898] ss:$28 sps:$4 sm:$0xff]  }
 0x1d0   :  { %6182 = vmatprep.subr.bf16.mxu1 %v10335_v20  ;;  %v10425_v20 = vld [vmem:[#allocation6 + $0x34c] ss:$28 sps:$4 sm:$0xff]  }
 0x1d1   :  { %3384 = vmatpush1.bf16.msra.mxu0 %v10255_v17  ;;  %v10332_v17 = vld [vmem:[#allocation2 + $0x89c] ss:$28 sps:$4 sm:$0xff]  }
 0x1d2   :  { %3385 = vmatprep.subr.bf16.mxu0 %v10262_v19  ;;  %3652 = vmatmul.mubr.bf16.vlgmr.msra.gmra.mrb[12].mxu1 %v11547_v39  ;;  %v10417_v19 = vld [vmem:[#allocation6 + $0x310] ss:$28 sps:$4 sm:$0xff]  }
 0x1d3   :  { %6183 = vmatpush1.bf16.msra.mxu1 %v10333_v22  ;;  %v10336_v22 = vld [vmem:[#allocation2 + $0x8d0] ss:$28 sps:$4 sm:$0xff]  }
 0x1d4   :  { %6184 = vmatprep.subr.bf16.mxu1 %v10341_v23  ;;  %v10423_v23 = vld [vmem:[#allocation6 + $0x348] ss:$28 sps:$4 sm:$0xff]  }
 0x1d5   :  { %3386 = vmatpush1.bf16.msra.mxu0 %v10260_v21  ;;  %v10338_v21 = vld [vmem:[#allocation2 + $0x8d4] ss:$28 sps:$4 sm:$0xff]  }
 0x1d6   :  { %3387 = vmatprep.subr.bf16.mxu0 %v10267_v25  ;;  %v10431_v25 = vld [vmem:[#allocation6 + $0x384] ss:$28 sps:$4 sm:$0xff]  }
 0x1d7   :  { %6185 = vmatpush1.bf16.msra.mxu1 %v10339_v28  ;;  %v10342_v28 = vld [vmem:[#allocation2 + $0x908] ss:$28 sps:$4 sm:$0xff]  }
 0x1d8   :  { %6186 = vmatprep.subr.bf16.mxu1 %v10347_v29  ;;  %v10350_v29 = vld [vmem:[#allocation2 + $0x944] ss:$28 sps:$4 sm:$0xff]  }
 0x1d9   :  { %3388 = vmatpush1.bf16.msra.mxu0 %v10265_v26  ;;  %v10344_v26 = vld [vmem:[#allocation2 + $0x90c] ss:$28 sps:$4 sm:$0xff]  }
 0x1da   :  { %3389 = vmatprep.subr.bf16.mxu0 %v10272_v31  ;;  %v10348_v31 = vld [vmem:[#allocation2 + $0x940] ss:$28 sps:$4 sm:$0xff]  }
 0x1db   :  { %6187 = vmatpush1.bf16.msra.mxu1 %v10345_v33  ;;  %v10354_v33 = vld [vmem:[#allocation2 + $0x978] ss:$28 sps:$4 sm:$0xff]  }
 0x1dc   :  { %6188 = vmatprep.subr.bf16.mxu1 %v10353_v34  ;;  %v10362_v34 = vld [vmem:[#allocation2 + $0x9b4] ss:$28 sps:$4 sm:$0xff]  }
 0x1dd   :  { %3390 = vmatpush1.bf16.msra.mxu0 %v10270_v32  ;;  %v10356_v32 = vld [vmem:[#allocation2 + $0x97c] ss:$28 sps:$4 sm:$0xff]  }
 0x1de   :  { %3391 = vmatprep.subr.bf16.mxu0 %v10277_v35  ;;  %v10360_v35 = vld [vmem:[#allocation2 + $0x9b0] ss:$28 sps:$4 sm:$0xff]  }
 0x1df   :  { %6189 = vmatpush1.bf16.msra.mxu1 %v10351_v38  ;;  %v10366_v38 = vld [vmem:[#allocation2 + $0x9e8] ss:$28 sps:$4 sm:$0xff]  }
 0x1e0   :  { %6190 = vmatprep.subr.bf16.mxu1 %v10359_v40  ;;  %v10374_v40 = vld [vmem:[#allocation2 + $0xa24] ss:$28 sps:$4 sm:$0xff]  }
 0x1e1   :  { %3392 = vmatpush1.bf16.msra.mxu0 %v10275_v37  ;;  %v10368_v37 = vld [vmem:[#allocation2 + $0x9ec] ss:$28 sps:$4 sm:$0xff]  }
 0x1e2   :  { %3393 = vmatprep.subr.bf16.mxu0 %v10282_v41  ;;  %v10372_v41 = vld [vmem:[#allocation2 + $0xa20] ss:$28 sps:$4 sm:$0xff]  }
 0x1e3   :  { %6191 = vmatpush1.bf16.msra.mxu1 %v10357_v43  ;;  %v10378_v43 = vld [vmem:[#allocation2 + $0xa58] ss:$28 sps:$4 sm:$0xff]  }
 0x1e4   :  { %6192 = vmatprep.subr.bf16.mxu1 %v10365_v44  ;;  %v10386_v44 = vld [vmem:[#allocation2 + $0xa94] ss:$28 sps:$4 sm:$0xff]  }
 0x1e5   :  { %3394 = vmatpush1.bf16.msra.mxu0 %v10280_v42  ;;  %v10380_v42 = vld [vmem:[#allocation2 + $0xa5c] ss:$28 sps:$4 sm:$0xff]  }
 0x1e6   :  { %3395 = vmatprep.subr.bf16.mxu0 %v10287_v45  ;;  %v10384_v45 = vld [vmem:[#allocation2 + $0xa90] ss:$28 sps:$4 sm:$0xff]  }
 0x1e7   :  { %6193 = vmatpush1.bf16.msra.mxu1 %v10363_v47  ;;  %v10390_v47 = vld [vmem:[#allocation2 + $0xac8] ss:$28 sps:$4 sm:$0xff]  }
 0x1e8   :  { %6194 = vmatprep.subr.bf16.mxu1 %v10371_v48  ;;  %v10398_v48 = vld [vmem:[#allocation2 + $0xb04] ss:$28 sps:$4 sm:$0xff]  }
 0x1e9   :  { %3396 = vmatpush1.bf16.msra.mxu0 %v10285_v46  ;;  %v10392_v46 = vld [vmem:[#allocation2 + $0xacc] ss:$28 sps:$4 sm:$0xff]  }
 0x1ea   :  { %3397 = vmatprep.subr.bf16.mxu0 %v10292_v49  ;;  %v641_v49 = vlaneseq }
 0x1eb   :  { %6195 = vmatpush1.bf16.msra.mxu1 %v10369_v52  ;;  %v10404_v52 = vld [vmem:[#allocation2 + $0xb3c] ss:$28 sps:$4 sm:$0xff]  }
 0x1ec   :  { %6196 = vmatprep.subr.bf16.mxu1 %v10377_v53  ;;  %v11564_v53 = vshrl.u32 %v641_v49, 7  ;;  %v10444_v49 = vld [vmem:[#allocation2 + $0xcc0] ss:$28 sps:$4 sm:$0xff]  }
 0x1ed   :  { %3398 = vmatpush1.bf16.msra.mxu0 %v10290_v51  ;;  %v10396_v51 = vld [vmem:[#allocation2 + $0xb00] ss:$28 sps:$4 sm:$0xff]  }
 0x1ee   :  { %3410 = vmatprep.subr.bf16.mxu0 %v10297_v54  ;;  %v10402_v54 = vld [vmem:[#allocation2 + $0xb38] ss:$28 sps:$4 sm:$0xff]  }
 0x1ef   :  { %6197 = vmatpush1.bf16.msra.mxu1 %v10375_v56  ;;  %v10408_v56 = vld [vmem:[#allocation2 + $0xb70] ss:$28 sps:$4 sm:$0xff]  }
 0x1f0   :  { %3400 = vmatmul.mubr.bf16.vlgmr.msra.gmra.mrb[4].mxu0 %v11507_v14  ;;  %6198 = vmatprep.subr.bf16.mxu1 %v10383_v57  ;;  %v10401_v14 = vld [vmem:[#allocation6 + $0x26c] ss:$28 sps:$4 sm:$0xff]   ;;  %v639_v57 = vld [vmem:[#allocation4] sm:$0xff] }
 0x1f1   :  { %3411 = vmatpush1.bf16.msra.mxu0 %v10295_v55  ;;  %3442 = vmatprep.mubr.bf16.mxu0 %v11517_v24  ;;  %v10399_v24 = vld [vmem:[#allocation6 + $0x268] ss:$28 sps:$4 sm:$0xff]  }
 0x1f2   :  { %3412 = vmatprep.subr.bf16.mxu0 %v10302_v58  ;;  %v10410_v55 = vld [vmem:[#allocation2 + $0xb74] ss:$28 sps:$4 sm:$0xff]   ;;  %v10416_v58 = vld [vmem:[#allocation2 + $0xbac] ss:$28 sps:$4 sm:$0xff]  }
 0x1f3   :  { %6199 = vmatpush1.bf16.msra.mxu1 %v10381_v59  ;;  %v11573_v59 = vsub.s32 2, %v11564_v53 }
 0x1f4   :  { %6200 = vmatprep.subr.bf16.mxu1 %v10389_v61 }
 0x1f5   :  { %3413 = vmatpush1.bf16.msra.mxu0 %v10300_v60  ;;  %v655_v60 = vsub.s32 3, %v11564_v53 }
 0x1f6   :  { %3414 = vmatprep.subr.bf16.mxu0 %v10307_v62 }
 0x1f7   :  { %6201 = vmatpush1.bf16.msra.mxu1 %v10387_v63  ;;  %v10422_v63 = vld [vmem:[#allocation2 + $0xbe4] ss:$28 sps:$4 sm:$0xff]  }
 0x1f8   :  { %6202 = vmatprep.subr.bf16.mxu1 %v10395_v0  ;;  %v652_v0 = vrot.slane %v639_v57, %v11573_v59 }
 0x1f9   :  { %3415 = vmatpush1.bf16.msra.mxu0 %v10305_v36  ;;  %v10414_v36 = vld [vmem:[#allocation2 + $0xba8] ss:$28 sps:$4 sm:$0xff]  }
 0x1fa   :  { %3416 = vmatprep.subr.bf16.mxu0 %v10312_v1 }
 0x1fb   :  { %6203 = vmatpush1.bf16.msra.mxu1 %v10393_v3 }
 0x1fc   :  { %6204 = vmatprep.subr.bf16.mxu1 %v10401_v14 }
 0x1fd   :  { %3417 = vmatpush1.bf16.msra.mxu0 %v10310_v2  ;;  %v656_v2 = vrot.slane %v639_v57, %v655_v60 }
 0x1fe   :  { %3418 = vmatprep.subr.bf16.mxu0 %v10317_v4 }
 0x1ff   :  { %6205 = vmatpush1.bf16.msra.mxu1 %v10399_v24 }
 0x200   :  { %6206 = vmatprep.subr.bf16.mxu1 %v10407_v7  ;;  %v10420_v7 = vld [vmem:[#allocation2 + $0xbe0] ss:$28 sps:$4 sm:$0xff]  }
 0x201   :  { %3419 = vmatpush1.bf16.msra.mxu0 %v10315_v5 }
 0x202   :  { %3420 = vmatprep.subr.bf16.mxu0 %v10322_v8  ;;  %v10428_v8 = vld [vmem:[#allocation2 + $0xc1c] ss:$28 sps:$4 sm:$0xff]  }
 0x203   :  { %6207 = vmatpush1.bf16.msra.mxu1 %v10405_v10 }
 0x204   :  { %6208 = vmatprep.subr.bf16.mxu1 %v10413_v11 }
 0x205   :  { %3421 = vmatpush1.bf16.msra.mxu0 %v10320_v9 }
 0x206   :  { %3422 = vmatprep.subr.bf16.mxu0 %v10327_v12 }
 0x207   :  { %6209 = vmatpush1.bf16.msra.mxu1 %v10411_v15 }
 0x208   :  { %6210 = vmatprep.subr.bf16.mxu1 %v10419_v16 }
 0x209   :  { %3423 = vmatpush1.bf16.msra.mxu0 %v10325_v13 }
 0x20a   :  { %3424 = vmatprep.subr.bf16.mxu0 %v10332_v17 }
 0x20b   :  { %6211 = vmatpush1.bf16.msra.mxu1 %v10417_v19 }
 0x20c   :  { %6212 = vmatprep.subr.bf16.mxu1 %v10425_v20 }
 0x20d   :  { %3425 = vmatpush1.bf16.msra.mxu0 %v10330_v18  ;;  %v10426_v18 = vld [vmem:[#allocation2 + $0xc18] ss:$28 sps:$4 sm:$0xff]  }
 0x20e   :  { %3426 = vmatprep.subr.bf16.mxu0 %v10338_v21 }
 0x20f   :  { %6213 = vmatpush1.bf16.msra.mxu1 %v10423_v23 }
 0x210   :  { %6225 = vmatprep.subr.bf16.mxu1 %v10431_v25 }
 0x211   :  { %3427 = vmatpush1.bf16.msra.mxu0 %v10336_v22 }
 0x212   :  { %3428 = vmatprep.subr.bf16.mxu0 %v10344_v26 }
 0x215   :  { %3429 = vmatpush1.bf16.msra.mxu0 %v10342_v28 }
 0x216   :  { %3430 = vmatprep.subr.bf16.mxu0 %v10350_v29  ;;  %v10429_v29 = vld [vmem:[#allocation6 + $0x380] ss:$28 sps:$4 sm:$0xff]  }
 0x219   :  { %3431 = vmatpush1.bf16.msra.mxu0 %v10348_v31  ;;  %v10434_v31 = vld [vmem:[#allocation2 + $0xc54] ss:$28 sps:$4 sm:$0xff]  }
 0x21a   :  { %3432 = vmatprep.subr.bf16.mxu0 %v10356_v32 }
 0x21d   :  { %3433 = vmatpush1.bf16.msra.mxu0 %v10354_v33 }
 0x21e   :  { %3434 = vmatprep.subr.bf16.mxu0 %v10362_v34  ;;  %v10437_v34 = vld [vmem:[#allocation6 + $0x3bc] ss:$28 sps:$4 sm:$0xff]  }
 0x221   :  { %3435 = vmatpush1.bf16.msra.mxu0 %v10360_v35 }
 0x222   :  { %3436 = vmatprep.subr.bf16.mxu0 %v10368_v37 }
 0x225   :  { %3437 = vmatpush1.bf16.msra.mxu0 %v10366_v38  ;;  %v10432_v38 = vld [vmem:[#allocation2 + $0xc50] ss:$28 sps:$4 sm:$0xff]  }
 0x226   :  { %3438 = vmatprep.subr.bf16.mxu0 %v10374_v40 }
 0x229   :  { %3439 = vmatpush1.bf16.msra.mxu0 %v10372_v41  ;;  %v10440_v41 = vld [vmem:[#allocation2 + $0xc8c] ss:$28 sps:$4 sm:$0xff]  }
 0x22a   :  { %3440 = vmatprep.subr.bf16.mxu0 %v10380_v42 }
 0x22d   :  { %3441 = vmatpush1.bf16.msra.mxu0 %v10378_v43  ;;  %v10435_v43 = vld [vmem:[#allocation6 + $0x3b8] ss:$28 sps:$4 sm:$0xff]  }
 0x22e   :  { %3453 = vmatprep.subr.bf16.mxu0 %v10386_v44  ;;  %v10438_v44 = vld [vmem:[#allocation2 + $0xc88] ss:$28 sps:$4 sm:$0xff]  }
 0x230   :  { %3443 = vmatmul.mubr.bf16.vlgmr.msra.gmra.mrb[4].mxu0 %v11533_v27  ;;  %v11567_v27 = vsub.s32 0, %v11564_v53 }
 0x231   :  { %3454 = vmatpush1.bf16.msra.mxu0 %v10384_v45  ;;  %3485 = vmatprep.mubr.bf16.mxu0 %v11535_v30  ;;  %v11570_v30 = vsub.s32 1, %v11564_v53  ;;  %v10443_v45 = vld [vmem:[#allocation6 + $0x3f4] ss:$28 sps:$4 sm:$0xff]  }
 0x232   :  { %3455 = vmatprep.subr.bf16.mxu0 %v10392_v46  ;;  %v644_v61 = vrot.slane %v639_v57, %v11567_v27  ;;  %v10441_v46 = vld [vmem:[#allocation6 + $0x3f0] ss:$28 sps:$4 sm:$0xff]  }
 0x233   :  { %v648_v62 = vrot.slane %v639_v57, %v11570_v30  ;;  %v10458_v57 = vld [vmem:[#allocation2 + $0xd34] ss:$28 sps:$4 sm:$0xff]  }
 0x235   :  { %3456 = vmatpush1.bf16.msra.mxu0 %v10390_v47  ;;  %v10446_v47 = vld [vmem:[#allocation2 + $0xcc4] ss:$28 sps:$4 sm:$0xff]  }
 0x236   :  { %3457 = vmatprep.subr.bf16.mxu0 %v10398_v48  ;;  %v10449_v48 = vld [vmem:[#allocation6 + $0x42c] ss:$28 sps:$4 sm:$0xff]  }
 0x239   :  { %3458 = vmatpush1.bf16.msra.mxu0 %v10396_v51  ;;  %v10447_v51 = vld [vmem:[#allocation6 + $0x428] ss:$28 sps:$4 sm:$0xff]  }
 0x23a   :  { %3459 = vmatprep.subr.bf16.mxu0 %v10404_v52  ;;  %v10452_v52 = vld [vmem:[#allocation2 + $0xcfc] ss:$28 sps:$4 sm:$0xff]  }
 0x23d   :  { %3460 = vmatpush1.bf16.msra.mxu0 %v10402_v54  ;;  %v10455_v54 = vld [vmem:[#allocation6 + $0x464] ss:$28 sps:$4 sm:$0xff]  }
 0x23e   :  { %3461 = vmatprep.subr.bf16.mxu0 %v10410_v55  ;;  %v10450_v55 = vld [vmem:[#allocation2 + $0xcf8] ss:$28 sps:$4 sm:$0xff]  }
 0x241   :  { %3462 = vmatpush1.bf16.msra.mxu0 %v10408_v56  ;;  %v10453_v56 = vld [vmem:[#allocation6 + $0x460] ss:$28 sps:$4 sm:$0xff]  }
 0x242   :  { %3463 = vmatprep.subr.bf16.mxu0 %v10416_v58  ;;  %v10461_v58 = vld [vmem:[#allocation6 + $0x49c] ss:$28 sps:$4 sm:$0xff]  }
 0x243   :  { %v3143_v1 = vpop.f32.mrb[0].mxu0 }
 0x244   :  { %v9656_v3 = vadd.f32 %v3143_v1, %v644_v61  ;;  %v3145_v14 = vpop.f32.mrb[1].mxu0  ;;  %v10465_v1 = vld [vmem:[#allocation6 + $0x4d0] ss:$28 sps:$4 sm:$0xff]  }
 0x245   :  { %v9657_v4 = vadd.f32 %v3145_v14, %v648_v62  ;;  %v3147_v5 = vpop.f32.mrb[2].mxu0  ;;  %v3315_v24 = vpop.f32.mrb[0].mxu1  ;;  %3464 = vmatpush1.bf16.msra.mxu0 %v10414_v36  ;;  %v10464_v36 = vld [vmem:[#allocation2 + $0xd6c] ss:$28 sps:$4 sm:$0xff]   ;;  %v10468_v14 = vld [vmem:[#allocation2 + $0xda0] ss:$28 sps:$4 sm:$0xff]  }
 0x246   :  { %v9658_v9 = vadd.f32 %v3147_v5, %v644_v61  ;;  %v9660_v10 = vadd.f32 %v3315_v24, %v652_v0  ;;  %v3149_v11 = vpop.f32.mrb[3].mxu0  ;;  %v3317_v12 = vpop.f32.mrb[1].mxu1  ;;  %3465 = vmatprep.subr.bf16.mxu0 %v10422_v63  ;;  %v3660_v13 = vmax.f32 %v9656_v3, 0.0  ;;  %v10456_v61 = vld [vmem:[#allocation2 + $0xd30] ss:$28 sps:$4 sm:$0xff]  }
 0x247   :  { %v9659_v15 = vadd.f32 %v3149_v11, %v648_v62  ;;  %v9661_v16 = vadd.f32 %v3317_v12, %v656_v2  ;;  %v3319_v17 = vpop.f32.mrb[2].mxu1  ;;  %v3661_v23 = vmax.f32 %v9657_v4, 0.0  ;;  %v10459_v62 = vld [vmem:[#allocation6 + $0x498] ss:$28 sps:$4 sm:$0xff]   ;;  %v10473_v3 = vld [vmem:[#allocation6 + $0x50c] ss:$28 sps:$4 sm:$0xff]  }
 0x248   :  { %v3667_v19 = vmax.f32 %v9658_v9, 0.0  ;;  %v3662_v20 = vmax.f32 %v9660_v10, 0.0  ;;  %v9662_v21 = vadd.f32 %v3319_v17, %v652_v0  ;;  %v3321_v22 = vpop.f32.mrb[3].mxu1  ;;  %v10467_v63 = vld [vmem:[#allocation6 + $0x4d4] ss:$28 sps:$4 sm:$0xff]  }
 0x249   :  { %v3668_v25 = vmax.f32 %v9659_v15, 0.0  ;;  %v3663_v26 = vmax.f32 %v9661_v16, 0.0  ;;  %v9663_v28 = vadd.f32 %v3321_v22, %v656_v2  ;;  %3466 = vmatpush1.bf16.msra.mxu0 %v10420_v7  ;;  %v10462_v0 = vld [vmem:[#allocation2 + $0xd68] ss:$28 sps:$4 sm:$0xff]   ;;  %v10471_v4 = vld [vmem:[#allocation6 + $0x508] ss:$28 sps:$4 sm:$0xff]  }
 0x24a   :  { %v11581_v32 = vpack.c.bf16 %v3667_v19, %v3660_v13  ;;  %v3669_v33 = vmax.f32 %v9662_v21, 0.0  ;;  %3467 = vmatprep.subr.bf16.mxu0 %v10428_v8  ;;  %v10470_v2 = vld [vmem:[#allocation2 + $0xda4] ss:$28 sps:$4 sm:$0xff]   ;;  %v10476_v5 = vld [vmem:[#allocation2 + $0xddc] ss:$28 sps:$4 sm:$0xff]  }
 0x24b   :  { %v11583_v35 = vpack.c.bf16 %v3668_v25, %v3661_v23  ;;  %v3670_v37 = vmax.f32 %v9663_v28, 0.0  ;;  %v10479_v24 = vld [vmem:[#allocation6 + $0x544] ss:$28 sps:$4 sm:$0xff]   ;;  %v10474_v7 = vld [vmem:[#allocation2 + $0xdd8] ss:$28 sps:$4 sm:$0xff]  }
 0x24c   :  { %v11585_v40 = vpack.c.bf16 %v3669_v33, %v3662_v20  ;;  %v10477_v8 = vld [vmem:[#allocation6 + $0x540] ss:$28 sps:$4 sm:$0xff]   ;;  %v10480_v9 = vld [vmem:[#allocation2 + $0x1d8] ss:$28 sps:$4 sm:$0xff]   ;;  %v10482_v12 = vld [vmem:[#allocation6 + $0x578] ss:$28 sps:$4 sm:$0xff]  }
 0x24d   :  { %v11587_v42 = vpack.c.bf16 %v3670_v37, %v3663_v26  ;;  %3468 = vmatpush1.bf16.msra.mxu0 %v10426_v18  ;;  %6214 = vmatprep.mubr.bf16.mxu1 %v11583_v35  ;;  %v10484_v10 = vld [vmem:[#allocation6 + $0x57c] ss:$28 sps:$4 sm:$0xff]   ;;  %v10481_v11 = vld [vmem:[#allocation2 + $0x18] ss:$28 sps:$4 sm:$0xff]   ;;  %v10485_v13 = vld [vmem:[#allocation2 + $0x210] ss:$28 sps:$4 sm:$0xff]  }
 0x24e   :  { %6215 = vmatmul.mubr.bf16.vlgmr.msra.gmra.mrb[16].mxu1 %v11581_v32  ;;  %3469 = vmatprep.subr.bf16.mxu0 %v10434_v31  ;;  %v10489_v15 = vld [vmem:[#allocation6 + $0x5b4] ss:$28 sps:$4 sm:$0xff]   ;;  %v10486_v16 = vld [vmem:[#allocation2 + $0x50] ss:$28 sps:$4 sm:$0xff]   ;;  %v10490_v18 = vld [vmem:[#allocation2 + $0x248] ss:$28 sps:$4 sm:$0xff]  }
 0x24f   :  { %6226 = vmatpush1.bf16.msra.mxu1 %v10429_v29  ;;  %6257 = vmatprep.mubr.bf16.mxu1 %v11587_v42  ;;  %v10487_v17 = vld [vmem:[#allocation6 + $0x5b0] ss:$28 sps:$4 sm:$0xff]   ;;  %v10491_v20 = vld [vmem:[#allocation2 + $0x88] ss:$28 sps:$4 sm:$0xff]   ;;  %v10492_v21 = vld [vmem:[#allocation6 + $0x5e8] ss:$28 sps:$4 sm:$0xff]  }
 0x250   :  { %6227 = vmatprep.subr.bf16.mxu1 %v10437_v34  ;;  %v10494_v19 = vld [vmem:[#allocation6 + $0x5ec] ss:$28 sps:$4 sm:$0xff]   ;;  %v10495_v22 = vld [vmem:[#allocation2 + $0x280] ss:$28 sps:$4 sm:$0xff]   ;;  %v10499_v23 = vld [vmem:[#allocation6 + $0x624] ss:$28 sps:$4 sm:$0xff]  }
 0x251   :  { %3470 = vmatpush1.bf16.msra.mxu0 %v10432_v38  ;;  %v10496_v25 = vld [vmem:[#allocation2 + $0xc0] ss:$28 sps:$4 sm:$0xff]   ;;  %v10500_v26 = vld [vmem:[#allocation2 + $0x2b8] ss:$28 sps:$4 sm:$0xff]   ;;  %v10505_v31 = vld [vmem:[#allocation2 + $0x2f0] ss:$28 sps:$4 sm:$0xff]  }
 0x252   :  { %3471 = vmatprep.subr.bf16.mxu0 %v10440_v41  ;;  %v10504_v28 = vld [vmem:[#allocation6 + $0x65c] ss:$28 sps:$4 sm:$0xff]   ;;  %v10509_v33 = vld [vmem:[#allocation6 + $0x694] ss:$28 sps:$4 sm:$0xff]   ;;  %v10506_v34 = vld [vmem:[#allocation2 + $0x130] ss:$28 sps:$4 sm:$0xff]  }
 0x253   :  { %6228 = vmatpush1.bf16.msra.mxu1 %v10435_v43  ;;  %v10502_v29 = vld [vmem:[#allocation6 + $0x658] ss:$28 sps:$4 sm:$0xff]   ;;  %v10507_v37 = vld [vmem:[#allocation6 + $0x690] ss:$28 sps:$4 sm:$0xff]   ;;  %v10510_v38 = vld [vmem:[#allocation2 + $0x328] ss:$28 sps:$4 sm:$0xff]  }
 0x254   :  { %6229 = vmatprep.subr.bf16.mxu1 %v10443_v45  ;;  %v10514_v41 = vld [vmem:[#allocation6 + $0x6cc] ss:$28 sps:$4 sm:$0xff]   ;;  %v10511_v43 = vld [vmem:[#allocation2 + $0x168] ss:$28 sps:$4 sm:$0xff]   ;;  %v10515_v45 = vld [vmem:[#allocation2 + $0x360] ss:$28 sps:$4 sm:$0xff]  }
 0x255   :  { %3472 = vmatpush1.bf16.msra.mxu0 %v10438_v44  ;;  %v10512_v44 = vld [vmem:[#allocation6 + $0x6c8] ss:$28 sps:$4 sm:$0xff]  }
 0x256   :  { %3473 = vmatprep.subr.bf16.mxu0 %v10446_v47  ;;  %v10519_v47 = vld [vmem:[#allocation6 + $0xc] ss:$28 sps:$4 sm:$0xff]  }
 0x257   :  { %6230 = vmatpush1.bf16.msra.mxu1 %v10441_v46  ;;  %v10516_v46 = vld [vmem:[#allocation2 + $0x1a0] ss:$28 sps:$4 sm:$0xff]  }
 0x258   :  { %6231 = vmatprep.subr.bf16.mxu1 %v10449_v48  ;;  %v10517_v48 = vld [vmem:[#allocation6 + $0x8] ss:$28 sps:$4 sm:$0xff]  }
 0x259   :  { %3474 = vmatpush1.bf16.msra.mxu0 %v10444_v49  ;;  %v10522_v49 = vld [vmem:[#allocation6 + $0x44] ss:$28 sps:$4 sm:$0xff]  }
 0x25a   :  { %3475 = vmatprep.subr.bf16.mxu0 %v10452_v52  ;;  %v10615_v52 = vld [vmem:[#allocation6 + $0x704] ss:$28 sps:$4 sm:$0xff]  }
 0x25b   :  { %6232 = vmatpush1.bf16.msra.mxu1 %v10447_v51  ;;  %v10613_v51 = vld [vmem:[#allocation6 + $0x700] ss:$28 sps:$4 sm:$0xff]  }
 0x25c   :  { %6233 = vmatprep.subr.bf16.mxu1 %v10455_v54  ;;  %v10520_v54 = vld [vmem:[#allocation6 + $0x40] ss:$28 sps:$4 sm:$0xff]  }
 0x25d   :  { %3476 = vmatpush1.bf16.msra.mxu0 %v10450_v55  ;;  %v10619_v55 = vld [vmem:[#allocation6 + $0x738] ss:$28 sps:$4 sm:$0xff]  }
 0x25e   :  { %3477 = vmatprep.subr.bf16.mxu0 %v10458_v57  ;;  %v10525_v57 = vld [vmem:[#allocation6 + $0x7c] ss:$28 sps:$4 sm:$0xff]  }
 0x25f   :  { %6234 = vmatpush1.bf16.msra.mxu1 %v10453_v56  ;;  %v10621_v56 = vld [vmem:[#allocation6 + $0x73c] ss:$28 sps:$4 sm:$0xff]  }
 0x260   :  { %6235 = vmatprep.subr.bf16.mxu1 %v10461_v58  ;;  %v10523_v58 = vld [vmem:[#allocation6 + $0x78] ss:$28 sps:$4 sm:$0xff]  }
 0x261   :  { %3478 = vmatpush1.bf16.msra.mxu0 %v10456_v61  ;;  %v10625_v61 = vld [vmem:[#allocation6 + $0x770] ss:$28 sps:$4 sm:$0xff]  }
 0x262   :  { %3479 = vmatprep.subr.bf16.mxu0 %v10464_v36  ;;  %v10528_v36 = vld [vmem:[#allocation6 + $0xb4] ss:$28 sps:$4 sm:$0xff]  }
 0x263   :  { %6236 = vmatpush1.bf16.msra.mxu1 %v10459_v62  ;;  %v10627_v62 = vld [vmem:[#allocation6 + $0x774] ss:$28 sps:$4 sm:$0xff]  }
 0x264   :  { %6237 = vmatprep.subr.bf16.mxu1 %v10467_v63  ;;  %v10631_v63 = vld [vmem:[#allocation6 + $0x7a8] ss:$28 sps:$4 sm:$0xff]  }
 0x265   :  { %3480 = vmatpush1.bf16.msra.mxu0 %v10462_v0  ;;  %v10633_v0 = vld [vmem:[#allocation6 + $0x7ac] ss:$28 sps:$4 sm:$0xff]  }
 0x266   :  { %3481 = vmatprep.subr.bf16.mxu0 %v10470_v2  ;;  %v10529_v2 = vld [vmem:[#allocation6 + $0xe8] ss:$28 sps:$4 sm:$0xff]  }
 0x267   :  { %6238 = vmatpush1.bf16.msra.mxu1 %v10465_v1  ;;  %v10531_v1 = vld [vmem:[#allocation6 + $0xec] ss:$28 sps:$4 sm:$0xff]  }
 0x268   :  { %6239 = vmatprep.subr.bf16.mxu1 %v10473_v3  ;;  %v10637_v3 = vld [vmem:[#allocation6 + $0x7e0] ss:$28 sps:$4 sm:$0xff]  }
 0x269   :  { %3482 = vmatpush1.bf16.msra.mxu0 %v10468_v14  ;;  %v10639_v14 = vld [vmem:[#allocation6 + $0x7e4] ss:$28 sps:$4 sm:$0xff]  }
 0x26a   :  { %3483 = vmatprep.subr.bf16.mxu0 %v10476_v5  ;;  %v10532_v5 = vld [vmem:[#allocation6 + $0x120] ss:$28 sps:$4 sm:$0xff]  }
 0x26b   :  { %6240 = vmatpush1.bf16.msra.mxu1 %v10471_v4  ;;  %v10534_v4 = vld [vmem:[#allocation6 + $0x124] ss:$28 sps:$4 sm:$0xff]  }
 0x26c   :  { %6241 = vmatprep.subr.bf16.mxu1 %v10479_v24  ;;  %v10643_v24 = vld [vmem:[#allocation6 + $0x818] ss:$28 sps:$4 sm:$0xff]  }
 0x26d   :  { %3484 = vmatpush1.bf16.msra.mxu0 %v10474_v7  ;;  %v10645_v7 = vld [vmem:[#allocation6 + $0x81c] ss:$28 sps:$4 sm:$0xff]  }
 0x26e   :  { %9378 = vmatprep.subr.bf16.mxu0 %v10480_v9  ;;  %v9416_v9 = vpop.f32.mrb[4].mxu1 }
 0x26f   :  { %6242 = vmatpush1.bf16.msra.mxu1 %v10477_v8  ;;  %v10537_v8 = vld [vmem:[#allocation6 + $0x15c] ss:$28 sps:$4 sm:$0xff]  }
 0x270   :  { %3486 = vmatmul.mubr.bf16.vlgmr.msra.gmra.mrb[4].mxu0 %v11547_v39  ;;  %6243 = vmatprep.subr.bf16.mxu1 %v10484_v10  ;;  %v10497_v39 = vld [vmem:[#allocation6 + $0x620] ss:$28 sps:$4 sm:$0xff]   ;;  %v10535_v10 = vld [vmem:[#allocation6 + $0x158] ss:$28 sps:$4 sm:$0xff]  }
 0x271   :  { %9379 = vmatpush3.bf16.msra.mxu0 %v10481_v11  ;;  %3528 = vmatprep.mubr.bf16.mxu0 %v11477_v50  ;;  %v10501_v50 = vld [vmem:[#allocation2 + $0xf8] ss:$28 sps:$4 sm:$0xff]   ;;  %v9417_v11 = vpop.f32.mrb[5].mxu1 }
 0x272   :  { %9380 = vmatprep.subr.bf16.mxu0 %v10485_v13  ;;  %v10651_v13 = vld [vmem:[#allocation6 + $0x854] ss:$28 sps:$4 sm:$0xff]  }
 0x273   :  { %6244 = vmatpush1.bf16.msra.mxu1 %v10482_v12  ;;  %v10649_v12 = vld [vmem:[#allocation6 + $0x850] ss:$28 sps:$4 sm:$0xff]  }
 0x274   :  { %6245 = vmatprep.subr.bf16.mxu1 %v10489_v15  ;;  %v10540_v15 = vld [vmem:[#allocation6 + $0x194] ss:$28 sps:$4 sm:$0xff]  }
 0x275   :  { %9381 = vmatpush3.bf16.msra.mxu0 %v10486_v16  ;;  %v11597_v16 = vadd.f32 %v9417_v11, %v9416_v9  ;;  %v10568_v9 = vld [vmem:[#allocation6 + $0x3c0] ss:$28 sps:$4 sm:$0xff]   ;;  %v10571_v11 = vld [vmem:[#allocation6 + $0x3f8] ss:$28 sps:$4 sm:$0xff]  }
 0x276   :  { %9382 = vmatprep.subr.bf16.mxu0 %v10490_v18 }
 0x277   :  { %6246 = vmatpush1.bf16.msra.mxu1 %v10487_v17  ;;  %v9419_v17 = vpop.f32.mrb[6].mxu1 }
 0x278   :  { %6247 = vmatprep.subr.bf16.mxu1 %v10494_v19  ;;  %v9420_v18 = vpop.f32.mrb[7].mxu1 }
 0x279   :  { %9383 = vmatpush3.bf16.msra.mxu0 %v10491_v20  ;;  %v11599_v19 = vadd.f32 %v9420_v18, %v9419_v17  ;;  %v10538_v20 = vld [vmem:[#allocation6 + $0x190] ss:$28 sps:$4 sm:$0xff]   ;;  %v10577_v17 = vld [vmem:[#allocation6 + $0x468] ss:$28 sps:$4 sm:$0xff]  }
 0x27a   :  { %9384 = vmatprep.subr.bf16.mxu0 %v10495_v22  ;;  %v10657_v22 = vld [vmem:[#allocation6 + $0x88c] ss:$28 sps:$4 sm:$0xff]   ;;  %v10582_v18 = vld [vmem:[#allocation6 + $0x4a4] ss:$28 sps:$4 sm:$0xff]  }
 0x27b   :  { %6248 = vmatpush1.bf16.msra.mxu1 %v10492_v21  ;;  %v10655_v21 = vld [vmem:[#allocation6 + $0x888] ss:$28 sps:$4 sm:$0xff]  }
 0x27c   :  { %6249 = vmatprep.subr.bf16.mxu1 %v10499_v23  ;;  %v10543_v23 = vld [vmem:[#allocation6 + $0x1cc] ss:$28 sps:$4 sm:$0xff]  }
 0x27d   :  { %9385 = vmatpush3.bf16.msra.mxu0 %v10496_v25  ;;  %v10541_v25 = vld [vmem:[#allocation6 + $0x1c8] ss:$28 sps:$4 sm:$0xff]  }
 0x27e   :  { %9386 = vmatprep.subr.bf16.mxu0 %v10500_v26  ;;  %v10663_v26 = vld [vmem:[#allocation6 + $0x8c4] ss:$28 sps:$4 sm:$0xff]  }
 0x27f   :  { %6250 = vmatpush1.bf16.msra.mxu1 %v10497_v39  ;;  %v10661_v39 = vld [vmem:[#allocation6 + $0x8c0] ss:$28 sps:$4 sm:$0xff]  }
 0x280   :  { %6251 = vmatprep.subr.bf16.mxu1 %v10504_v28  ;;  %v10546_v28 = vld [vmem:[#allocation6 + $0x204] ss:$28 sps:$4 sm:$0xff]  }
 0x281   :  { %9387 = vmatpush3.bf16.msra.mxu0 %v10501_v50  ;;  %v10544_v50 = vld [vmem:[#allocation6 + $0x200] ss:$28 sps:$4 sm:$0xff]  }
 0x282   :  { %9388 = vmatprep.subr.bf16.mxu0 %v10505_v31  ;;  %v10669_v31 = vld [vmem:[#allocation6 + $0x8fc] ss:$28 sps:$4 sm:$0xff]  }
 0x283   :  { %6252 = vmatpush1.bf16.msra.mxu1 %v10502_v29  ;;  %v10667_v29 = vld [vmem:[#allocation6 + $0x8f8] ss:$28 sps:$4 sm:$0xff]  }
 0x284   :  { %6253 = vmatprep.subr.bf16.mxu1 %v10509_v33  ;;  %v10549_v33 = vld [vmem:[#allocation6 + $0x23c] ss:$28 sps:$4 sm:$0xff]  }
 0x285   :  { %9389 = vmatpush3.bf16.msra.mxu0 %v10506_v34  ;;  %v10547_v34 = vld [vmem:[#allocation6 + $0x238] ss:$28 sps:$4 sm:$0xff]  }
 0x286   :  { %9390 = vmatprep.subr.bf16.mxu0 %v10510_v38  ;;  %v10675_v38 = vld [vmem:[#allocation6 + $0x934] ss:$28 sps:$4 sm:$0xff]  }
 0x287   :  { %6254 = vmatpush1.bf16.msra.mxu1 %v10507_v37  ;;  %v10673_v37 = vld [vmem:[#allocation6 + $0x930] ss:$28 sps:$4 sm:$0xff]  }
 0x288   :  { %6255 = vmatprep.subr.bf16.mxu1 %v10514_v41  ;;  %v10552_v41 = vld [vmem:[#allocation6 + $0x274] ss:$28 sps:$4 sm:$0xff]  }
 0x289   :  { %9391 = vmatpush3.bf16.msra.mxu0 %v10511_v43  ;;  %v10550_v43 = vld [vmem:[#allocation6 + $0x270] ss:$28 sps:$4 sm:$0xff]  }
 0x28a   :  { %9392 = vmatprep.subr.bf16.mxu0 %v10515_v45  ;;  %v10681_v45 = vld [vmem:[#allocation6 + $0x96c] ss:$28 sps:$4 sm:$0xff]  }
 0x28b   :  { %6256 = vmatpush1.bf16.msra.mxu1 %v10512_v44  ;;  %v10679_v44 = vld [vmem:[#allocation6 + $0x968] ss:$28 sps:$4 sm:$0xff]  }
 0x28c   :  { %6268 = vmatprep.subr.bf16.mxu1 %v10615_v52  ;;  %v10556_v52 = vld [vmem:[#allocation6 + $0x2e0] ss:$28 sps:$4 sm:$0xff]  }
 0x28d   :  { %9393 = vmatpush3.bf16.msra.mxu0 %v10516_v46  ;;  %v10555_v46 = vld [vmem:[#allocation6 + $0x2ac] ss:$28 sps:$4 sm:$0xff]  }
 0x28e   :  { %6258 = vmatmul.mubr.bf16.vlgmr.msra.gmra.mrb[16].mxu1 %v11585_v40  ;;  %6354 = vmatprep.subr.bf16.mxu0 %v10519_v47  ;;  %v10553_v47 = vld [vmem:[#allocation6 + $0x2a8] ss:$28 sps:$4 sm:$0xff]  }
 0x28f   :  { %6269 = vmatpush1.bf16.msra.mxu1 %v10613_v51  ;;  %v10558_v51 = vld [vmem:[#allocation6 + $0x2e4] ss:$28 sps:$4 sm:$0xff]  }
 0x290   :  { %3529 = vmatmul.mubr.bf16.vlgmr.msra.gmra.mrb[8].mxu0 %v11487_v6  ;;  %6270 = vmatprep.subr.bf16.mxu1 %v10621_v56  ;;  %v10526_v6 = vld [vmem:[#allocation6 + $0xb0] ss:$28 sps:$4 sm:$0xff]   ;;  %v10693_v56 = vld [vmem:[#allocation6 + $0x9dc] ss:$28 sps:$4 sm:$0xff]  }
 0x291   :  { %6355 = vmatpush1.bf16.msra.mxu0 %v10517_v48  ;;  %6386 = vmatprep.mubr.bf16.mxu0 %v11583_v35  ;;  %v10685_v48 = vld [vmem:[#allocation6 + $0x9a0] ss:$28 sps:$4 sm:$0xff]  }
 0x292   :  { %6356 = vmatprep.subr.bf16.mxu0 %v10522_v49  ;;  %v10687_v49 = vld [vmem:[#allocation6 + $0x9a4] ss:$28 sps:$4 sm:$0xff]  }
 0x293   :  { %6271 = vmatpush1.bf16.msra.mxu1 %v10619_v55  ;;  %v10691_v55 = vld [vmem:[#allocation6 + $0x9d8] ss:$28 sps:$4 sm:$0xff]  }
 0x294   :  { %6272 = vmatprep.subr.bf16.mxu1 %v10627_v62  ;;  %v9438_v62 = vpop.f32.mrb[8].mxu1 }
 0x295   :  { %6357 = vmatpush1.bf16.msra.mxu0 %v10520_v54  ;;  %v10561_v54 = vld [vmem:[#allocation6 + $0x31c] ss:$28 sps:$4 sm:$0xff]  }
 0x296   :  { %6358 = vmatprep.subr.bf16.mxu0 %v10525_v57  ;;  %v10559_v57 = vld [vmem:[#allocation6 + $0x318] ss:$28 sps:$4 sm:$0xff]  }
 0x297   :  { %6273 = vmatpush1.bf16.msra.mxu1 %v10625_v61  ;;  %v10699_v61 = vld [vmem:[#allocation6 + $0xa14] ss:$28 sps:$4 sm:$0xff]  }
 0x298   :  { %6274 = vmatprep.subr.bf16.mxu1 %v10633_v0  ;;  %v10567_v0 = vld [vmem:[#allocation6 + $0x38c] ss:$28 sps:$4 sm:$0xff]  }
 0x299   :  { %6359 = vmatpush1.bf16.msra.mxu0 %v10523_v58  ;;  %v10564_v58 = vld [vmem:[#allocation6 + $0x354] ss:$28 sps:$4 sm:$0xff]  }
 0x29a   :  { %6360 = vmatprep.subr.bf16.mxu0 %v10528_v36  ;;  %v10697_v36 = vld [vmem:[#allocation6 + $0xa10] ss:$28 sps:$4 sm:$0xff]  }
 0x29b   :  { %6275 = vmatpush1.bf16.msra.mxu1 %v10631_v63  ;;  %v9439_v63 = vpop.f32.mrb[9].mxu1 }
 0x29c   :  { %6276 = vmatprep.subr.bf16.mxu1 %v10639_v14  ;;  %v11601_v14 = vadd.f32 %v9439_v63, %v9438_v62  ;;  %v10630_v62 = vld [vmem:[#allocation6 + $0x77c] ss:$28 sps:$4 sm:$0xff]   ;;  %v10634_v63 = vld [vmem:[#allocation6 + $0x7b0] ss:$28 sps:$4 sm:$0xff]  }
 0x29d   :  { %6361 = vmatpush1.bf16.msra.mxu0 %v10526_v6  ;;  %v10562_v6 = vld [vmem:[#allocation6 + $0x350] ss:$28 sps:$4 sm:$0xff]  }
 0x29e   :  { %6362 = vmatprep.subr.bf16.mxu0 %v10531_v1  ;;  %v9441_v1 = vpop.f32.mrb[10].mxu1 }
 0x29f   :  { %6277 = vmatpush1.bf16.msra.mxu1 %v10637_v3  ;;  %v10705_v3 = vld [vmem:[#allocation6 + $0xa4c] ss:$28 sps:$4 sm:$0xff]  }
 0x2a0   :  { %6278 = vmatprep.subr.bf16.mxu1 %v10645_v7  ;;  %v10570_v7 = vld [vmem:[#allocation6 + $0x3c4] ss:$28 sps:$4 sm:$0xff]  }
 0x2a1   :  { %6363 = vmatpush1.bf16.msra.mxu0 %v10529_v2  ;;  %v9442_v2 = vpop.f32.mrb[11].mxu1 }
 0x2a2   :  { %6364 = vmatprep.subr.bf16.mxu0 %v10534_v4  ;;  %v11603_v4 = vadd.f32 %v9442_v2, %v9441_v1  ;;  %v10640_v1 = vld [vmem:[#allocation6 + $0x7e8] ss:$28 sps:$4 sm:$0xff]  }
 0x2a3   :  { %6279 = vmatpush1.bf16.msra.mxu1 %v10643_v24  ;;  %v10565_v24 = vld [vmem:[#allocation6 + $0x388] ss:$28 sps:$4 sm:$0xff]  }
 0x2a4   :  { %6280 = vmatprep.subr.bf16.mxu1 %v10651_v13  ;;  %v10574_v13 = vld [vmem:[#allocation6 + $0x430] ss:$28 sps:$4 sm:$0xff]   ;;  %v10648_v2 = vld [vmem:[#allocation6 + $0x824] ss:$28 sps:$4 sm:$0xff]  }
 0x2a5   :  { %6365 = vmatpush1.bf16.msra.mxu0 %v10532_v5  ;;  %v10703_v5 = vld [vmem:[#allocation6 + $0xa48] ss:$28 sps:$4 sm:$0xff]  }
 0x2a6   :  { %6366 = vmatprep.subr.bf16.mxu0 %v10537_v8  ;;  %v10711_v8 = vld [vmem:[#allocation6 + $0xa84] ss:$28 sps:$4 sm:$0xff]  }
 0x2a7   :  { %6281 = vmatpush1.bf16.msra.mxu1 %v10649_v12  ;;  %v10576_v12 = vld [vmem:[#allocation6 + $0x434] ss:$28 sps:$4 sm:$0xff]  }
 0x2a8   :  { %6282 = vmatprep.subr.bf16.mxu1 %v10657_v22  ;;  %v10583_v22 = vld [vmem:[#allocation6 + $0x4d8] ss:$28 sps:$4 sm:$0xff]  }
 0x2a9   :  { %6367 = vmatpush1.bf16.msra.mxu0 %v10535_v10  ;;  %v10573_v10 = vld [vmem:[#allocation6 + $0x3fc] ss:$28 sps:$4 sm:$0xff]  }
 0x2aa   :  { %6368 = vmatprep.subr.bf16.mxu0 %v10540_v15  ;;  %v10579_v15 = vld [vmem:[#allocation6 + $0x46c] ss:$28 sps:$4 sm:$0xff]  }
 0x2ab   :  { %6283 = vmatpush1.bf16.msra.mxu1 %v10655_v21  ;;  %v10585_v21 = vld [vmem:[#allocation6 + $0x4dc] ss:$28 sps:$4 sm:$0xff]  }
 0x2ac   :  { %6284 = vmatprep.subr.bf16.mxu1 %v10663_v26 }
 0x2ad   :  { %6369 = vmatpush1.bf16.msra.mxu0 %v10538_v20  ;;  %v10580_v20 = vld [vmem:[#allocation6 + $0x4a0] ss:$28 sps:$4 sm:$0xff]  }
 0x2ae   :  { %6370 = vmatprep.subr.bf16.mxu0 %v10543_v23  ;;  %v10588_v23 = vld [vmem:[#allocation6 + $0x514] ss:$28 sps:$4 sm:$0xff]  }
 0x2af   :  { %6285 = vmatpush1.bf16.msra.mxu1 %v10661_v39 }
 0x2b0   :  { %6286 = vmatprep.subr.bf16.mxu1 %v10669_v31 }
 0x2b1   :  { %6371 = vmatpush1.bf16.msra.mxu0 %v10541_v25  ;;  %v9460_v25 = vpop.f32.mrb[12].mxu1 }
 0x2b2   :  { %6372 = vmatprep.subr.bf16.mxu0 %v10546_v28  ;;  %v9461_v39 = vpop.f32.mrb[13].mxu1  ;;  %v10586_v28 = vld [vmem:[#allocation6 + $0x510] ss:$28 sps:$4 sm:$0xff]  }
 0x2b3   :  { %6287 = vmatpush1.bf16.msra.mxu1 %v10667_v29  ;;  %v9463_v26 = vpop.f32.mrb[14].mxu1  ;;  %v10591_v29 = vld [vmem:[#allocation6 + $0x54c] ss:$28 sps:$4 sm:$0xff]   ;;  %v11607_v31 = vadd.f32 %v9461_v39, %v9460_v25  ;;  %v10696_v25 = vld [vmem:[#allocation6 + $0x9e4] ss:$28 sps:$4 sm:$0xff]   ;;  %v11614_v39 = vld [vmem:[#allocation4] sm:$0xff] }
 0x2b4   :  { %6288 = vmatprep.subr.bf16.mxu1 %v10675_v38  ;;  %v10592_v38 = vld [vmem:[#allocation6 + $0x580] ss:$28 sps:$4 sm:$0xff]  }
 0x2b5   :  { %6373 = vmatpush1.bf16.msra.mxu0 %v10544_v50  ;;  %v9464_v50 = vpop.f32.mrb[15].mxu1 }
 0x2b6   :  { %6374 = vmatprep.subr.bf16.mxu0 %v10549_v33  ;;  %v11609_v33 = vadd.f32 %v9464_v50, %v9463_v26  ;;  %v10694_v50 = vld [vmem:[#allocation6 + $0x9e0] ss:$28 sps:$4 sm:$0xff]  }
 0x2b7   :  { %6289 = vmatpush1.bf16.msra.mxu1 %v10673_v37  ;;  %v10594_v37 = vld [vmem:[#allocation6 + $0x584] ss:$28 sps:$4 sm:$0xff]  }
 0x2b8   :  { %6290 = vmatprep.subr.bf16.mxu1 %v10681_v45  ;;  %v10598_v45 = vld [vmem:[#allocation6 + $0x5f0] ss:$28 sps:$4 sm:$0xff]  }
 0x2b9   :  { %6375 = vmatpush1.bf16.msra.mxu0 %v10547_v34  ;;  %v10589_v34 = vld [vmem:[#allocation6 + $0x548] ss:$28 sps:$4 sm:$0xff]  }
 0x2ba   :  { %6376 = vmatprep.subr.bf16.mxu0 %v10552_v41  ;;  %v10597_v41 = vld [vmem:[#allocation6 + $0x5bc] ss:$28 sps:$4 sm:$0xff]  }
 0x2bb   :  { %6291 = vmatpush1.bf16.msra.mxu1 %v10679_v44  ;;  %v10600_v44 = vld [vmem:[#allocation6 + $0x5f4] ss:$28 sps:$4 sm:$0xff]  }
 0x2bc   :  { %6292 = vmatprep.subr.bf16.mxu1 %v10687_v49  ;;  %v10604_v49 = vld [vmem:[#allocation6 + $0x660] ss:$28 sps:$4 sm:$0xff]  }
 0x2bd   :  { %6377 = vmatpush1.bf16.msra.mxu0 %v10550_v43  ;;  %v10595_v43 = vld [vmem:[#allocation6 + $0x5b8] ss:$28 sps:$4 sm:$0xff]  }
 0x2be   :  { %6378 = vmatprep.subr.bf16.mxu0 %v10555_v46  ;;  %v10603_v46 = vld [vmem:[#allocation6 + $0x62c] ss:$28 sps:$4 sm:$0xff]  }
 0x2bf   :  { %6293 = vmatpush1.bf16.msra.mxu1 %v10685_v48  ;;  %v10606_v48 = vld [vmem:[#allocation6 + $0x664] ss:$28 sps:$4 sm:$0xff]  }
 0x2c0   :  { %6294 = vmatprep.subr.bf16.mxu1 %v10693_v56  ;;  %v10618_v56 = vld [vmem:[#allocation6 + $0x70c] ss:$28 sps:$4 sm:$0xff]  }
 0x2c1   :  { %6379 = vmatpush1.bf16.msra.mxu0 %v10553_v47  ;;  %v10601_v47 = vld [vmem:[#allocation6 + $0x628] ss:$28 sps:$4 sm:$0xff]  }
 0x2c2   :  { %6380 = vmatprep.subr.bf16.mxu0 %v10558_v51  ;;  %v10609_v51 = vld [vmem:[#allocation6 + $0x69c] ss:$28 sps:$4 sm:$0xff]  }
 0x2c3   :  { %6295 = vmatpush1.bf16.msra.mxu1 %v10691_v55  ;;  %v10610_v55 = vld [vmem:[#allocation6 + $0x6d0] ss:$28 sps:$4 sm:$0xff]  }
 0x2c4   :  { %6296 = vmatprep.subr.bf16.mxu1 %v10699_v61  ;;  %v10622_v61 = vld [vmem:[#allocation6 + $0x740] ss:$28 sps:$4 sm:$0xff]  }
 0x2c5   :  { %6381 = vmatpush1.bf16.msra.mxu0 %v10556_v52  ;;  %v10607_v52 = vld [vmem:[#allocation6 + $0x698] ss:$28 sps:$4 sm:$0xff]  }
 0x2c6   :  { %6382 = vmatprep.subr.bf16.mxu0 %v10561_v54  ;;  %v10612_v54 = vld [vmem:[#allocation6 + $0x6d4] ss:$28 sps:$4 sm:$0xff]  }
 0x2c7   :  { %6297 = vmatpush1.bf16.msra.mxu1 %v10697_v36  ;;  %v10628_v36 = vld [vmem:[#allocation6 + $0x778] ss:$28 sps:$4 sm:$0xff]  }
 0x2c8   :  { %6298 = vmatprep.subr.bf16.mxu1 %v10705_v3  ;;  %v10646_v3 = vld [vmem:[#allocation6 + $0x820] ss:$28 sps:$4 sm:$0xff]  }
 0x2c9   :  { %6383 = vmatpush1.bf16.msra.mxu0 %v10559_v57  ;;  %v10616_v57 = vld [vmem:[#allocation6 + $0x708] ss:$28 sps:$4 sm:$0xff]  }
 0x2ca   :  { %6384 = vmatprep.subr.bf16.mxu0 %v10564_v58  ;;  %v10624_v58 = vld [vmem:[#allocation6 + $0x744] ss:$28 sps:$4 sm:$0xff]  }
 0x2cb   :  { %6299 = vmatpush1.bf16.msra.mxu1 %v10703_v5  ;;  %v10654_v5 = vld [vmem:[#allocation6 + $0x85c] ss:$28 sps:$4 sm:$0xff]  }
 0x2cc   :  { %6311 = vmatprep.subr.bf16.mxu1 %v10711_v8  ;;  %v10658_v8 = vld [vmem:[#allocation6 + $0x890] ss:$28 sps:$4 sm:$0xff]  }
 0x2cd   :  { %6385 = vmatpush1.bf16.msra.mxu0 %v10562_v6  ;;  %v10636_v6 = vld [vmem:[#allocation6 + $0x7b4] ss:$28 sps:$4 sm:$0xff]  }
 0x2ce   :  { %6397 = vmatprep.subr.bf16.mxu0 %v10567_v0  ;;  %v10642_v0 = vld [vmem:[#allocation6 + $0x7ec] ss:$28 sps:$4 sm:$0xff]  }
 0x2d0   :  { %6387 = vmatmul.mubr.bf16.vlgmr.msra.gmra.mrb[12].mxu0 %v11581_v32 }
 0x2d1   :  { %6398 = vmatpush1.bf16.msra.mxu0 %v10565_v24  ;;  %6429 = vmatprep.mubr.bf16.mxu0 %v11587_v42  ;;  %v10652_v24 = vld [vmem:[#allocation6 + $0x858] ss:$28 sps:$4 sm:$0xff]  }
 0x2d2   :  { %6399 = vmatprep.subr.bf16.mxu0 %v10570_v7  ;;  %v10660_v7 = vld [vmem:[#allocation6 + $0x894] ss:$28 sps:$4 sm:$0xff]  }
 0x2d5   :  { %6400 = vmatpush1.bf16.msra.mxu0 %v10568_v9  ;;  %v10666_v9 = vld [vmem:[#allocation6 + $0x8cc] ss:$28 sps:$4 sm:$0xff]  }
 0x2d6   :  { %6401 = vmatprep.subr.bf16.mxu0 %v10573_v10  ;;  %v10664_v10 = vld [vmem:[#allocation6 + $0x8c8] ss:$28 sps:$4 sm:$0xff]  }
 0x2d9   :  { %6402 = vmatpush1.bf16.msra.mxu0 %v10571_v11  ;;  %v10672_v11 = vld [vmem:[#allocation6 + $0x904] ss:$28 sps:$4 sm:$0xff]  }
 0x2da   :  { %6403 = vmatprep.subr.bf16.mxu0 %v10576_v12  ;;  %v10670_v12 = vld [vmem:[#allocation6 + $0x900] ss:$28 sps:$4 sm:$0xff]  }
 0x2dd   :  { %6404 = vmatpush1.bf16.msra.mxu0 %v10574_v13  ;;  %v10678_v13 = vld [vmem:[#allocation6 + $0x93c] ss:$28 sps:$4 sm:$0xff]  }
 0x2de   :  { %6405 = vmatprep.subr.bf16.mxu0 %v10579_v15  ;;  %v10676_v15 = vld [vmem:[#allocation6 + $0x938] ss:$28 sps:$4 sm:$0xff]  }
 0x2e1   :  { %6406 = vmatpush1.bf16.msra.mxu0 %v10577_v17  ;;  %v10684_v17 = vld [vmem:[#allocation6 + $0x974] ss:$28 sps:$4 sm:$0xff]  }
 0x2e2   :  { %6407 = vmatprep.subr.bf16.mxu0 %v10582_v18  ;;  %v10682_v18 = vld [vmem:[#allocation6 + $0x970] ss:$28 sps:$4 sm:$0xff]  }
 0x2e5   :  { %6408 = vmatpush1.bf16.msra.mxu0 %v10580_v20  ;;  %v10690_v20 = vld [vmem:[#allocation6 + $0x9ac] ss:$28 sps:$4 sm:$0xff]  }
 0x2e6   :  { %6409 = vmatprep.subr.bf16.mxu0 %v10585_v21  ;;  %v659_v21 = vsub.s32 4, %v11564_v53 }
 0x2e8   :  { %v660_v26 = vrot.slane %v11614_v39, %v659_v21 }
 0x2e9   :  { %6410 = vmatpush1.bf16.msra.mxu0 %v10583_v22  ;;  %v10688_v22 = vld [vmem:[#allocation6 + $0x9a8] ss:$28 sps:$4 sm:$0xff]  }
 0x2ea   :  { %6411 = vmatprep.subr.bf16.mxu0 %v10588_v23  ;;  %v663_v23 = vsub.s32 5, %v11564_v53 }
 0x2ed   :  { %6412 = vmatpush1.bf16.msra.mxu0 %v10586_v28  ;;  %v664_v28 = vrot.slane %v11614_v39, %v663_v23 }
 0x2ee   :  { %6413 = vmatprep.subr.bf16.mxu0 %v10591_v29  ;;  %v10702_v29 = vld [vmem:[#allocation6 + $0xa1c] ss:$28 sps:$4 sm:$0xff]  }
 0x2f1   :  { %6414 = vmatpush1.bf16.msra.mxu0 %v10589_v34 }
 0x2f2   :  { %6415 = vmatprep.subr.bf16.mxu0 %v10594_v37 }
 0x2f5   :  { %6416 = vmatpush1.bf16.msra.mxu0 %v10592_v38 }
 0x2f6   :  { %6417 = vmatprep.subr.bf16.mxu0 %v10597_v41 }
 0x2f9   :  { %6418 = vmatpush1.bf16.msra.mxu0 %v10595_v43 }
 0x2fa   :  { %6419 = vmatprep.subr.bf16.mxu0 %v10600_v44  ;;  %v10700_v44 = vld [vmem:[#allocation6 + $0xa18] ss:$28 sps:$4 sm:$0xff]  }
 0x2fd   :  { %6420 = vmatpush1.bf16.msra.mxu0 %v10598_v45 }
 0x2fe   :  { %6421 = vmatprep.subr.bf16.mxu0 %v10603_v46 }
 0x301   :  { %6422 = vmatpush1.bf16.msra.mxu0 %v10601_v47  ;;  %v10708_v47 = vld [vmem:[#allocation6 + $0xa54] ss:$28 sps:$4 sm:$0xff]  }
 0x302   :  { %6423 = vmatprep.subr.bf16.mxu0 %v10606_v48 }
 0x305   :  { %6424 = vmatpush1.bf16.msra.mxu0 %v10604_v49 }
 0x306   :  { %6425 = vmatprep.subr.bf16.mxu0 %v10609_v51 }
 0x309   :  { %6426 = vmatpush1.bf16.msra.mxu0 %v10607_v52 }
 0x30a   :  { %6427 = vmatprep.subr.bf16.mxu0 %v10612_v54 }
 0x30d   :  { %6428 = vmatpush1.bf16.msra.mxu0 %v10610_v55  ;;  %v10706_v55 = vld [vmem:[#allocation6 + $0xa50] ss:$28 sps:$4 sm:$0xff]  }
 0x30e   :  { %6440 = vmatprep.subr.bf16.mxu0 %v10618_v56 }
 0x310   :  { %6430 = vmatmul.mubr.bf16.vlgmr.msra.gmra.mrb[12].mxu0 %v11585_v40 }
 0x311   :  { %6441 = vmatpush1.bf16.msra.mxu0 %v10616_v57 }
 0x312   :  { %6442 = vmatprep.subr.bf16.mxu0 %v10624_v58  ;;  %v10709_v58 = vld [vmem:[#allocation6 + $0xa80] ss:$28 sps:$4 sm:$0xff]  }
 0x315   :  { %6443 = vmatpush1.bf16.msra.mxu0 %v10622_v61  ;;  %v10714_v61 = vld [vmem:[#allocation6 + $0xa8c] ss:$28 sps:$4 sm:$0xff]  }
 0x316   :  { %6444 = vmatprep.subr.bf16.mxu0 %v10630_v62  ;;  %v10717_v62 = vld [vmem:[#allocation6 + $0xabc] ss:$28 sps:$4 sm:$0xff]  }
 0x319   :  { %6445 = vmatpush1.bf16.msra.mxu0 %v10628_v36  ;;  %v10712_v36 = vld [vmem:[#allocation6 + $0xa88] ss:$28 sps:$4 sm:$0xff]  }
 0x31a   :  { %6446 = vmatprep.subr.bf16.mxu0 %v10636_v6  ;;  %v10720_v6 = vld [vmem:[#allocation6 + $0xac4] ss:$28 sps:$4 sm:$0xff]  }
 0x31d   :  { %6447 = vmatpush1.bf16.msra.mxu0 %v10634_v63  ;;  %v10715_v63 = vld [vmem:[#allocation6 + $0xab8] ss:$28 sps:$4 sm:$0xff]  }
 0x31e   :  { %6448 = vmatprep.subr.bf16.mxu0 %v10642_v0  ;;  %v10723_v0 = vld [vmem:[#allocation6 + $0xaf4] ss:$28 sps:$4 sm:$0xff]  }
 0x321   :  { %6449 = vmatpush1.bf16.msra.mxu0 %v10640_v1  ;;  %v10718_v1 = vld [vmem:[#allocation6 + $0xac0] ss:$28 sps:$4 sm:$0xff]  }
 0x322   :  { %6450 = vmatprep.subr.bf16.mxu0 %v10648_v2  ;;  %v11356_v2 = vmov 0  }
 0x325   :  { %6451 = vmatpush1.bf16.msra.mxu0 %v10646_v3  ;;  %v10726_v3 = vld [vmem:[#allocation6 + $0xafc] ss:$28 sps:$4 sm:$0xff]  }
 0x326   :  { %6452 = vmatprep.subr.bf16.mxu0 %v10654_v5  ;;  %v10721_v5 = vld [vmem:[#allocation6 + $0xaf0] ss:$28 sps:$4 sm:$0xff]  }
 0x329   :  { %6453 = vmatpush1.bf16.msra.mxu0 %v10652_v24  ;;  %v10729_v24 = vld [vmem:[#allocation6 + $0xb2c] ss:$28 sps:$4 sm:$0xff]  }
 0x32a   :  { %6454 = vmatprep.subr.bf16.mxu0 %v10660_v7  ;;  %v10724_v7 = vld [vmem:[#allocation6 + $0xaf8] ss:$28 sps:$4 sm:$0xff]  }
 0x32d   :  { %6455 = vmatpush1.bf16.msra.mxu0 %v10658_v8  ;;  %v10732_v8 = vld [vmem:[#allocation6 + $0xb34] ss:$28 sps:$4 sm:$0xff]  }
 0x32e   :  { %6456 = vmatprep.subr.bf16.mxu0 %v10666_v9  ;;  %v10727_v9 = vld [vmem:[#allocation6 + $0xb28] ss:$28 sps:$4 sm:$0xff]  }
 0x331   :  { %6457 = vmatpush1.bf16.msra.mxu0 %v10664_v10  ;;  %v10735_v10 = vld [vmem:[#allocation6 + $0xb64] ss:$28 sps:$4 sm:$0xff]  }
 0x332   :  { %6458 = vmatprep.subr.bf16.mxu0 %v10672_v11  ;;  %v10730_v11 = vld [vmem:[#allocation6 + $0xb30] ss:$28 sps:$4 sm:$0xff]  }
 0x335   :  { %6459 = vmatpush1.bf16.msra.mxu0 %v10670_v12  ;;  %v10738_v12 = vld [vmem:[#allocation6 + $0xb6c] ss:$28 sps:$4 sm:$0xff]  }
 0x336   :  { %6460 = vmatprep.subr.bf16.mxu0 %v10678_v13  ;;  %v10733_v13 = vld [vmem:[#allocation6 + $0xb60] ss:$28 sps:$4 sm:$0xff]  }
 0x339   :  { %6461 = vmatpush1.bf16.msra.mxu0 %v10676_v15  ;;  %v10741_v15 = vld [vmem:[#allocation6 + $0xb9c] ss:$28 sps:$4 sm:$0xff]  }
 0x33a   :  { %6462 = vmatprep.subr.bf16.mxu0 %v10684_v17  ;;  %v10736_v17 = vld [vmem:[#allocation6 + $0xb68] ss:$28 sps:$4 sm:$0xff]  }
 0x33d   :  { %6463 = vmatpush1.bf16.msra.mxu0 %v10682_v18  ;;  %v10744_v18 = vld [vmem:[#allocation6 + $0xba4] ss:$28 sps:$4 sm:$0xff]  }
 0x33e   :  { %6464 = vmatprep.subr.bf16.mxu0 %v10690_v20  ;;  %v667_v20 = vsub.s32 6, %v11564_v53 }
 0x341   :  { %6465 = vmatpush1.bf16.msra.mxu0 %v10688_v22  ;;  %v10739_v22 = vld [vmem:[#allocation6 + $0xb98] ss:$28 sps:$4 sm:$0xff]  }
 0x342   :  { %6466 = vmatprep.subr.bf16.mxu0 %v10696_v25  ;;  %v10747_v25 = vld [vmem:[#allocation6 + $0xbd4] ss:$28 sps:$4 sm:$0xff]  }
 0x343   :  { %v3487_v34 = vpop.f32.mrb[4].mxu0 }
 0x344   :  { %v9664_v37 = vadd.f32 %v3487_v34, %v660_v26  ;;  %v3489_v38 = vpop.f32.mrb[5].mxu0  ;;  %v10745_v34 = vld [vmem:[#allocation6 + $0xbd0] ss:$28 sps:$4 sm:$0xff]  }
 0x345   :  { %v9665_v41 = vadd.f32 %v3489_v38, %v664_v28  ;;  %v3491_v43 = vpop.f32.mrb[6].mxu0  ;;  %6467 = vmatpush1.bf16.msra.mxu0 %v10694_v50  ;;  %v10753_v38 = vld [vmem:[#allocation6 + $0xc0c] ss:$28 sps:$4 sm:$0xff]  }
 0x346   :  { %v9666_v45 = vadd.f32 %v3491_v43, %v660_v26  ;;  %v3493_v46 = vpop.f32.mrb[7].mxu0  ;;  %6468 = vmatprep.subr.bf16.mxu0 %v10702_v29  ;;  %v3664_v49 = vmax.f32 %v9664_v37, 0.0  ;;  %v10742_v26 = vld [vmem:[#allocation6 + $0xba0] ss:$28 sps:$4 sm:$0xff]   ;;  %v668_v29 = vrot.slane %v11614_v39, %v667_v20 }
 0x347   :  { %v9667_v48 = vadd.f32 %v3493_v46, %v664_v28  ;;  %v3665_v52 = vmax.f32 %v9665_v41, 0.0  ;;  %v10750_v28 = vld [vmem:[#allocation6 + $0xbdc] ss:$28 sps:$4 sm:$0xff]   ;;  %v10756_v46 = vld [vmem:[#allocation6 + $0xc14] ss:$28 sps:$4 sm:$0xff]  }
 0x348   :  { %v3671_v51 = vmax.f32 %v9666_v45, 0.0 }
 0x349   :  { %v3672_v54 = vmax.f32 %v9667_v48, 0.0  ;;  %6469 = vmatpush1.bf16.msra.mxu0 %v10700_v44  ;;  %v10748_v44 = vld [vmem:[#allocation6 + $0xbd8] ss:$28 sps:$4 sm:$0xff]  }
 0x34a   :  { %v11622_v56 = vpack.c.bf16 %v3671_v51, %v3664_v49  ;;  %6470 = vmatprep.subr.bf16.mxu0 %v10708_v47  ;;  %v10751_v49 = vld [vmem:[#allocation6 + $0xc08] ss:$28 sps:$4 sm:$0xff]   ;;  %v10759_v51 = vld [vmem:[#allocation6 + $0x14] ss:$28 sps:$4 sm:$0xff]  }
 0x34b   :  { %v11624_v57 = vpack.c.bf16 %v3672_v54, %v3665_v52  ;;  %v10754_v54 = vld [vmem:[#allocation6 + $0xc10] ss:$28 sps:$4 sm:$0xff]  }
 0x34d   :  { %6300 = vmatprep.mubr.bf16.mxu1 %v11624_v57  ;;  %6471 = vmatpush1.bf16.msra.mxu0 %v10706_v55  ;;  %v10760_v55 = vld [vmem:[#allocation6 + $0x1d8] ss:$28 sps:$4 sm:$0xff]  }
 0x34e   :  { %6472 = vmatprep.mubr.bf16.mxu0 %v11624_v57  ;;  %6301 = vmatmul.mubr.bf16.vlgmr.msra.gmra.mrb[16].mxu1 %v11622_v56 }
 0x34f   :  { %6483 = vmatprep.subr.bf16.mxu0 %v10714_v61  ;;  %6312 = vmatpush1.bf16.msra.mxu1 %v10709_v58 }
 0x350   :  { %6473 = vmatmul.mubr.bf16.vlgmr.msra.gmra.mrb[12].mxu0 %v11622_v56  ;;  %6313 = vmatprep.subr.bf16.mxu1 %v10717_v62 }
 0x351   :  { %6484 = vmatpush1.bf16.msra.mxu0 %v10712_v36  ;;  %6343 = vmatprep.mubr.bf16.mxu1 %v11356_v2 }
 0x352   :  { %6485 = vmatprep.subr.bf16.mxu0 %v10720_v6  ;;  %6515 = vmatprep.mubr.bf16.mxu0 %v11356_v2 }
 0x353   :  { %6314 = vmatpush1.bf16.msra.mxu1 %v10715_v63 }
 0x354   :  { %6315 = vmatprep.subr.bf16.mxu1 %v10723_v0  ;;  %v10757_v0 = vld [vmem:[#allocation6 + $0x10] ss:$28 sps:$4 sm:$0xff]  }
 0x355   :  { %6486 = vmatpush1.bf16.msra.mxu0 %v10718_v1  ;;  %v10761_v1 = vld [vmem:[#allocation6 + $0x18] ss:$28 sps:$4 sm:$0xff]  }
 0x356   :  { %6487 = vmatprep.subr.bf16.mxu0 %v10726_v3 }
 0x357   :  { %6316 = vmatpush1.bf16.msra.mxu1 %v10721_v5  ;;  %v10764_v5 = vld [vmem:[#allocation6 + $0x4c] ss:$28 sps:$4 sm:$0xff]  }
 0x358   :  { %6317 = vmatprep.subr.bf16.mxu1 %v10729_v24  ;;  %v10767_v24 = vld [vmem:[#allocation6 + $0x80] ss:$28 sps:$4 sm:$0xff]  }
 0x359   :  { %6488 = vmatpush1.bf16.msra.mxu0 %v10724_v7  ;;  %v10771_v7 = vld [vmem:[#allocation6 + $0x88] ss:$28 sps:$4 sm:$0xff]  }
 0x35a   :  { %6489 = vmatprep.subr.bf16.mxu0 %v10732_v8  ;;  %v10774_v8 = vld [vmem:[#allocation6 + $0xbc] ss:$28 sps:$4 sm:$0xff]  }
 0x35b   :  { %6318 = vmatpush1.bf16.msra.mxu1 %v10727_v9  ;;  %v10775_v9 = vld [vmem:[#allocation6 + $0x280] ss:$28 sps:$4 sm:$0xff]  }
 0x35c   :  { %6319 = vmatprep.subr.bf16.mxu1 %v10735_v10  ;;  %v10772_v10 = vld [vmem:[#allocation6 + $0xb8] ss:$28 sps:$4 sm:$0xff]  }
 0x35d   :  { %6490 = vmatpush1.bf16.msra.mxu0 %v10730_v11  ;;  %v10776_v11 = vld [vmem:[#allocation6 + $0xc0] ss:$28 sps:$4 sm:$0xff]  }
 0x35e   :  { %6491 = vmatprep.subr.bf16.mxu0 %v10738_v12  ;;  %v10779_v12 = vld [vmem:[#allocation6 + $0xf4] ss:$28 sps:$4 sm:$0xff]  }
 0x35f   :  { %6320 = vmatpush1.bf16.msra.mxu1 %v10733_v13  ;;  %v10777_v13 = vld [vmem:[#allocation6 + $0xf0] ss:$28 sps:$4 sm:$0xff]  }
 0x360   :  { %6321 = vmatprep.subr.bf16.mxu1 %v10741_v15  ;;  %v10781_v15 = vld [vmem:[#allocation6 + $0xf8] ss:$28 sps:$4 sm:$0xff]  }
 0x361   :  { %6492 = vmatpush1.bf16.msra.mxu0 %v10736_v17  ;;  %v10784_v17 = vld [vmem:[#allocation6 + $0x12c] ss:$28 sps:$4 sm:$0xff]  }
 0x362   :  { %6493 = vmatprep.subr.bf16.mxu0 %v10744_v18  ;;  %v10785_v18 = vld [vmem:[#allocation6 + $0x2f0] ss:$28 sps:$4 sm:$0xff]  }
 0x363   :  { %v9394_v50 = vpop.f32.mrb[8].mxu0  ;;  %6322 = vmatpush1.bf16.msra.mxu1 %v10739_v22  ;;  %v10782_v22 = vld [vmem:[#allocation6 + $0x128] ss:$28 sps:$4 sm:$0xff]  }
 0x364   :  { %v9395_v37 = vpop.f32.mrb[9].mxu0  ;;  %6323 = vmatprep.subr.bf16.mxu1 %v10747_v25  ;;  %v10786_v25 = vld [vmem:[#allocation6 + $0x130] ss:$28 sps:$4 sm:$0xff]  }
 0x365   :  { %v9396_v41 = vadd.f32 %v9395_v37, %v9394_v50  ;;  %v9397_v43 = vpop.f32.mrb[10].mxu0  ;;  %6494 = vmatpush1.bf16.msra.mxu0 %v10742_v26  ;;  %v10789_v26 = vld [vmem:[#allocation6 + $0x164] ss:$28 sps:$4 sm:$0xff]  }
 0x366   :  { %v9398_v45 = vpop.f32.mrb[11].mxu0  ;;  %6495 = vmatprep.subr.bf16.mxu0 %v10750_v28  ;;  %v10790_v28 = vld [vmem:[#allocation6 + $0x328] ss:$28 sps:$4 sm:$0xff]   ;;  %v10787_v50 = vld [vmem:[#allocation6 + $0x160] ss:$28 sps:$4 sm:$0xff]  }
 0x367   :  { %v3531_v47 = vadd.f32 %v9396_v41, %v668_v29  ;;  %v9399_v48 = vadd.f32 %v9398_v45, %v9397_v43  ;;  %6324 = vmatpush1.bf16.msra.mxu1 %v10745_v34  ;;  %v10794_v34 = vld [vmem:[#allocation6 + $0x19c] ss:$28 sps:$4 sm:$0xff]   ;;  %v10799_v43 = vld [vmem:[#allocation6 + $0x1d4] ss:$28 sps:$4 sm:$0xff]  }
 0x368   :  { %6325 = vmatprep.subr.bf16.mxu1 %v10753_v38  ;;  %v10795_v37 = vld [vmem:[#allocation6 + $0x360] ss:$28 sps:$4 sm:$0xff]   ;;  %v10792_v38 = vld [vmem:[#allocation6 + $0x198] ss:$28 sps:$4 sm:$0xff]   ;;  %v10797_v45 = vld [vmem:[#allocation6 + $0x1d0] ss:$28 sps:$4 sm:$0xff]  }
 0x369   :  { %v3572_v39 = vadd.f32 %v11597_v16, %v3531_v47  ;;  %v3534_v52 = vadd.f32 %v9399_v48, %v668_v29  ;;  %6496 = vmatpush1.bf16.msra.mxu0 %v10748_v44  ;;  %v10791_v29 = vld [vmem:[#allocation6 + $0x168] ss:$28 sps:$4 sm:$0xff]   ;;  %v10796_v41 = vld [vmem:[#allocation6 + $0x1a0] ss:$28 sps:$4 sm:$0xff]   ;;  %v10800_v44 = vld [vmem:[#allocation6 + $0x558] ss:$28 sps:$4 sm:$0xff]  }
 0x36a   :  { %6497 = vmatprep.subr.bf16.mxu0 %v10756_v46  ;;  %v10801_v46 = vld [vmem:[#allocation6 + $0x398] ss:$28 sps:$4 sm:$0xff]   ;;  %v10804_v47 = vld [vmem:[#allocation6 + $0x20c] ss:$28 sps:$4 sm:$0xff]  }
 0x36b   :  { %v3575_v58 = vadd.f32 %v11599_v19, %v3534_v52  ;;  %v3613_v61 = vadd.f32 %v11601_v14, %v3572_v39  ;;  %6326 = vmatpush1.bf16.msra.mxu1 %v10751_v49  ;;  %v10765_v19 = vld [vmem:[#allocation6 + $0x210] ss:$28 sps:$4 sm:$0xff]   ;;  %v10762_v14 = vld [vmem:[#allocation6 + $0x48] ss:$28 sps:$4 sm:$0xff]  }
 0x36c   :  { %6526 = vmatprep.subr.bf16.mxu1 %v10759_v51  ;;  %v10805_v48 = vld [vmem:[#allocation6 + $0x590] ss:$28 sps:$4 sm:$0xff]   ;;  %v10802_v49 = vld [vmem:[#allocation6 + $0x208] ss:$28 sps:$4 sm:$0xff]  }
 0x36d   :  { %v3654_v62 = vadd.f32 %v11607_v31, %v3613_v61  ;;  %v3616_v36 = vadd.f32 %v11603_v4, %v3575_v58  ;;  %6498 = vmatpush1.bf16.msra.mxu0 %v10754_v54  ;;  %v10766_v4 = vld [vmem:[#allocation6 + $0x50] ss:$28 sps:$4 sm:$0xff]   ;;  %v10769_v31 = vld [vmem:[#allocation6 + $0x84] ss:$28 sps:$4 sm:$0xff]   ;;  %v10814_v58 = vld [vmem:[#allocation6 + $0x27c] ss:$28 sps:$4 sm:$0xff]  }
 0x36e   :  { %9466 = vmatprep.subr.bf16.mxu0 %v10760_v55  ;;  %v10806_v51 = vld [vmem:[#allocation6 + $0x3d0] ss:$28 sps:$4 sm:$0xff]   ;;  %v10809_v39 = vld [vmem:[#allocation6 + $0x244] ss:$28 sps:$4 sm:$0xff]  }
 0x36f   :  { %v3657_v6 = vadd.f32 %v11609_v33, %v3616_v36  ;;  %v3666_v16 = vmax.f32 %v3654_v62, 0.0  ;;  %v10770_v33 = vld [vmem:[#allocation6 + $0x248] ss:$28 sps:$4 sm:$0xff]   ;;  %v10807_v54 = vld [vmem:[#allocation6 + $0x240] ss:$28 sps:$4 sm:$0xff]  }
 0x370   :  { %v10810_v52 = vld [vmem:[#allocation6 + $0x5c8] ss:$28 sps:$4 sm:$0xff]   ;;  %v10815_v61 = vld [vmem:[#allocation6 + $0x600] ss:$28 sps:$4 sm:$0xff]   ;;  %v10812_v62 = vld [vmem:[#allocation6 + $0x278] ss:$28 sps:$4 sm:$0xff]  }
 0x371   :  { %v3673_v63 = vmax.f32 %v3657_v6, 0.0  ;;  %v10811_v55 = vld [vmem:[#allocation6 + $0x408] ss:$28 sps:$4 sm:$0xff]   ;;  %v10816_v36 = vld [vmem:[#allocation6 + $0x440] ss:$28 sps:$4 sm:$0xff]  }
 0x372   :  { %v10819_v6 = vld [vmem:[#allocation6 + $0x2b4] ss:$28 sps:$4 sm:$0xff]  }
 0x373   :  { %v11642_v3 = vpack.c.bf16 %v3673_v63, %v3666_v16  ;;  %v10820_v16 = vld [vmem:[#allocation6 + $0x638] ss:$28 sps:$4 sm:$0xff]   ;;  %v10817_v63 = vld [vmem:[#allocation6 + $0x2b0] ss:$28 sps:$4 sm:$0xff]  }
 0x375   :  { %6344 = vmatmul.mubr.bf16.vlgmr.msra.gmra.mrb[16].mxu1 %v11642_v3  ;;  %6516 = vmatmul.mubr.bf16.vlgmr.msra.gmra.mrb[12].mxu0 %v11642_v3 }
 0x376   :  { %6527 = vmatpush1.bf16.msra.mxu1 %v10757_v0  ;;  %9467 = vmatpush3.bf16.msra.mxu0 %v10761_v1  ;;  %v10821_v0 = vld [vmem:[#allocation6 + $0x478] ss:$28 sps:$4 sm:$0xff]   ;;  %v10824_v1 = vld [vmem:[#allocation6 + $0x2ec] ss:$28 sps:$4 sm:$0xff]  }
 0x377   :  { %6558 = vmatprep.mubr.bf16.mxu1 %v11583_v35  ;;  %6730 = vmatprep.mubr.bf16.mxu0 %v11583_v35  ;;  %v10780_v35 = vld [vmem:[#allocation6 + $0x2b8] ss:$28 sps:$4 sm:$0xff]  }
 0x378   :  { %6528 = vmatprep.subr.bf16.mxu1 %v10764_v5  ;;  %9468 = vmatprep.subr.bf16.mxu0 %v10765_v19  ;;  %v10825_v5 = vld [vmem:[#allocation6 + $0x670] ss:$28 sps:$4 sm:$0xff]   ;;  %v10822_v19 = vld [vmem:[#allocation6 + $0x2e8] ss:$28 sps:$4 sm:$0xff]  }
 0x37a   :  { %6529 = vmatpush1.bf16.msra.mxu1 %v10762_v14  ;;  %9469 = vmatpush3.bf16.msra.mxu0 %v10766_v4  ;;  %v10826_v14 = vld [vmem:[#allocation6 + $0x4b0] ss:$28 sps:$4 sm:$0xff]   ;;  %v10829_v4 = vld [vmem:[#allocation6 + $0x324] ss:$28 sps:$4 sm:$0xff]  }
 0x37b   :  { %6530 = vmatprep.subr.bf16.mxu1 %v10769_v31  ;;  %9470 = vmatprep.subr.bf16.mxu0 %v10770_v33  ;;  %v10830_v31 = vld [vmem:[#allocation6 + $0x6a8] ss:$28 sps:$4 sm:$0xff]   ;;  %v10827_v33 = vld [vmem:[#allocation6 + $0x320] ss:$28 sps:$4 sm:$0xff]  }
 0x37e   :  { %6531 = vmatpush1.bf16.msra.mxu1 %v10767_v24  ;;  %9471 = vmatpush3.bf16.msra.mxu0 %v10771_v7  ;;  %v10831_v24 = vld [vmem:[#allocation6 + $0x4e8] ss:$28 sps:$4 sm:$0xff]   ;;  %v10834_v7 = vld [vmem:[#allocation6 + $0x35c] ss:$28 sps:$4 sm:$0xff]  }
 0x37f   :  { %6532 = vmatprep.subr.bf16.mxu1 %v10774_v8  ;;  %9472 = vmatprep.subr.bf16.mxu0 %v10775_v9  ;;  %v10835_v8 = vld [vmem:[#allocation6 + $0x6e0] ss:$28 sps:$4 sm:$0xff]   ;;  %v10832_v9 = vld [vmem:[#allocation6 + $0x358] ss:$28 sps:$4 sm:$0xff]  }
 0x382   :  { %6533 = vmatpush1.bf16.msra.mxu1 %v10772_v10  ;;  %9473 = vmatpush3.bf16.msra.mxu0 %v10776_v11  ;;  %v10836_v10 = vld [vmem:[#allocation6 + $0x520] ss:$28 sps:$4 sm:$0xff]   ;;  %v10839_v11 = vld [vmem:[#allocation6 + $0x394] ss:$28 sps:$4 sm:$0xff]  }
 0x383   :  { %6534 = vmatprep.subr.bf16.mxu1 %v10779_v12  ;;  %9474 = vmatprep.subr.bf16.mxu0 %v10780_v35  ;;  %v10840_v12 = vld [vmem:[#allocation6 + $0x8d8] ss:$28 sps:$4 sm:$0xff]   ;;  %v10837_v35 = vld [vmem:[#allocation6 + $0x390] ss:$28 sps:$4 sm:$0xff]  }
 0x386   :  { %6535 = vmatpush1.bf16.msra.mxu1 %v10777_v13  ;;  %9475 = vmatpush3.bf16.msra.mxu0 %v10781_v15  ;;  %v10841_v13 = vld [vmem:[#allocation6 + $0x718] ss:$28 sps:$4 sm:$0xff]   ;;  %v10844_v15 = vld [vmem:[#allocation6 + $0x3cc] ss:$28 sps:$4 sm:$0xff]  }
 0x387   :  { %6536 = vmatprep.subr.bf16.mxu1 %v10784_v17  ;;  %9476 = vmatprep.subr.bf16.mxu0 %v10785_v18  ;;  %v10845_v17 = vld [vmem:[#allocation6 + $0x910] ss:$28 sps:$4 sm:$0xff]   ;;  %v10842_v18 = vld [vmem:[#allocation6 + $0x3c8] ss:$28 sps:$4 sm:$0xff]  }
 0x38a   :  { %6537 = vmatpush1.bf16.msra.mxu1 %v10782_v22  ;;  %9477 = vmatpush3.bf16.msra.mxu0 %v10786_v25  ;;  %v10846_v22 = vld [vmem:[#allocation6 + $0x750] ss:$28 sps:$4 sm:$0xff]   ;;  %v10849_v25 = vld [vmem:[#allocation6 + $0x404] ss:$28 sps:$4 sm:$0xff]  }
 0x38b   :  { %6538 = vmatprep.subr.bf16.mxu1 %v10789_v26  ;;  %9478 = vmatprep.subr.bf16.mxu0 %v10790_v28  ;;  %v10850_v26 = vld [vmem:[#allocation6 + $0x948] ss:$28 sps:$4 sm:$0xff]   ;;  %v10847_v28 = vld [vmem:[#allocation6 + $0x400] ss:$28 sps:$4 sm:$0xff]  }
 0x38e   :  { %6539 = vmatpush1.bf16.msra.mxu1 %v10787_v50  ;;  %9479 = vmatpush3.bf16.msra.mxu0 %v10791_v29  ;;  %v10851_v50 = vld [vmem:[#allocation6 + $0x788] ss:$28 sps:$4 sm:$0xff]   ;;  %v10855_v29 = vld [vmem:[#allocation6 + $0x980] ss:$28 sps:$4 sm:$0xff]  }
 0x38f   :  { %6540 = vmatprep.subr.bf16.mxu1 %v10794_v34  ;;  %9480 = vmatprep.subr.bf16.mxu0 %v10795_v37  ;;  %v10852_v34 = vld [vmem:[#allocation6 + $0x438] ss:$28 sps:$4 sm:$0xff]  }
 0x390   :  { %v10859_v37 = vld [vmem:[#allocation6 + $0x474] ss:$28 sps:$4 sm:$0xff]  }
 0x392   :  { %6541 = vmatpush1.bf16.msra.mxu1 %v10792_v38  ;;  %9481 = vmatpush3.bf16.msra.mxu0 %v10796_v41  ;;  %v10860_v38 = vld [vmem:[#allocation6 + $0x9b8] ss:$28 sps:$4 sm:$0xff]   ;;  %v10857_v41 = vld [vmem:[#allocation6 + $0x470] ss:$28 sps:$4 sm:$0xff]  }
 0x393   :  { %6542 = vmatprep.subr.bf16.mxu1 %v10799_v43  ;;  %9488 = vmatprep.subr.bf16.mxu0 %v10800_v44  ;;  %v10861_v43 = vld [vmem:[#allocation6 + $0x7f8] ss:$28 sps:$4 sm:$0xff]   ;;  %v10864_v44 = vld [vmem:[#allocation6 + $0x4ac] ss:$28 sps:$4 sm:$0xff]  }
 0x395   :  { %6731 = vmatmul.mubr.bf16.vlgmr.msra.gmra.mrb[16].mxu0 %v11581_v32 }
 0x396   :  { %6543 = vmatpush1.bf16.msra.mxu1 %v10797_v45  ;;  %9489 = vmatpush3.bf16.msra.mxu0 %v10801_v46  ;;  %v10865_v45 = vld [vmem:[#allocation6 + $0x9f0] ss:$28 sps:$4 sm:$0xff]   ;;  %v10862_v46 = vld [vmem:[#allocation6 + $0x4a8] ss:$28 sps:$4 sm:$0xff]  }
 0x397   :  { %6771 = vmatprep.mubr.bf16.mxu0 %v11587_v42  ;;  %6544 = vmatprep.subr.bf16.mxu1 %v10804_v47  ;;  %v10866_v47 = vld [vmem:[#allocation6 + $0x830] ss:$28 sps:$4 sm:$0xff]  }
 0x398   :  { %9490 = vmatprep.subr.bf16.mxu0 %v10805_v48  ;;  %v10869_v48 = vld [vmem:[#allocation6 + $0x4e4] ss:$28 sps:$4 sm:$0xff]  }
 0x39a   :  { %6545 = vmatpush1.bf16.msra.mxu1 %v10802_v49  ;;  %9491 = vmatpush3.bf16.msra.mxu0 %v10806_v51  ;;  %v10870_v49 = vld [vmem:[#allocation6 + $0xa28] ss:$28 sps:$4 sm:$0xff]   ;;  %v10867_v51 = vld [vmem:[#allocation6 + $0x4e0] ss:$28 sps:$4 sm:$0xff]  }
 0x39b   :  { %6546 = vmatprep.subr.bf16.mxu1 %v10809_v39  ;;  %9492 = vmatprep.subr.bf16.mxu0 %v10810_v52  ;;  %v10871_v39 = vld [vmem:[#allocation6 + $0x868] ss:$28 sps:$4 sm:$0xff]   ;;  %v10874_v52 = vld [vmem:[#allocation6 + $0x51c] ss:$28 sps:$4 sm:$0xff]  }
 0x39e   :  { %6547 = vmatpush1.bf16.msra.mxu1 %v10807_v54  ;;  %9493 = vmatpush3.bf16.msra.mxu0 %v10811_v55  ;;  %v10875_v54 = vld [vmem:[#allocation6 + $0xa60] ss:$28 sps:$4 sm:$0xff]   ;;  %v10872_v55 = vld [vmem:[#allocation6 + $0x518] ss:$28 sps:$4 sm:$0xff]  }
 0x39f   :  { %6548 = vmatprep.subr.bf16.mxu1 %v10814_v58  ;;  %9494 = vmatprep.subr.bf16.mxu0 %v10815_v61  ;;  %v10876_v58 = vld [vmem:[#allocation6 + $0x8a0] ss:$28 sps:$4 sm:$0xff]   ;;  %v10879_v61 = vld [vmem:[#allocation6 + $0x554] ss:$28 sps:$4 sm:$0xff]  }
 0x3a2   :  { %6549 = vmatpush1.bf16.msra.mxu1 %v10812_v62  ;;  %9495 = vmatpush3.bf16.msra.mxu0 %v10816_v36  ;;  %v10877_v62 = vld [vmem:[#allocation6 + $0x550] ss:$28 sps:$4 sm:$0xff]   ;;  %v10880_v36 = vld [vmem:[#allocation6 + $0xa98] ss:$28 sps:$4 sm:$0xff]  }
 0x3a3   :  { %6550 = vmatprep.subr.bf16.mxu1 %v10819_v6  ;;  %9496 = vmatprep.subr.bf16.mxu0 %v10820_v16  ;;  %v10883_v6 = vld [vmem:[#allocation6 + $0x58c] ss:$28 sps:$4 sm:$0xff]   ;;  %v11357_v16 = vmov 0.0  }
 0x3a6   :  { %6551 = vmatpush1.bf16.msra.mxu1 %v10817_v63  ;;  %9497 = vmatpush3.bf16.msra.mxu0 %v10821_v0  ;;  %v10881_v63 = vld [vmem:[#allocation6 + $0x588] ss:$28 sps:$4 sm:$0xff]   ;;  %v10884_v0 = vld [vmem:[#allocation6 + $0xad0] ss:$28 sps:$4 sm:$0xff]  }
 0x3a7   :  { %6552 = vmatprep.subr.bf16.mxu1 %v10824_v1  ;;  %9498 = vmatprep.subr.bf16.mxu0 %v10825_v5  ;;  %v10887_v1 = vld [vmem:[#allocation6 + $0x5c4] ss:$28 sps:$4 sm:$0xff]  }
 0x3a8   :  { %v10885_v5 = vld [vmem:[#allocation6 + $0x5c0] ss:$28 sps:$4 sm:$0xff]  }
 0x3aa   :  { %6553 = vmatpush1.bf16.msra.mxu1 %v10822_v19  ;;  %9499 = vmatpush3.bf16.msra.mxu0 %v10826_v14  ;;  %v10888_v19 = vld [vmem:[#allocation6 + $0xb08] ss:$28 sps:$4 sm:$0xff]   ;;  %v10891_v14 = vld [vmem:[#allocation6 + $0x5fc] ss:$28 sps:$4 sm:$0xff]  }
 0x3ab   :  { %6554 = vmatprep.subr.bf16.mxu1 %v10829_v4  ;;  %9500 = vmatprep.subr.bf16.mxu0 %v10830_v31  ;;  %v10889_v4 = vld [vmem:[#allocation6 + $0x5f8] ss:$28 sps:$4 sm:$0xff]   ;;  %v10892_v31 = vld [vmem:[#allocation6 + $0xb40] ss:$28 sps:$4 sm:$0xff]  }
 0x3ae   :  { %6555 = vmatpush1.bf16.msra.mxu1 %v10827_v33  ;;  %9501 = vmatpush3.bf16.msra.mxu0 %v10831_v24  ;;  %v10895_v33 = vld [vmem:[#allocation6 + $0x634] ss:$28 sps:$4 sm:$0xff]  }
 0x3af   :  { %6556 = vmatprep.subr.bf16.mxu1 %v10834_v7  ;;  %9502 = vmatprep.subr.bf16.mxu0 %v10835_v8  ;;  %v10893_v24 = vld [vmem:[#allocation6 + $0x630] ss:$28 sps:$4 sm:$0xff]   ;;  %v10896_v7 = vld [vmem:[#allocation6 + $0xb78] ss:$28 sps:$4 sm:$0xff]  }
 0x3b0   :  { %v10899_v8 = vld [vmem:[#allocation6 + $0x66c] ss:$28 sps:$4 sm:$0xff]  }
 0x3b2   :  { %6557 = vmatpush1.bf16.msra.mxu1 %v10832_v9  ;;  %9503 = vmatpush3.bf16.msra.mxu0 %v10836_v10  ;;  %v10897_v9 = vld [vmem:[#allocation6 + $0x668] ss:$28 sps:$4 sm:$0xff]   ;;  %v10900_v10 = vld [vmem:[#allocation6 + $0xbb0] ss:$28 sps:$4 sm:$0xff]  }
 0x3b3   :  { %6569 = vmatprep.subr.bf16.mxu1 %v10839_v11  ;;  %9510 = vmatprep.subr.bf16.mxu0 %v10840_v12  ;;  %v10903_v11 = vld [vmem:[#allocation6 + $0x6a4] ss:$28 sps:$4 sm:$0xff]  }
 0x3b4   :  { %v10901_v12 = vld [vmem:[#allocation6 + $0x6a0] ss:$28 sps:$4 sm:$0xff]  }
 0x3b5   :  { %6559 = vmatmul.mubr.bf16.vlgmr.msra.gmra.mrb[20].mxu1 %v11581_v32  ;;  %6772 = vmatmul.mubr.bf16.vlgmr.msra.gmra.mrb[20].mxu0 %v11585_v40  ;;  %v10854_v32 = vld [vmem:[#allocation6 + $0x43c] ss:$28 sps:$4 sm:$0xff]  }
 0x3b6   :  { %6570 = vmatpush1.bf16.msra.mxu1 %v10837_v35  ;;  %6601 = vmatprep.mubr.bf16.mxu1 %v11587_v42  ;;  %v10856_v42 = vld [vmem:[#allocation6 + $0x7c0] ss:$28 sps:$4 sm:$0xff]   ;;  %v10904_v35 = vld [vmem:[#allocation6 + $0xbe8] ss:$28 sps:$4 sm:$0xff]  }
 0x3b7   :  { %9511 = vmatpush3.bf16.msra.mxu0 %v10841_v13  ;;  %6812 = vmatprep.mubr.bf16.mxu0 %v11624_v57  ;;  %v10907_v13 = vld [vmem:[#allocation6 + $0x6dc] ss:$28 sps:$4 sm:$0xff]  }
 0x3b8   :  { %6571 = vmatprep.subr.bf16.mxu1 %v10844_v15  ;;  %9512 = vmatprep.subr.bf16.mxu0 %v10845_v17  ;;  %v10905_v15 = vld [vmem:[#allocation6 + $0x6d8] ss:$28 sps:$4 sm:$0xff]   ;;  %v10908_v17 = vld [vmem:[#allocation6 + $0xc20] ss:$28 sps:$4 sm:$0xff]  }
 0x3ba   :  { %6572 = vmatpush1.bf16.msra.mxu1 %v10842_v18  ;;  %v10911_v18 = vld [vmem:[#allocation6 + $0x714] ss:$28 sps:$4 sm:$0xff]  }
 0x3bb   :  { %9513 = vmatpush3.bf16.msra.mxu0 %v10846_v22  ;;  %6573 = vmatprep.subr.bf16.mxu1 %v10849_v25  ;;  %v10957_v22 = vld [vmem:[#allocation9 + $0xc8] ss:$12 sps:$4 sm:$0xff]  }
 0x3bc   :  { %9514 = vmatprep.subr.bf16.mxu0 %v10850_v26  ;;  %v10909_v25 = vld [vmem:[#allocation6 + $0x710] ss:$28 sps:$4 sm:$0xff]  }
 0x3bd   :  { %v10914_v26 = vld [vmem:[#allocation6 + $0x74c] ss:$28 sps:$4 sm:$0xff]  }
 0x3be   :  { %6574 = vmatpush1.bf16.msra.mxu1 %v10847_v28  ;;  %v10958_v28 = vld [vmem:[#allocation9 + $0x8] ss:$12 sps:$4 sm:$0xff]  }
 0x3bf   :  { %9515 = vmatpush3.bf16.msra.mxu0 %v10851_v50  ;;  %6575 = vmatprep.subr.bf16.mxu1 %v10854_v32  ;;  %v10962_v50 = vld [vmem:[#allocation9 + $0xe0] ss:$12 sps:$4 sm:$0xff]  }
 0x3c0   :  { %9516 = vmatprep.subr.bf16.mxu0 %v10855_v29  ;;  %v10912_v32 = vld [vmem:[#allocation6 + $0x748] ss:$28 sps:$4 sm:$0xff]  }
 0x3c1   :  { %v10917_v29 = vld [vmem:[#allocation6 + $0x784] ss:$28 sps:$4 sm:$0xff]  }
 0x3c2   :  { %6576 = vmatpush1.bf16.msra.mxu1 %v10852_v34  ;;  %v10963_v34 = vld [vmem:[#allocation9 + $0x20] ss:$12 sps:$4 sm:$0xff]  }
 0x3c3   :  { %9517 = vmatpush3.bf16.msra.mxu0 %v10856_v42  ;;  %6577 = vmatprep.subr.bf16.mxu1 %v10859_v37  ;;  %v10967_v42 = vld [vmem:[#allocation9 + $0xf8] ss:$12 sps:$4 sm:$0xff]  }
 0x3c4   :  { %9518 = vmatprep.subr.bf16.mxu0 %v10860_v38  ;;  %v10915_v37 = vld [vmem:[#allocation6 + $0x780] ss:$28 sps:$4 sm:$0xff]  }
 0x3c5   :  { %v10920_v38 = vld [vmem:[#allocation6 + $0x7bc] ss:$28 sps:$4 sm:$0xff]  }
 0x3c6   :  { %6578 = vmatpush1.bf16.msra.mxu1 %v10857_v41  ;;  %v10968_v41 = vld [vmem:[#allocation9 + $0x38] ss:$12 sps:$4 sm:$0xff]  }
 0x3c7   :  { %9519 = vmatpush3.bf16.msra.mxu0 %v10861_v43  ;;  %6579 = vmatprep.subr.bf16.mxu1 %v10864_v44  ;;  %v10918_v43 = vld [vmem:[#allocation6 + $0x7b8] ss:$28 sps:$4 sm:$0xff]  }
 0x3c8   :  { %9520 = vmatprep.subr.bf16.mxu0 %v10865_v45  ;;  %v10923_v44 = vld [vmem:[#allocation6 + $0x7f4] ss:$28 sps:$4 sm:$0xff]  }
 0x3c9   :  { %v10977_v45 = vld [vmem:[#allocation9 + $0x128] ss:$12 sps:$4 sm:$0xff]  }
 0x3ca   :  { %6580 = vmatpush1.bf16.msra.mxu1 %v10862_v46  ;;  %v10921_v46 = vld [vmem:[#allocation6 + $0x7f0] ss:$28 sps:$4 sm:$0xff]  }
 0x3cb   :  { %9521 = vmatpush3.bf16.msra.mxu0 %v10866_v47  ;;  %6581 = vmatprep.subr.bf16.mxu1 %v10869_v48  ;;  %v10926_v47 = vld [vmem:[#allocation6 + $0x82c] ss:$28 sps:$4 sm:$0xff]   ;;  %v10978_v48 = vld [vmem:[#allocation9 + $0x68] ss:$12 sps:$4 sm:$0xff]  }
 0x3cc   :  { %9522 = vmatprep.subr.bf16.mxu0 %v10870_v49  ;;  %v10982_v49 = vld [vmem:[#allocation9 + $0x140] ss:$12 sps:$4 sm:$0xff]  }
 0x3ce   :  { %6582 = vmatpush1.bf16.msra.mxu1 %v10867_v51  ;;  %v10924_v51 = vld [vmem:[#allocation6 + $0x828] ss:$28 sps:$4 sm:$0xff]  }
 0x3cf   :  { %9523 = vmatpush3.bf16.msra.mxu0 %v10871_v39  ;;  %6583 = vmatprep.subr.bf16.mxu1 %v10874_v52  ;;  %v10929_v39 = vld [vmem:[#allocation6 + $0x864] ss:$28 sps:$4 sm:$0xff]   ;;  %v10983_v52 = vld [vmem:[#allocation9 + $0x80] ss:$12 sps:$4 sm:$0xff]  }
 0x3d0   :  { %9524 = vmatprep.subr.bf16.mxu0 %v10875_v54  ;;  %v10987_v54 = vld [vmem:[#allocation9 + $0x158] ss:$12 sps:$4 sm:$0xff]  }
 0x3d2   :  { %6584 = vmatpush1.bf16.msra.mxu1 %v10872_v55  ;;  %v10927_v55 = vld [vmem:[#allocation6 + $0x860] ss:$28 sps:$4 sm:$0xff]  }
 0x3d3   :  { %9525 = vmatpush3.bf16.msra.mxu0 %v10876_v58  ;;  %6585 = vmatprep.subr.bf16.mxu1 %v10879_v61  ;;  %v10932_v58 = vld [vmem:[#allocation6 + $0x89c] ss:$28 sps:$4 sm:$0xff]   ;;  %v10988_v61 = vld [vmem:[#allocation9 + $0x98] ss:$12 sps:$4 sm:$0xff]  }
 0x3d4   :  { %9616 = vmatprep.subr.bf16.mxu0 %v11357_v16 }
 0x3d6   :  { %6813 = vmatmul.mubr.bf16.vlgmr.msra.gmra.mrb[24].mxu0 %v11622_v56  ;;  %6586 = vmatpush1.bf16.msra.mxu1 %v10877_v62  ;;  %v10992_v62 = vld [vmem:[#allocation9 + $0x170] ss:$12 sps:$4 sm:$0xff]  }
 0x3d7   :  { %9617 = vmatpush3.bf16.msra.mxu0 %v10880_v36  ;;  %6587 = vmatprep.subr.bf16.mxu1 %v10883_v6  ;;  %v10930_v36 = vld [vmem:[#allocation6 + $0x898] ss:$28 sps:$4 sm:$0xff]  }
 0x3d8   :  { %9618 = vmatprep.subr.bf16.mxu0 %v11357_v16  ;;  %9632 = vmatprep.mubr.msk.bf16.mxu0 %vm11358_vm0, %v11357_v16  ;;  %v10935_v6 = vld [vmem:[#allocation6 + $0x8d4] ss:$28 sps:$4 sm:$0xff]  }
 0x3da   :  { %6588 = vmatpush1.bf16.msra.mxu1 %v10881_v63  ;;  %v10993_v63 = vld [vmem:[#allocation9 + $0xb0] ss:$12 sps:$4 sm:$0xff]  }
 0x3db   :  { %9619 = vmatpush3.bf16.msra.mxu0 %v10884_v0  ;;  %6589 = vmatprep.subr.bf16.mxu1 %v10887_v1  ;;  %v10997_v0 = vld [vmem:[#allocation9 + $0x248] ss:$12 sps:$4 sm:$0xff]  }
 0x3dc   :  { %9620 = vmatprep.subr.bf16.mxu0 %v11357_v16  ;;  %v10933_v1 = vld [vmem:[#allocation6 + $0x8d0] ss:$28 sps:$4 sm:$0xff]  }
 0x3de   :  { %6590 = vmatpush1.bf16.msra.mxu1 %v10885_v5  ;;  %v10938_v5 = vld [vmem:[#allocation6 + $0x90c] ss:$28 sps:$4 sm:$0xff]  }
 0x3df   :  { %9621 = vmatpush3.bf16.msra.mxu0 %v10888_v19  ;;  %6591 = vmatprep.subr.bf16.mxu1 %v10891_v14  ;;  %v10936_v19 = vld [vmem:[#allocation6 + $0x908] ss:$28 sps:$4 sm:$0xff]  }
 0x3e0   :  { %9622 = vmatprep.subr.bf16.mxu0 %v11357_v16  ;;  %v10941_v14 = vld [vmem:[#allocation6 + $0x944] ss:$28 sps:$4 sm:$0xff]  }
 0x3e2   :  { %6592 = vmatpush1.bf16.msra.mxu1 %v10889_v4  ;;  %v10939_v4 = vld [vmem:[#allocation6 + $0x940] ss:$28 sps:$4 sm:$0xff]  }
 0x3e3   :  { %9623 = vmatpush3.bf16.msra.mxu0 %v10892_v31  ;;  %6593 = vmatprep.subr.bf16.mxu1 %v10895_v33  ;;  %v10944_v31 = vld [vmem:[#allocation6 + $0x97c] ss:$28 sps:$4 sm:$0xff]  }
 0x3e4   :  { %9624 = vmatprep.subr.bf16.mxu0 %v11357_v16  ;;  %v10942_v33 = vld [vmem:[#allocation6 + $0x978] ss:$28 sps:$4 sm:$0xff]  }
 0x3e6   :  { %6594 = vmatpush1.bf16.msra.mxu1 %v10893_v24  ;;  %v10947_v24 = vld [vmem:[#allocation6 + $0x9b4] ss:$28 sps:$4 sm:$0xff]  }
 0x3e7   :  { %9625 = vmatpush3.bf16.msra.mxu0 %v10896_v7  ;;  %6595 = vmatprep.subr.bf16.mxu1 %v10899_v8  ;;  %v10945_v7 = vld [vmem:[#allocation6 + $0x9b0] ss:$28 sps:$4 sm:$0xff]  }
 0x3e8   :  { %9626 = vmatprep.subr.bf16.mxu0 %v11357_v16  ;;  %v10950_v8 = vld [vmem:[#allocation6 + $0x9ec] ss:$28 sps:$4 sm:$0xff]  }
 0x3ea   :  { %6596 = vmatpush1.bf16.msra.mxu1 %v10897_v9  ;;  %v10948_v9 = vld [vmem:[#allocation6 + $0x9e8] ss:$28 sps:$4 sm:$0xff]  }
 0x3eb   :  { %9627 = vmatpush3.bf16.msra.mxu0 %v10900_v10  ;;  %6597 = vmatprep.subr.bf16.mxu1 %v10903_v11  ;;  %v10953_v10 = vld [vmem:[#allocation6 + $0xa24] ss:$28 sps:$4 sm:$0xff]  }
 0x3ec   :  { %9628 = vmatprep.subr.bf16.mxu0 %v11357_v16  ;;  %v10951_v11 = vld [vmem:[#allocation6 + $0xa20] ss:$28 sps:$4 sm:$0xff]  }
 0x3ee   :  { %6598 = vmatpush1.bf16.msra.mxu1 %v10901_v12  ;;  %v10956_v12 = vld [vmem:[#allocation6 + $0xa5c] ss:$28 sps:$4 sm:$0xff]  }
 0x3ef   :  { %9629 = vmatpush3.bf16.msra.mxu0 %v10904_v35  ;;  %6599 = vmatprep.subr.bf16.mxu1 %v10907_v13  ;;  %v10954_v35 = vld [vmem:[#allocation6 + $0xa58] ss:$28 sps:$4 sm:$0xff]  }
 0x3f0   :  { %9630 = vmatprep.subr.bf16.mxu0 %v11357_v16  ;;  %v10961_v13 = vld [vmem:[#allocation6 + $0xa94] ss:$28 sps:$4 sm:$0xff]  }
 0x3f2   :  { %6600 = vmatpush1.bf16.msra.mxu1 %v10905_v15  ;;  %v10959_v15 = vld [vmem:[#allocation6 + $0xa90] ss:$28 sps:$4 sm:$0xff]  }
 0x3f3   :  { %9631 = vmatpush3.bf16.msra.mxu0 %v10908_v17  ;;  %6612 = vmatprep.subr.bf16.mxu1 %v10911_v18  ;;  %v10966_v17 = vld [vmem:[#allocation6 + $0xacc] ss:$28 sps:$4 sm:$0xff]  }
 0x3f4   :  { %9541 = vmatprep.subr.bf16.mxu0 %v10957_v22  ;;  %v10964_v18 = vld [vmem:[#allocation6 + $0xac8] ss:$28 sps:$4 sm:$0xff]  }
 0x3f5   :  { %6602 = vmatmul.mubr.bf16.vlgmr.msra.gmra.mrb[20].mxu1 %v11585_v40  ;;  %v10972_v40 = vld [vmem:[#allocation9 + $0x110] ss:$12 sps:$4 sm:$0xff]  }
 0x3f6   :  { %9633 = vmatmul.mubr.bf16.vlgmr.msra.gmra.mrb[28].mxu0 %v11642_v3  ;;  %6613 = vmatpush1.bf16.msra.mxu1 %v10909_v25  ;;  %v10971_v22 = vld [vmem:[#allocation6 + $0xb04] ss:$28 sps:$4 sm:$0xff]  }
 0x3f7   :  { %6644 = vmatprep.mubr.bf16.mxu1 %v11624_v57  ;;  %6614 = vmatprep.subr.bf16.mxu1 %v10914_v26  ;;  %v10973_v57 = vld [vmem:[#allocation9 + $0x50] ss:$12 sps:$4 sm:$0xff]   ;;  %v10969_v25 = vld [vmem:[#allocation6 + $0xb00] ss:$28 sps:$4 sm:$0xff]  }
 0x3f8   :  { %9542 = vmatpush3.bf16.msra.mxu0 %v10958_v28  ;;  %v10976_v26 = vld [vmem:[#allocation6 + $0xb3c] ss:$28 sps:$4 sm:$0xff]  }
 0x3f9   :  { %9543 = vmatprep.subr.bf16.mxu0 %v10962_v50  ;;  %v10974_v28 = vld [vmem:[#allocation6 + $0xb38] ss:$28 sps:$4 sm:$0xff]  }
 0x3fa   :  { %6615 = vmatpush1.bf16.msra.mxu1 %v10912_v32  ;;  %v10981_v50 = vld [vmem:[#allocation6 + $0xb74] ss:$28 sps:$4 sm:$0xff]  }
 0x3fb   :  { %6616 = vmatprep.subr.bf16.mxu1 %v10917_v29  ;;  %v10979_v32 = vld [vmem:[#allocation6 + $0xb70] ss:$28 sps:$4 sm:$0xff]   ;;  %v11670_v29 = vld [vmem:[#allocation7] sm:$0xff] }
 0x3fc   :  { %9544 = vmatpush3.bf16.msra.mxu0 %v10963_v34  ;;  %v4134_v34 = vrot.slane %v11670_v29, %v11567_v27 }
 0x3fd   :  { %9545 = vmatprep.subr.bf16.mxu0 %v10967_v42  ;;  %v4142_v42 = vrot.slane %v11670_v29, %v11573_v59 }
 0x3fe   :  { %6617 = vmatpush1.bf16.msra.mxu1 %v10915_v37  ;;  %v10984_v37 = vld [vmem:[#allocation6 + $0xba8] ss:$28 sps:$4 sm:$0xff]  }
 0x3ff   :  { %6618 = vmatprep.subr.bf16.mxu1 %v10920_v38  ;;  %v4138_v38 = vrot.slane %v11670_v29, %v11570_v30 }
 0x400   :  { %9546 = vmatpush3.bf16.msra.mxu0 %v10968_v41  ;;  %v4146_v41 = vrot.slane %v11670_v29, %v655_v60  ;;  %v10996_v60 = vld [vmem:[#allocation6 + $0xc1c] ss:$28 sps:$4 sm:$0xff]  }
 0x401   :  { %9547 = vmatprep.subr.bf16.mxu0 %v10972_v40  ;;  %v10991_v40 = vld [vmem:[#allocation6 + $0xbe4] ss:$28 sps:$4 sm:$0xff]  }
 0x402   :  { %6619 = vmatpush1.bf16.msra.mxu1 %v10918_v43 }
 0x403   :  { %6620 = vmatprep.subr.bf16.mxu1 %v10923_v44 }
 0x404   :  { %9548 = vmatpush3.bf16.msra.mxu0 %v10973_v57 }
 0x405   :  { %9549 = vmatprep.subr.bf16.mxu0 %v10977_v45 }
 0x406   :  { %6621 = vmatpush1.bf16.msra.mxu1 %v10921_v46 }
 0x407   :  { %6622 = vmatprep.subr.bf16.mxu1 %v10926_v47 }
 0x408   :  { %9550 = vmatpush3.bf16.msra.mxu0 %v10978_v48 }
 0x409   :  { %9551 = vmatprep.subr.bf16.mxu0 %v10982_v49 }
 0x40a   :  { %6623 = vmatpush1.bf16.msra.mxu1 %v10924_v51 }
 0x40b   :  { %6624 = vmatprep.subr.bf16.mxu1 %v10929_v39 }
 0x40c   :  { %9552 = vmatpush3.bf16.msra.mxu0 %v10983_v52  ;;  %v10989_v52 = vld [vmem:[#allocation6 + $0xbe0] ss:$28 sps:$4 sm:$0xff]  }
 0x40d   :  { %9553 = vmatprep.subr.bf16.mxu0 %v10987_v54 }
 0x40e   :  { %6625 = vmatpush1.bf16.msra.mxu1 %v10927_v55 }
 0x40f   :  { %6626 = vmatprep.subr.bf16.mxu1 %v10932_v58 }
 0x410   :  { %9554 = vmatpush3.bf16.msra.mxu0 %v10988_v61 }
 0x411   :  { %9555 = vmatprep.subr.bf16.mxu0 %v10992_v62 }
 0x412   :  { %6627 = vmatpush1.bf16.msra.mxu1 %v10930_v36 }
 0x413   :  { %6628 = vmatprep.subr.bf16.mxu1 %v10935_v6 }
 0x414   :  { %9556 = vmatpush3.bf16.msra.mxu0 %v10993_v63 }
 0x415   :  { %9563 = vmatprep.subr.bf16.mxu0 %v10997_v0 }
 0x416   :  { %6629 = vmatpush1.bf16.msra.mxu1 %v10933_v1 }
 0x417   :  { %6630 = vmatprep.subr.bf16.mxu1 %v10938_v5 }
 0x41a   :  { %6631 = vmatpush1.bf16.msra.mxu1 %v10936_v19 }
 0x41b   :  { %6632 = vmatprep.subr.bf16.mxu1 %v10941_v14 }
 0x41e   :  { %6633 = vmatpush1.bf16.msra.mxu1 %v10939_v4 }
 0x41f   :  { %6634 = vmatprep.subr.bf16.mxu1 %v10944_v31  ;;  %v10994_v31 = vld [vmem:[#allocation6 + $0xc18] ss:$28 sps:$4 sm:$0xff]  }
 0x422   :  { %6635 = vmatpush1.bf16.msra.mxu1 %v10942_v33 }
 0x423   :  { %6636 = vmatprep.subr.bf16.mxu1 %v10947_v24 }
 0x426   :  { %6637 = vmatpush1.bf16.msra.mxu1 %v10945_v7  ;;  %v11001_v7 = vld [vmem:[#allocation9 + $0x4] ss:$12 sps:$4 sm:$0xff]  }
 0x427   :  { %6638 = vmatprep.subr.bf16.mxu1 %v10950_v8 }
 0x42a   :  { %6639 = vmatpush1.bf16.msra.mxu1 %v10948_v9 }
 0x42b   :  { %6640 = vmatprep.subr.bf16.mxu1 %v10953_v10  ;;  %v10998_v10 = vld [vmem:[#allocation9 + $0x188] ss:$12 sps:$4 sm:$0xff]  }
 0x42e   :  { %6641 = vmatpush1.bf16.msra.mxu1 %v10951_v11  ;;  %v11002_v11 = vld [vmem:[#allocation9 + $0x260] ss:$12 sps:$4 sm:$0xff]  }
 0x42f   :  { %6642 = vmatprep.subr.bf16.mxu1 %v10956_v12  ;;  %v10999_v12 = vld [vmem:[#allocation9] ss:$12 sps:$4 sm:$0xff]  }
 0x432   :  { %6643 = vmatpush1.bf16.msra.mxu1 %v10954_v35  ;;  %v11006_v35 = vld [vmem:[#allocation9 + $0x1c] ss:$12 sps:$4 sm:$0xff]  }
 0x433   :  { %6655 = vmatprep.subr.bf16.mxu1 %v10961_v13  ;;  %v11003_v13 = vld [vmem:[#allocation9 + $0x1a0] ss:$12 sps:$4 sm:$0xff]  }
 0x435   :  { %6645 = vmatmul.mubr.bf16.vlgmr.msra.gmra.mrb[20].mxu1 %v11622_v56  ;;  %v10986_v56 = vld [vmem:[#allocation6 + $0xbac] ss:$28 sps:$4 sm:$0xff]  }
 0x436   :  { %6656 = vmatpush1.bf16.msra.mxu1 %v10959_v15  ;;  %6687 = vmatprep.mubr.bf16.mxu1 %v11356_v2  ;;  %v11007_v15 = vld [vmem:[#allocation9 + $0x278] ss:$12 sps:$4 sm:$0xff]  }
 0x437   :  { %6657 = vmatprep.subr.bf16.mxu1 %v10966_v17  ;;  %v11004_v17 = vld [vmem:[#allocation9 + $0x18] ss:$12 sps:$4 sm:$0xff]  }
 0x43a   :  { %6658 = vmatpush1.bf16.msra.mxu1 %v10964_v18  ;;  %v11011_v18 = vld [vmem:[#allocation9 + $0x34] ss:$12 sps:$4 sm:$0xff]  }
 0x43b   :  { %6659 = vmatprep.subr.bf16.mxu1 %v10971_v22  ;;  %v11008_v22 = vld [vmem:[#allocation9 + $0x1b8] ss:$12 sps:$4 sm:$0xff]  }
 0x43e   :  { %6660 = vmatpush1.bf16.msra.mxu1 %v10969_v25  ;;  %v11012_v25 = vld [vmem:[#allocation9 + $0x290] ss:$12 sps:$4 sm:$0xff]  }
 0x43f   :  { %6661 = vmatprep.subr.bf16.mxu1 %v10976_v26  ;;  %v11009_v26 = vld [vmem:[#allocation9 + $0x30] ss:$12 sps:$4 sm:$0xff]  }
 0x442   :  { %6662 = vmatpush1.bf16.msra.mxu1 %v10974_v28  ;;  %v11016_v28 = vld [vmem:[#allocation9 + $0x4c] ss:$12 sps:$4 sm:$0xff]  }
 0x443   :  { %6663 = vmatprep.subr.bf16.mxu1 %v10981_v50  ;;  %v11013_v50 = vld [vmem:[#allocation9 + $0x1d0] ss:$12 sps:$4 sm:$0xff]  }
 0x446   :  { %6664 = vmatpush1.bf16.msra.mxu1 %v10979_v32  ;;  %v11017_v32 = vld [vmem:[#allocation9 + $0x2a8] ss:$12 sps:$4 sm:$0xff]  }
 0x447   :  { %6665 = vmatprep.subr.bf16.mxu1 %v10986_v56  ;;  %v11021_v56 = vld [vmem:[#allocation9 + $0x64] ss:$12 sps:$4 sm:$0xff]  }
 0x448   :  { %v6345_v43 = vpop.f32.mrb[16].mxu1  ;;  %v6517_v44 = vpop.f32.mrb[12].mxu0 }
 0x449   :  { %v9668_v57 = vadd.f32 %v6345_v43, %v4134_v34  ;;  %v9672_v45 = vadd.f32 %v6517_v44, %v4142_v42  ;;  %v6347_v46 = vpop.f32.mrb[17].mxu1  ;;  %v6519_v47 = vpop.f32.mrb[13].mxu0  ;;  %v11024_v43 = vld [vmem:[#allocation9 + $0x78] ss:$12 sps:$4 sm:$0xff]   ;;  %v11031_v44 = vld [vmem:[#allocation9 + $0x94] ss:$12 sps:$4 sm:$0xff]  }
 0x44a   :  { %v9669_v48 = vadd.f32 %v6347_v46, %v4138_v38  ;;  %v9673_v49 = vadd.f32 %v6519_v47, %v4146_v41  ;;  %6666 = vmatpush1.bf16.msra.mxu1 %v10984_v37  ;;  %v6349_v51 = vpop.f32.mrb[18].mxu1  ;;  %v6521_v39 = vpop.f32.mrb[14].mxu0  ;;  %v11019_v37 = vld [vmem:[#allocation9 + $0x60] ss:$12 sps:$4 sm:$0xff]   ;;  %v11032_v47 = vld [vmem:[#allocation9 + $0x2f0] ss:$12 sps:$4 sm:$0xff]  }
 0x44b   :  { %v9670_v54 = vadd.f32 %v6349_v51, %v4134_v34  ;;  %v9674_v55 = vadd.f32 %v6521_v39, %v4142_v42  ;;  %v6351_v58 = vpop.f32.mrb[19].mxu1  ;;  %v6523_v61 = vpop.f32.mrb[15].mxu0  ;;  %6667 = vmatprep.subr.bf16.mxu1 %v10991_v40  ;;  %v6862_v6 = vmax.f32 %v9668_v57, 0.0  ;;  %v6864_v63 = vmax.f32 %v9672_v45, 0.0  ;;  %v11018_v34 = vld [vmem:[#allocation9 + $0x1e8] ss:$12 sps:$4 sm:$0xff]  }
 0x44c   :  { %v9671_v62 = vadd.f32 %v6351_v58, %v4138_v38  ;;  %v9675_v36 = vadd.f32 %v6523_v61, %v4146_v41  ;;  %v6863_v5 = vmax.f32 %v9669_v48, 0.0  ;;  %v6865_v19 = vmax.f32 %v9673_v49, 0.0  ;;  %v11022_v42 = vld [vmem:[#allocation9 + $0x2c0] ss:$12 sps:$4 sm:$0xff]   ;;  %v11026_v38 = vld [vmem:[#allocation9 + $0x7c] ss:$12 sps:$4 sm:$0xff]  }
 0x44d   :  { %v6869_v0 = vmax.f32 %v9670_v54, 0.0  ;;  %v6871_v1 = vmax.f32 %v9674_v55, 0.0  ;;  %v11023_v41 = vld [vmem:[#allocation9 + $0x200] ss:$12 sps:$4 sm:$0xff]   ;;  %v11027_v40 = vld [vmem:[#allocation9 + $0x2d8] ss:$12 sps:$4 sm:$0xff]  }
 0x44e   :  { %v6870_v14 = vmax.f32 %v9671_v62, 0.0  ;;  %v6872_v4 = vmax.f32 %v9675_v36, 0.0  ;;  %6668 = vmatpush1.bf16.msra.mxu1 %v10989_v52  ;;  %v11028_v45 = vld [vmem:[#allocation9 + $0x218] ss:$12 sps:$4 sm:$0xff]   ;;  %v11029_v51 = vld [vmem:[#allocation9 + $0x90] ss:$12 sps:$4 sm:$0xff]  }
 0x44f   :  { %v11681_v33 = vpack.c.bf16 %v6869_v0, %v6862_v6  ;;  %v11683_v24 = vpack.c.bf16 %v6871_v1, %v6864_v63  ;;  %6669 = vmatprep.subr.bf16.mxu1 %v10996_v60  ;;  %v11036_v52 = vld [vmem:[#allocation9 + $0xac] ss:$12 sps:$4 sm:$0xff]   ;;  %v11033_v55 = vld [vmem:[#allocation9 + $0x230] ss:$12 sps:$4 sm:$0xff]   ;;  %v11034_v58 = vld [vmem:[#allocation9 + $0xa8] ss:$12 sps:$4 sm:$0xff]  }
 0x450   :  { %v6877_v8 = vpack.c.bf16 %v6870_v14, %v6863_v5  ;;  %v11685_v9 = vpack.c.bf16 %v6872_v4, %v6865_v19  ;;  %v11039_v61 = vld [vmem:[#allocation9 + $0xc4] ss:$12 sps:$4 sm:$0xff]   ;;  %v11037_v60 = vld [vmem:[#allocation9 + $0xc0] ss:$12 sps:$4 sm:$0xff]   ;;  %v11042_v62 = vld [vmem:[#allocation9 + $0xdc] ss:$12 sps:$4 sm:$0xff]  }
 0x451   :  { %v11136_v36 = vld [vmem:[#allocation9 + $0x3c8] ss:$12 sps:$4 sm:$0xff]   ;;  %v11040_v6 = vld [vmem:[#allocation9 + $0xd8] ss:$12 sps:$4 sm:$0xff]   ;;  %v11141_v1 = vld [vmem:[#allocation9 + $0x3e0] ss:$12 sps:$4 sm:$0xff]  }
 0x452   :  { %6670 = vmatpush1.bf16.msra.mxu1 %v10994_v31  ;;  %8224 = vmatprep.mubr.bf16.mxu0 %v6877_v8  ;;  %v11137_v63 = vld [vmem:[#allocation9 + $0x308] ss:$12 sps:$4 sm:$0xff]   ;;  %v11043_v5 = vld [vmem:[#allocation9 + $0xf0] ss:$12 sps:$4 sm:$0xff]   ;;  %v11142_v19 = vld [vmem:[#allocation9 + $0x320] ss:$12 sps:$4 sm:$0xff]  }
 0x453   :  { %8225 = vmatmul.mubr.bf16.vlgmr.msra.gmra.mrb[32].mxu0 %v11681_v33  ;;  %8020 = vmatprep.subr.bf16.mxu1 %v11001_v7  ;;  %v11045_v0 = vld [vmem:[#allocation9 + $0xf4] ss:$12 sps:$4 sm:$0xff]   ;;  %v11048_v14 = vld [vmem:[#allocation9 + $0x10c] ss:$12 sps:$4 sm:$0xff]  }
 0x454   :  { %9564 = vmatpush3.bf16.msra.mxu0 %v10998_v10  ;;  %8265 = vmatprep.mubr.bf16.mxu0 %v11685_v9  ;;  %v11146_v4 = vld [vmem:[#allocation9 + $0x3f8] ss:$12 sps:$4 sm:$0xff]   ;;  %v11046_v31 = vld [vmem:[#allocation9 + $0x108] ss:$12 sps:$4 sm:$0xff]   ;;  %v11151_v10 = vld [vmem:[#allocation9 + $0x410] ss:$12 sps:$4 sm:$0xff]  }
 0x455   :  { %6688 = vmatmul.mubr.bf16.vlgmr.msra.gmra.mrb[20].mxu1 %v11642_v3  ;;  %9565 = vmatprep.subr.bf16.mxu0 %v11002_v11  ;;  %v11014_v3 = vld [vmem:[#allocation9 + $0x48] ss:$12 sps:$4 sm:$0xff]   ;;  %v11147_v7 = vld [vmem:[#allocation9 + $0x338] ss:$12 sps:$4 sm:$0xff]   ;;  %v11049_v11 = vld [vmem:[#allocation9 + $0x120] ss:$12 sps:$4 sm:$0xff]  }
 0x456   :  { %8021 = vmatpush1.bf16.msra.mxu1 %v10999_v12  ;;  %8052 = vmatprep.mubr.bf16.mxu1 %v6877_v8  ;;  %v11051_v8 = vld [vmem:[#allocation9 + $0x124] ss:$12 sps:$4 sm:$0xff]  }
 0x457   :  { %8022 = vmatprep.subr.bf16.mxu1 %v11006_v35  ;;  %v11152_v12 = vld [vmem:[#allocation9 + $0x350] ss:$12 sps:$4 sm:$0xff]  }
 0x458   :  { %9566 = vmatpush3.bf16.msra.mxu0 %v11003_v13  ;;  %v11054_v35 = vld [vmem:[#allocation9 + $0x13c] ss:$12 sps:$4 sm:$0xff]  }
 0x459   :  { %9567 = vmatprep.subr.bf16.mxu0 %v11007_v15  ;;  %v11156_v13 = vld [vmem:[#allocation9 + $0x428] ss:$12 sps:$4 sm:$0xff]   ;;  %v4158_v15 = vrot.slane %v11670_v29, %v667_v20 }
 0x45a   :  { %8023 = vmatpush1.bf16.msra.mxu1 %v11004_v17  ;;  %v11052_v17 = vld [vmem:[#allocation9 + $0x138] ss:$12 sps:$4 sm:$0xff]  }
 0x45b   :  { %8024 = vmatprep.subr.bf16.mxu1 %v11011_v18  ;;  %v11157_v18 = vld [vmem:[#allocation9 + $0x368] ss:$12 sps:$4 sm:$0xff]  }
 0x45c   :  { %9568 = vmatpush3.bf16.msra.mxu0 %v11008_v22  ;;  %v11057_v22 = vld [vmem:[#allocation9 + $0x154] ss:$12 sps:$4 sm:$0xff]  }
 0x45d   :  { %9569 = vmatprep.subr.bf16.mxu0 %v11012_v25  ;;  %v11161_v25 = vld [vmem:[#allocation9 + $0x440] ss:$12 sps:$4 sm:$0xff]  }
 0x45e   :  { %8025 = vmatpush1.bf16.msra.mxu1 %v11009_v26 }
 0x45f   :  { %8026 = vmatprep.subr.bf16.mxu1 %v11016_v28 }
 0x460   :  { %9570 = vmatpush3.bf16.msra.mxu0 %v11013_v50 }
 0x461   :  { %9571 = vmatprep.subr.bf16.mxu0 %v11017_v32 }
 0x462   :  { %8027 = vmatpush1.bf16.msra.mxu1 %v11014_v3 }
 0x463   :  { %8028 = vmatprep.subr.bf16.mxu1 %v11021_v56  ;;  %v11055_v56 = vld [vmem:[#allocation9 + $0x150] ss:$12 sps:$4 sm:$0xff]  }
 0x464   :  { %9572 = vmatpush3.bf16.msra.mxu0 %v11018_v34 }
 0x465   :  { %9573 = vmatprep.subr.bf16.mxu0 %v11022_v42  ;;  %v11060_v42 = vld [vmem:[#allocation9 + $0x16c] ss:$12 sps:$4 sm:$0xff]  }
 0x466   :  { %8029 = vmatpush1.bf16.msra.mxu1 %v11019_v37 }
 0x467   :  { %8030 = vmatprep.subr.bf16.mxu1 %v11026_v38 }
 0x468   :  { %v9482_v57 = vpop.f32.mrb[16].mxu0  ;;  %9574 = vmatpush3.bf16.msra.mxu0 %v11023_v41 }
 0x469   :  { %v9483_v46 = vpop.f32.mrb[17].mxu0  ;;  %9575 = vmatprep.subr.bf16.mxu0 %v11027_v40  ;;  %v11058_v40 = vld [vmem:[#allocation9 + $0x168] ss:$12 sps:$4 sm:$0xff]  }
 0x46a   :  { %v11690_v48 = vadd.f32 %v9483_v46, %v9482_v57  ;;  %v9485_v49 = vpop.f32.mrb[18].mxu0  ;;  %8031 = vmatpush1.bf16.msra.mxu1 %v11024_v43  ;;  %v11063_v43 = vld [vmem:[#allocation9 + $0x184] ss:$12 sps:$4 sm:$0xff]   ;;  %v11066_v57 = vld [vmem:[#allocation9 + $0x19c] ss:$12 sps:$4 sm:$0xff]  }
 0x46b   :  { %v9486_v39 = vpop.f32.mrb[19].mxu0  ;;  %8032 = vmatprep.subr.bf16.mxu1 %v11031_v44  ;;  %v11061_v44 = vld [vmem:[#allocation9 + $0x180] ss:$12 sps:$4 sm:$0xff]  }
 0x46c   :  { %v11692_v54 = vadd.f32 %v9486_v39, %v9485_v49  ;;  %9576 = vmatpush3.bf16.msra.mxu0 %v11028_v45  ;;  %v6733_v50 = vadd.f32 %v11690_v48, %v4158_v15  ;;  %v11064_v45 = vld [vmem:[#allocation9 + $0x198] ss:$12 sps:$4 sm:$0xff]   ;;  %v11069_v46 = vld [vmem:[#allocation9 + $0x1b4] ss:$12 sps:$4 sm:$0xff]  }
 0x46d   :  { %9577 = vmatprep.subr.bf16.mxu0 %v11032_v47  ;;  %v11067_v47 = vld [vmem:[#allocation9 + $0x1b0] ss:$12 sps:$4 sm:$0xff]   ;;  %v11072_v48 = vld [vmem:[#allocation9 + $0x1cc] ss:$12 sps:$4 sm:$0xff]   ;;  %v11070_v49 = vld [vmem:[#allocation9 + $0x1c8] ss:$12 sps:$4 sm:$0xff]  }
 0x46e   :  { %8033 = vmatpush1.bf16.msra.mxu1 %v11029_v51  ;;  %v6736_v20 = vadd.f32 %v11692_v54, %v4158_v15  ;;  %v11075_v51 = vld [vmem:[#allocation9 + $0x1e4] ss:$12 sps:$4 sm:$0xff]   ;;  %v11073_v39 = vld [vmem:[#allocation9 + $0x1e0] ss:$12 sps:$4 sm:$0xff]   ;;  %v11094_v15 = vld [vmem:[#allocation9 + $0x288] ss:$12 sps:$4 sm:$0xff]  }
 0x46f   :  { %8034 = vmatprep.subr.bf16.mxu1 %v11036_v52  ;;  %v11078_v52 = vld [vmem:[#allocation9 + $0x1fc] ss:$12 sps:$4 sm:$0xff]   ;;  %v11162_v54 = vld [vmem:[#allocation9 + $0x380] ss:$12 sps:$4 sm:$0xff]  }
 0x470   :  { %9578 = vmatpush3.bf16.msra.mxu0 %v11033_v55 }
 0x471   :  { %9585 = vmatprep.subr.bf16.mxu0 %v11136_v36 }
 0x472   :  { %8035 = vmatpush1.bf16.msra.mxu1 %v11034_v58 }
 0x473   :  { %8266 = vmatmul.mubr.bf16.vlgmr.msra.gmra.mrb[36].mxu0 %v11683_v24  ;;  %8036 = vmatprep.subr.bf16.mxu1 %v11039_v61  ;;  %v11079_v61 = vld [vmem:[#allocation9 + $0x210] ss:$12 sps:$4 sm:$0xff]  }
 0x474   :  { %9586 = vmatpush3.bf16.msra.mxu0 %v11137_v63  ;;  %v11167_v63 = vld [vmem:[#allocation9 + $0x398] ss:$12 sps:$4 sm:$0xff]  }
 0x475   :  { %9587 = vmatprep.subr.bf16.mxu0 %v11141_v1 }
 0x476   :  { %8037 = vmatpush1.bf16.msra.mxu1 %v11037_v60  ;;  %v11166_v60 = vld [vmem:[#allocation9 + $0x458] ss:$12 sps:$4 sm:$0xff]  }
 0x477   :  { %8038 = vmatprep.subr.bf16.mxu1 %v11042_v62 }
 0x478   :  { %9588 = vmatpush3.bf16.msra.mxu0 %v11142_v19  ;;  %v11171_v19 = vld [vmem:[#allocation9 + $0x470] ss:$12 sps:$4 sm:$0xff]  }
 0x479   :  { %9589 = vmatprep.subr.bf16.mxu0 %v11146_v4  ;;  %v11172_v4 = vld [vmem:[#allocation9 + $0x3b0] ss:$12 sps:$4 sm:$0xff]  }
 0x47a   :  { %8039 = vmatpush1.bf16.msra.mxu1 %v11040_v6  ;;  %v11084_v6 = vld [vmem:[#allocation9 + $0x22c] ss:$12 sps:$4 sm:$0xff]  }
 0x47b   :  { %8040 = vmatprep.subr.bf16.mxu1 %v11045_v0 }
 0x47c   :  { %9590 = vmatpush3.bf16.msra.mxu0 %v11147_v7 }
 0x47d   :  { %9591 = vmatprep.subr.bf16.mxu0 %v11151_v10  ;;  %v11090_v10 = vld [vmem:[#allocation9 + $0x25c] ss:$12 sps:$4 sm:$0xff]  }
 0x47e   :  { %8041 = vmatpush1.bf16.msra.mxu1 %v11043_v5 }
 0x47f   :  { %8042 = vmatprep.subr.bf16.mxu1 %v11048_v14  ;;  %v11082_v14 = vld [vmem:[#allocation9 + $0x228] ss:$12 sps:$4 sm:$0xff]  }
 0x480   :  { %9592 = vmatpush3.bf16.msra.mxu0 %v11152_v12  ;;  %v11093_v12 = vld [vmem:[#allocation9 + $0x274] ss:$12 sps:$4 sm:$0xff]  }
 0x481   :  { %9593 = vmatprep.subr.bf16.mxu0 %v11156_v13  ;;  %v11096_v13 = vld [vmem:[#allocation9 + $0x28c] ss:$12 sps:$4 sm:$0xff]  }
 0x482   :  { %8043 = vmatpush1.bf16.msra.mxu1 %v11046_v31  ;;  %v11087_v31 = vld [vmem:[#allocation9 + $0x244] ss:$12 sps:$4 sm:$0xff]  }
 0x483   :  { %8044 = vmatprep.subr.bf16.mxu1 %v11051_v8  ;;  %v11085_v8 = vld [vmem:[#allocation9 + $0x240] ss:$12 sps:$4 sm:$0xff]  }
 0x484   :  { %9594 = vmatpush3.bf16.msra.mxu0 %v11157_v18  ;;  %v11097_v18 = vld [vmem:[#allocation9 + $0x2a0] ss:$12 sps:$4 sm:$0xff]  }
 0x485   :  { %9595 = vmatprep.subr.bf16.mxu0 %v11161_v25  ;;  %v11100_v25 = vld [vmem:[#allocation9 + $0x2b8] ss:$12 sps:$4 sm:$0xff]  }
 0x486   :  { %8045 = vmatpush1.bf16.msra.mxu1 %v11049_v11  ;;  %v11088_v11 = vld [vmem:[#allocation9 + $0x258] ss:$12 sps:$4 sm:$0xff]  }
 0x487   :  { %8046 = vmatprep.subr.bf16.mxu1 %v11054_v35  ;;  %v11091_v35 = vld [vmem:[#allocation9 + $0x270] ss:$12 sps:$4 sm:$0xff]  }
 0x488   :  { %v9504_v26 = vpop.f32.mrb[20].mxu0  ;;  %9596 = vmatpush3.bf16.msra.mxu0 %v11162_v54  ;;  %v11127_v54 = vld [vmem:[#allocation9 + $0x390] ss:$12 sps:$4 sm:$0xff]  }
 0x489   :  { %v9505_v28 = vpop.f32.mrb[21].mxu0  ;;  %9597 = vmatprep.subr.bf16.mxu0 %v11166_v60  ;;  %v11140_v60 = vld [vmem:[#allocation9 + $0x3dc] ss:$12 sps:$4 sm:$0xff]  }
 0x48a   :  { %v9506_v32 = vadd.f32 %v9505_v28, %v9504_v26  ;;  %v9507_v3 = vpop.f32.mrb[22].mxu0  ;;  %8047 = vmatpush1.bf16.msra.mxu1 %v11052_v17  ;;  %v11099_v17 = vld [vmem:[#allocation9 + $0x2a4] ss:$12 sps:$4 sm:$0xff]   ;;  %v11105_v26 = vld [vmem:[#allocation9 + $0x2d4] ss:$12 sps:$4 sm:$0xff]  }
 0x48b   :  { %v9508_v34 = vpop.f32.mrb[23].mxu0  ;;  %8048 = vmatprep.subr.bf16.mxu1 %v11057_v22  ;;  %v11102_v22 = vld [vmem:[#allocation9 + $0x2bc] ss:$12 sps:$4 sm:$0xff]  }
 0x48c   :  { %v6774_v37 = vadd.f32 %v9506_v32, %v6733_v50  ;;  %v9509_v38 = vadd.f32 %v9508_v34, %v9507_v3  ;;  %9598 = vmatpush3.bf16.msra.mxu0 %v11167_v63  ;;  %v11103_v3 = vld [vmem:[#allocation9 + $0x2d0] ss:$12 sps:$4 sm:$0xff]   ;;  %v11108_v34 = vld [vmem:[#allocation9 + $0x2ec] ss:$12 sps:$4 sm:$0xff]  }
 0x48d   :  { %9599 = vmatprep.subr.bf16.mxu0 %v11171_v19  ;;  %v11150_v63 = vld [vmem:[#allocation9 + $0x40c] ss:$12 sps:$4 sm:$0xff]   ;;  %v11160_v19 = vld [vmem:[#allocation9 + $0x43c] ss:$12 sps:$4 sm:$0xff]  }
 0x48e   :  { %v6777_v41 = vadd.f32 %v9509_v38, %v6736_v20  ;;  %8049 = vmatpush1.bf16.msra.mxu1 %v11055_v56 }
 0x48f   :  { %8050 = vmatprep.subr.bf16.mxu1 %v11060_v42 }
 0x490   :  { %9600 = vmatpush3.bf16.msra.mxu0 %v11172_v4  ;;  %v11165_v4 = vld [vmem:[#allocation9 + $0x454] ss:$12 sps:$4 sm:$0xff]  }
 0x491   :  { %9636 = vmatprep.subr.bf16.mxu0 %v11357_v16 }
 0x492   :  { %8051 = vmatpush1.bf16.msra.mxu1 %v11058_v40  ;;  %v11111_v40 = vld [vmem:[#allocation9 + $0x304] ss:$12 sps:$4 sm:$0xff]  }
 0x493   :  { %8063 = vmatprep.subr.bf16.mxu1 %v11063_v43 }
 0x495   :  { %8053 = vmatmul.mubr.bf16.vlgmr.msra.gmra.mrb[24].mxu1 %v11681_v33  ;;  %v11076_v33 = vld [vmem:[#allocation9 + $0x1f8] ss:$12 sps:$4 sm:$0xff]  }
 0x496   :  { %8064 = vmatpush1.bf16.msra.mxu1 %v11061_v44  ;;  %8095 = vmatprep.mubr.bf16.mxu1 %v11685_v9  ;;  %v11081_v9 = vld [vmem:[#allocation9 + $0x214] ss:$12 sps:$4 sm:$0xff]  }
 0x497   :  { %8065 = vmatprep.subr.bf16.mxu1 %v11066_v57  ;;  %v11109_v44 = vld [vmem:[#allocation9 + $0x300] ss:$12 sps:$4 sm:$0xff]   ;;  %v11114_v57 = vld [vmem:[#allocation9 + $0x31c] ss:$12 sps:$4 sm:$0xff]  }
 0x49a   :  { %8066 = vmatpush1.bf16.msra.mxu1 %v11064_v45  ;;  %v11112_v45 = vld [vmem:[#allocation9 + $0x318] ss:$12 sps:$4 sm:$0xff]  }
 0x49b   :  { %8067 = vmatprep.subr.bf16.mxu1 %v11069_v46  ;;  %v11117_v46 = vld [vmem:[#allocation9 + $0x334] ss:$12 sps:$4 sm:$0xff]  }
 0x49e   :  { %8068 = vmatpush1.bf16.msra.mxu1 %v11067_v47  ;;  %v11115_v47 = vld [vmem:[#allocation9 + $0x330] ss:$12 sps:$4 sm:$0xff]  }
 0x49f   :  { %8069 = vmatprep.subr.bf16.mxu1 %v11072_v48  ;;  %v11120_v48 = vld [vmem:[#allocation9 + $0x34c] ss:$12 sps:$4 sm:$0xff]  }
 0x4a2   :  { %8070 = vmatpush1.bf16.msra.mxu1 %v11070_v49  ;;  %v11118_v49 = vld [vmem:[#allocation9 + $0x348] ss:$12 sps:$4 sm:$0xff]  }
 0x4a3   :  { %8071 = vmatprep.subr.bf16.mxu1 %v11075_v51  ;;  %v11123_v51 = vld [vmem:[#allocation9 + $0x364] ss:$12 sps:$4 sm:$0xff]  }
 0x4a6   :  { %8072 = vmatpush1.bf16.msra.mxu1 %v11073_v39  ;;  %v11121_v39 = vld [vmem:[#allocation9 + $0x360] ss:$12 sps:$4 sm:$0xff]  }
 0x4a7   :  { %8073 = vmatprep.subr.bf16.mxu1 %v11078_v52  ;;  %v11126_v52 = vld [vmem:[#allocation9 + $0x37c] ss:$12 sps:$4 sm:$0xff]  }
 0x4a9   :  { %v9526_v55 = vpop.f32.mrb[24].mxu0 }
 0x4aa   :  { %v9527_v58 = vpop.f32.mrb[25].mxu0  ;;  %8074 = vmatpush1.bf16.msra.mxu1 %v11076_v33  ;;  %v11124_v33 = vld [vmem:[#allocation9 + $0x378] ss:$12 sps:$4 sm:$0xff]  }
 0x4ab   :  { %v9528_v62 = vadd.f32 %v9527_v58, %v9526_v55  ;;  %v9529_v36 = vpop.f32.mrb[26].mxu0  ;;  %8075 = vmatprep.subr.bf16.mxu1 %v11081_v9  ;;  %v11132_v9 = vld [vmem:[#allocation9 + $0x3ac] ss:$12 sps:$4 sm:$0xff]   ;;  %v11130_v55 = vld [vmem:[#allocation9 + $0x3a8] ss:$12 sps:$4 sm:$0xff]  }
 0x4ac   :  { %v9530_v0 = vpop.f32.mrb[27].mxu0  ;;  %v11135_v58 = vld [vmem:[#allocation9 + $0x3c4] ss:$12 sps:$4 sm:$0xff]  }
 0x4ad   :  { %v9531_v1 = vadd.f32 %v9530_v0, %v9529_v36  ;;  %v6815_v5 = vadd.f32 %v9528_v62, %v6774_v37  ;;  %v11138_v62 = vld [vmem:[#allocation9 + $0x3d8] ss:$12 sps:$4 sm:$0xff]   ;;  %v11145_v36 = vld [vmem:[#allocation9 + $0x3f4] ss:$12 sps:$4 sm:$0xff]  }
 0x4ae   :  { %8076 = vmatpush1.bf16.msra.mxu1 %v11079_v61  ;;  %v11133_v61 = vld [vmem:[#allocation9 + $0x3c0] ss:$12 sps:$4 sm:$0xff]   ;;  %v11148_v0 = vld [vmem:[#allocation9 + $0x408] ss:$12 sps:$4 sm:$0xff]  }
 0x4af   :  { %8077 = vmatprep.subr.bf16.mxu1 %v11084_v6  ;;  %v6818_v7 = vadd.f32 %v9531_v1, %v6777_v41  ;;  %v11106_v41 = vld [vmem:[#allocation9 + $0x2e8] ss:$12 sps:$4 sm:$0xff]   ;;  %v11143_v6 = vld [vmem:[#allocation9 + $0x3f0] ss:$12 sps:$4 sm:$0xff]  }
 0x4b0   :  { %v11155_v1 = vld [vmem:[#allocation9 + $0x424] ss:$12 sps:$4 sm:$0xff]  }
 0x4b2   :  { %8078 = vmatpush1.bf16.msra.mxu1 %v11082_v14  ;;  %v11158_v14 = vld [vmem:[#allocation9 + $0x438] ss:$12 sps:$4 sm:$0xff]  }
 0x4b3   :  { %8079 = vmatprep.subr.bf16.mxu1 %v11087_v31  ;;  %v11163_v31 = vld [vmem:[#allocation9 + $0x450] ss:$12 sps:$4 sm:$0xff]  }
 0x4b6   :  { %8080 = vmatpush1.bf16.msra.mxu1 %v11085_v8  ;;  %v11168_v8 = vld [vmem:[#allocation9 + $0x468] ss:$12 sps:$4 sm:$0xff]  }
 0x4b7   :  { %8081 = vmatprep.subr.bf16.mxu1 %v11090_v10  ;;  %v11175_v10 = vld [vmem:[#allocation9 + $0x484] ss:$12 sps:$4 sm:$0xff]  }
 0x4ba   :  { %8082 = vmatpush1.bf16.msra.mxu1 %v11088_v11  ;;  %v4150_v11 = vrot.slane %v11670_v29, %v659_v21 }
 0x4bb   :  { %8083 = vmatprep.subr.bf16.mxu1 %v11093_v12 }
 0x4be   :  { %8084 = vmatpush1.bf16.msra.mxu1 %v11091_v35  ;;  %v4154_v35 = vrot.slane %v11670_v29, %v663_v23 }
 0x4bf   :  { %8085 = vmatprep.subr.bf16.mxu1 %v11096_v13 }
 0x4c2   :  { %8086 = vmatpush1.bf16.msra.mxu1 %v11094_v15 }
 0x4c3   :  { %8087 = vmatprep.subr.bf16.mxu1 %v11099_v17 }
 0x4c6   :  { %8088 = vmatpush1.bf16.msra.mxu1 %v11097_v18 }
 0x4c7   :  { %8089 = vmatprep.subr.bf16.mxu1 %v11102_v22 }
 0x4c9   :  { %v6855_v28 = vpop.f32.mrb[28].mxu0 }
 0x4ca   :  { %v6856_v50 = vadd.f32 %v6855_v28, %v6815_v5  ;;  %v9634_v32 = vpop.f32.mrb[29].mxu0  ;;  %8090 = vmatpush1.bf16.msra.mxu1 %v11100_v25  ;;  %v11153_v5 = vld [vmem:[#allocation9 + $0x420] ss:$12 sps:$4 sm:$0xff]  }
 0x4cb   :  { %v6858_v56 = vpop.f32.mrb[30].mxu0  ;;  %8091 = vmatprep.subr.bf16.mxu1 %v11105_v26 }
 0x4cc   :  { %v6859_v42 = vadd.f32 %v6858_v56, %v6818_v7  ;;  %v9635_v20 = vpop.f32.mrb[31].mxu0  ;;  %v6868_v37 = vmax.f32 %v6856_v50, 0.0  ;;  %v11170_v7 = vld [vmem:[#allocation9 + $0x46c] ss:$12 sps:$4 sm:$0xff]  }
 0x4ce   :  { %v6875_v38 = vmax.f32 %v6859_v42, 0.0  ;;  %8092 = vmatpush1.bf16.msra.mxu1 %v11103_v3 }
 0x4cf   :  { %8093 = vmatprep.subr.bf16.mxu1 %v11108_v34 }
 0x4d0   :  { %v11703_v43 = vpack.c.bf16 %v6875_v38, %v6868_v37  ;;  %v11173_v37 = vld [vmem:[#allocation9 + $0x480] ss:$12 sps:$4 sm:$0xff]   ;;  %v11176_v38 = vld [vmem:[#allocation9 + $0x488] ss:$12 sps:$4 sm:$0xff]  }
 0x4d2   :  { %8094 = vmatpush1.bf16.msra.mxu1 %v11106_v41  ;;  %v11179_v41 = vld [vmem:[#allocation9 + $0x49c] ss:$12 sps:$4 sm:$0xff]  }
 0x4d3   :  { %8106 = vmatprep.subr.bf16.mxu1 %v11111_v40  ;;  %v11177_v40 = vld [vmem:[#allocation9 + $0x498] ss:$12 sps:$4 sm:$0xff]  }
 0x4d5   :  { %8096 = vmatmul.mubr.bf16.vlgmr.msra.gmra.mrb[24].mxu1 %v11683_v24  ;;  %v11129_v24 = vld [vmem:[#allocation9 + $0x394] ss:$12 sps:$4 sm:$0xff]  }
 0x4d6   :  { %8107 = vmatpush1.bf16.msra.mxu1 %v11109_v44  ;;  %v11180_v44 = vld [vmem:[#allocation9 + $0x4a0] ss:$12 sps:$4 sm:$0xff]  }
 0x4d7   :  { %8108 = vmatprep.subr.bf16.mxu1 %v11114_v57  ;;  %v11183_v57 = vld [vmem:[#allocation9 + $0x4b4] ss:$12 sps:$4 sm:$0xff]  }
 0x4da   :  { %8109 = vmatpush1.bf16.msra.mxu1 %v11112_v45  ;;  %v11181_v45 = vld [vmem:[#allocation9 + $0x4b0] ss:$12 sps:$4 sm:$0xff]  }
 0x4db   :  { %8110 = vmatprep.subr.bf16.mxu1 %v11117_v46  ;;  %v11184_v46 = vld [vmem:[#allocation9 + $0x4b8] ss:$12 sps:$4 sm:$0xff]  }
 0x4de   :  { %8111 = vmatpush1.bf16.msra.mxu1 %v11115_v47  ;;  %v11187_v47 = vld [vmem:[#allocation9 + $0x4cc] ss:$12 sps:$4 sm:$0xff]  }
 0x4df   :  { %8112 = vmatprep.subr.bf16.mxu1 %v11120_v48  ;;  %v11185_v48 = vld [vmem:[#allocation9 + $0x4c8] ss:$12 sps:$4 sm:$0xff]  }
 0x4e2   :  { %8113 = vmatpush1.bf16.msra.mxu1 %v11118_v49  ;;  %v11188_v49 = vld [vmem:[#allocation9 + $0x4d0] ss:$12 sps:$4 sm:$0xff]  }
 0x4e3   :  { %8114 = vmatprep.subr.bf16.mxu1 %v11123_v51  ;;  %v11191_v51 = vld [vmem:[#allocation9 + $0x4e4] ss:$12 sps:$4 sm:$0xff]  }
 0x4e6   :  { %8115 = vmatpush1.bf16.msra.mxu1 %v11121_v39  ;;  %v11192_v39 = vld [vmem:[#allocation9 + $0x4e8] ss:$12 sps:$4 sm:$0xff]  }
 0x4e7   :  { %8116 = vmatprep.subr.bf16.mxu1 %v11126_v52  ;;  %v7107_v52 = vld [vmem:[#allocation10] sm:$0x7] }
 0x4ea   :  { %8117 = vmatpush1.bf16.msra.mxu1 %v11124_v33  ;;  %v11195_v33 = vld [vmem:[#allocation9 + $0x4fc] ss:$12 sps:$4 sm:$0xff]  }
 0x4eb   :  { %8118 = vmatprep.subr.bf16.mxu1 %v11129_v24  ;;  %v7120_v24 = vrot.slane %v7107_v52, %v11573_v59  ;;  %v11203_v59 = vld [vmem:[#allocation9 + $0x52c] ss:$12 sps:$4 sm:$0xff]  }
 0x4ee   :  { %8119 = vmatpush1.bf16.msra.mxu1 %v11127_v54  ;;  %v11193_v54 = vld [vmem:[#allocation9 + $0x4f8] ss:$12 sps:$4 sm:$0xff]  }
 0x4ef   :  { %8120 = vmatprep.subr.bf16.mxu1 %v11132_v9  ;;  %v11196_v9 = vld [vmem:[#allocation9 + $0x500] ss:$12 sps:$4 sm:$0xff]  }
 0x4f2   :  { %8121 = vmatpush1.bf16.msra.mxu1 %v11130_v55  ;;  %v11199_v55 = vld [vmem:[#allocation9 + $0x514] ss:$12 sps:$4 sm:$0xff]  }
 0x4f3   :  { %8122 = vmatprep.subr.bf16.mxu1 %v11135_v58 }
 0x4f6   :  { %8123 = vmatpush1.bf16.msra.mxu1 %v11133_v61 }
 0x4f7   :  { %8124 = vmatprep.subr.bf16.mxu1 %v11140_v60 }
 0x4fa   :  { %8125 = vmatpush1.bf16.msra.mxu1 %v11138_v62 }
 0x4fb   :  { %8126 = vmatprep.subr.bf16.mxu1 %v11145_v36 }
 0x4fe   :  { %8127 = vmatpush1.bf16.msra.mxu1 %v11143_v6  ;;  %v11197_v6 = vld [vmem:[#allocation9 + $0x510] ss:$12 sps:$4 sm:$0xff]  }
 0x4ff   :  { %8128 = vmatprep.subr.bf16.mxu1 %v11150_v63  ;;  %v11200_v63 = vld [vmem:[#allocation9 + $0x518] ss:$12 sps:$4 sm:$0xff]  }
 0x502   :  { %8129 = vmatpush1.bf16.msra.mxu1 %v11148_v0 }
 0x503   :  { %8130 = vmatprep.subr.bf16.mxu1 %v11155_v1 }
 0x506   :  { %8131 = vmatpush1.bf16.msra.mxu1 %v11153_v5 }
 0x507   :  { %8132 = vmatprep.subr.bf16.mxu1 %v11160_v19 }
 0x50a   :  { %8133 = vmatpush1.bf16.msra.mxu1 %v11158_v14 }
 0x50b   :  { %8134 = vmatprep.subr.bf16.mxu1 %v11165_v4  ;;  %v11201_v4 = vld [vmem:[#allocation9 + $0x528] ss:$12 sps:$4 sm:$0xff]  }
 0x50e   :  { %8135 = vmatpush1.bf16.msra.mxu1 %v11163_v31  ;;  %v11204_v31 = vld [vmem:[#allocation9 + $0x530] ss:$12 sps:$4 sm:$0xff]  }
 0x50f   :  { %8136 = vmatprep.subr.bf16.mxu1 %v11170_v7 }
 0x512   :  { %8137 = vmatpush1.bf16.msra.mxu1 %v11168_v8 }
 0x513   :  { %8149 = vmatprep.subr.bf16.mxu1 %v11175_v10 }
 0x526   :  { %v9557_v12 = vpop.f32.mrb[32].mxu0 }
 0x527   :  { %v9558_v13 = vpop.f32.mrb[33].mxu0 }
 0x528   :  { %v6689_v15 = vpop.f32.mrb[20].mxu1  ;;  %v11712_v17 = vadd.f32 %v9558_v13, %v9557_v12  ;;  %v9560_v18 = vpop.f32.mrb[34].mxu0 }
 0x529   :  { %v9676_v22 = vadd.f32 %v6689_v15, %v4150_v11  ;;  %v6691_v25 = vpop.f32.mrb[21].mxu1  ;;  %v9561_v26 = vpop.f32.mrb[35].mxu0 }
 0x52a   :  { %v9677_v28 = vadd.f32 %v6691_v25, %v4154_v35  ;;  %v6693_v50 = vpop.f32.mrb[22].mxu1  ;;  %v11714_v32 = vadd.f32 %v9561_v26, %v9560_v18  ;;  %v8227_v60 = vadd.f32 %v11712_v17, %v7120_v24  ;;  %v7112_v17 = vrot.slane %v7107_v52, %v11567_v27 }
 0x52b   :  { %v9678_v3 = vadd.f32 %v6693_v50, %v4150_v11  ;;  %v6695_v56 = vpop.f32.mrb[23].mxu1  ;;  %v6866_v34 = vmax.f32 %v9676_v22, 0.0  ;;  %v7116_v18 = vrot.slane %v7107_v52, %v11570_v30 }
 0x52c   :  { %v9679_v21 = vadd.f32 %v6695_v56, %v4154_v35  ;;  %v6867_v53 = vmax.f32 %v9677_v28, 0.0  ;;  %v8230_v1 = vadd.f32 %v11714_v32, %v7120_v24 }
 0x52d   :  { %v6873_v42 = vmax.f32 %v9678_v3, 0.0 }
 0x52e   :  { %v6874_v20 = vmax.f32 %v9679_v21, 0.0 }
 0x52f   :  { %v6880_v23 = vpack.c.bf16 %v6873_v42, %v6866_v34 }
 0x530   :  { %v6881_v29 = vpack.c.bf16 %v6874_v20, %v6867_v53 }
 0x532   :  { %8138 = vmatprep.mubr.bf16.mxu1 %v6881_v29  ;;  %8306 = vmatprep.mubr.bf16.mxu0 %v6881_v29 }
 0x533   :  { %8139 = vmatmul.mubr.bf16.vlgmr.msra.gmra.mrb[24].mxu1 %v6880_v23  ;;  %8307 = vmatmul.mubr.bf16.vlgmr.msra.gmra.mrb[40].mxu0 %v6880_v23 }
 0x534   :  { %8150 = vmatpush1.bf16.msra.mxu1 %v11173_v37  ;;  %9637 = vmatpush3.bf16.msra.mxu0 %v11176_v38 }
 0x535   :  { %8151 = vmatprep.subr.bf16.mxu1 %v11179_v41  ;;  %9638 = vmatprep.subr.bf16.mxu0 %v11357_v16 }
 0x536   :  { %8181 = vmatprep.mubr.bf16.mxu1 %v11356_v2  ;;  %9652 = vmatprep.mubr.msk.bf16.mxu0 %vm11358_vm0, %v11357_v16  ;;  %v11189_v2 = vld [vmem:[#allocation9 + $0x4e0] ss:$12 sps:$4 sm:$0xff]  }
 0x538   :  { %8152 = vmatpush1.bf16.msra.mxu1 %v11177_v40  ;;  %9639 = vmatpush3.bf16.msra.mxu0 %v11180_v44 }
 0x539   :  { %8153 = vmatprep.subr.bf16.mxu1 %v11183_v57  ;;  %9640 = vmatprep.subr.bf16.mxu0 %v11357_v16 }
 0x53c   :  { %8154 = vmatpush1.bf16.msra.mxu1 %v11181_v45  ;;  %9641 = vmatpush3.bf16.msra.mxu0 %v11184_v46 }
 0x53d   :  { %8155 = vmatprep.subr.bf16.mxu1 %v11187_v47  ;;  %9642 = vmatprep.subr.bf16.mxu0 %v11357_v16 }
 0x540   :  { %8156 = vmatpush1.bf16.msra.mxu1 %v11185_v48  ;;  %9643 = vmatpush3.bf16.msra.mxu0 %v11188_v49 }
 0x541   :  { %8157 = vmatprep.subr.bf16.mxu1 %v11191_v51  ;;  %9644 = vmatprep.subr.bf16.mxu0 %v11357_v16 }
 0x544   :  { %8158 = vmatpush1.bf16.msra.mxu1 %v11189_v2  ;;  %9645 = vmatpush3.bf16.msra.mxu0 %v11192_v39 }
 0x545   :  { %8159 = vmatprep.subr.bf16.mxu1 %v11195_v33  ;;  %9646 = vmatprep.subr.bf16.mxu0 %v11357_v16 }
 0x546   :  { %v9579_v58 = vpop.f32.mrb[36].mxu0 }
 0x547   :  { %v9580_v61 = vpop.f32.mrb[37].mxu0 }
 0x548   :  { %8160 = vmatpush1.bf16.msra.mxu1 %v11193_v54  ;;  %v9581_v62 = vadd.f32 %v9580_v61, %v9579_v58  ;;  %9647 = vmatpush3.bf16.msra.mxu0 %v11196_v9  ;;  %v9582_v36 = vpop.f32.mrb[38].mxu0 }
 0x549   :  { %v9583_v0 = vpop.f32.mrb[39].mxu0  ;;  %8161 = vmatprep.subr.bf16.mxu1 %v11199_v55  ;;  %9648 = vmatprep.subr.bf16.mxu0 %v11357_v16 }
 0x54a   :  { %v8268_v5 = vadd.f32 %v9581_v62, %v8227_v60  ;;  %v9584_v19 = vadd.f32 %v9583_v0, %v9582_v36 }
 0x54c   :  { %v8271_v14 = vadd.f32 %v9584_v19, %v8230_v1  ;;  %8162 = vmatpush1.bf16.msra.mxu1 %v11197_v6  ;;  %9649 = vmatpush3.bf16.msra.mxu0 %v11200_v63 }
 0x54d   :  { %8163 = vmatprep.subr.bf16.mxu1 %v11203_v59  ;;  %9650 = vmatprep.subr.bf16.mxu0 %v11357_v16 }
 0x550   :  { %8164 = vmatpush1.bf16.msra.mxu1 %v11201_v4  ;;  %9651 = vmatpush3.bf16.msra.mxu0 %v11204_v31 }
 0x553   :  { %8182 = vmatmul.mubr.bf16.vlgmr.msra.gmra.mrb[24].mxu1 %v11703_v43  ;;  %9653 = vmatmul.mubr.bf16.vlgmr.msra.gmra.mrb[44].mxu0 %v11703_v43 }
 0x606   :  { %v9601_v7 = vpop.f32.mrb[40].mxu0 }
 0x607   :  { %v9602_v8 = vpop.f32.mrb[41].mxu0 }
 0x608   :  { %v9603_v10 = vadd.f32 %v9602_v8, %v9601_v7  ;;  %v9604_v11 = vpop.f32.mrb[42].mxu0 }
 0x609   :  { %v9605_v12 = vpop.f32.mrb[43].mxu0 }
 0x60a   :  { %v9606_v35 = vadd.f32 %v9605_v12, %v9604_v11  ;;  %v8309_v13 = vadd.f32 %v9603_v10, %v8268_v5 }
 0x60c   :  { %v8312_v15 = vadd.f32 %v9606_v35, %v8271_v14 }
 0x626   :  { %v8183_v22 = vpop.f32.mrb[24].mxu1  ;;  %v8349_v16 = vpop.f32.mrb[44].mxu0 }
 0x627   :  { %v9680_v25 = vadd.f32 %v8183_v22, %v7112_v17  ;;  %v8350_v26 = vadd.f32 %v8349_v16, %v8309_v13  ;;  %v8185_v28 = vpop.f32.mrb[25].mxu1  ;;  %v9654_v50 = vpop.f32.mrb[45].mxu0 }
 0x628   :  { %v9681_v32 = vadd.f32 %v8185_v28, %v7116_v18  ;;  %v8187_v43 = vpop.f32.mrb[26].mxu1  ;;  %v8352_v3 = vpop.f32.mrb[46].mxu0 }
 0x629   :  { %8356 = vst [vmem:[%s11758_s7] sm:$0xff] %v9680_v25  ;;  %8358 = vst [vmem:[%s11758_s7 + $0x10] sm:$0xff] %v8350_v26  ;;  %v9682_v27 = vadd.f32 %v8187_v43, %v7112_v17  ;;  %v8353_v56 = vadd.f32 %v8352_v3, %v8312_v15  ;;  %v8189_v30 = vpop.f32.mrb[27].mxu1  ;;  %v9655_v21 = vpop.f32.mrb[47].mxu0 }
 0x62a   :  { %8357 = vst [vmem:[%s11758_s7 + $0x8] sm:$0xff] %v9681_v32  ;;  %v9683_v34 = vadd.f32 %v8189_v30, %v7116_v18 }
 0x62b   :  { %8359 = vst [vmem:[%s11758_s7 + $0x18] sm:$0xff] %v9682_v27  ;;  %8361 = vst [vmem:[%s11758_s7 + $0x28] sm:$0xff] %v8353_v56 }
 0x62c   :  { %8360 = vst [vmem:[%s11758_s7 + $0x20] sm:$0xff] %v9683_v34 }
 0x62d   :  { %8366 = vsyncpa [#allocation3], 1 }
 0x62e   :  { %8367 = vsyncpa [#allocation5], 1 }
 0x62f   :  { %8368 = vsyncpa [#allocation8], 1 }
 0x630   :  { %8369 = vsyncpa [#allocation11], 1 }

</bundles_post_ra>
